<compile_context>
chip_gen: v5e
topology: v5e:2x2
jax: 0.10.0
libtpu: 0.0.40
codegen_flags: <defaults>
</compile_context>

<pallas_src>
import functools

import jax
import jax.numpy as jnp
from jax.experimental import pallas as pl
from jax.experimental.pallas import tpu as pltpu


OUT_PAD = 128  # lane-dense padded classifier width (multiple of 128)


# ----------------------------------------------------------------------------
# Fused forward kernel (processes GPB graphs per grid step)
# ----------------------------------------------------------------------------

def _fused_forward_kernel(
    np_feat_ref, adj0_ref,
    w1_ref, wls_ref, wg_ref, w2g_ref, w2np_ref, wc1_ref, wc2_ref,
    wcle_ref, wcls_ref, bias_ref,
    out_ref,
    *, gpb, n, hid, feat_dim, out_dim, epsilon, skip_conn,
):
    f32 = jnp.float32
    bf16 = jnp.bfloat16

    def mm(a_b, w_ref):
        # Weights are pre-cast bf16 in the wrapper; f32 accumulation on MXU.
        return jnp.dot(a_b, w_ref[...], preferred_element_type=f32)

    np_feat = np_feat_ref[...]                       # [gpb*n, hid+F] f32
    pre_feat = np_feat[:, hid:]                      # [gpb*n, F]   raw feats
    pos_emb = np_feat[:, :hid]                       # [gpb*n, hid] PE

    # Packed per-channel vectors (single DMA); static row/lane slices.
    bn_scale = bias_ref[0:1, :feat_dim]
    bn_shift = bias_ref[1:2, :feat_dim]
    gl_w = bias_ref[2:3, :feat_dim]
    b1 = bias_ref[3:4, :hid]
    bls = bias_ref[4:5, :2 * hid]
    bg = bias_ref[5:6, :4 * hid]
    b2 = bias_ref[6:7, :2 * hid]
    bc1 = bias_ref[7:8, :hid]
    bc2 = bias_ref[8:9, :hid]
    bcl = bias_ref[9:10, :OUT_PAD]

    # ---- BatchNorm1d (eval) folded to scale/shift: VPU prologue -----------
    cur_feat = pre_feat * bn_scale + bn_shift

    # ---- Graph learner (per graph): weighted cosine sim (f32), epsilon-
    #      sparsify, row-normalize, skip-connection blend with init_adj ------
    h = cur_feat * gl_w
    hn = h * jax.lax.rsqrt(jnp.sum(h * h, axis=-1, keepdims=True) + 1e-8)
    adjs = []
    for g in range(gpb):
        hng = hn[g * n:(g + 1) * n]
        # f32 similarity: bf16 entries near epsilon can flip sparsification.
        s = jax.lax.dot_general(
            hng, hng, dimension_numbers=(((1,), (1,)), ((), ())),
            preferred_element_type=f32)              # [n, n]
        s = jnp.where(s > epsilon, s, 0.0)
        s = s / (jnp.sum(s, axis=-1, keepdims=True) + 1e-8)   # exact divide
        a = skip_conn * adj0_ref[g] + (1.0 - skip_conn) * s
        adjs.append(a.astype(bf16))   # only the blended bf16 adjacency stays live

    # ---- Feature transforms at M = gpb*n rows (MXU row packing) -----------
    np_feat_b = np_feat.astype(bf16)                 # reused by mlp1 and mlp2
    npf = jnp.maximum(mm(np_feat_b, w1_ref) + b1, 0.0)          # mlp1 + ReLU
    struct_emb = mm(pos_emb.astype(bf16), wls_ref) + bls        # bilstm surrogate
    x_group = mm(npf.astype(bf16), wg_ref) + bg                 # grouping surrogate
    h2 = mm(x_group.astype(bf16), w2g_ref) + mm(np_feat_b, w2np_ref) + b2
    h2 = jnp.maximum(h2, 0.0)                                   # mlp2 + ReLU

    # ---- conv1: leaky_relu(A @ (h2 @ W1) + b1); per-graph aggregation -----
    xw1 = mm(h2.astype(bf16), wc1_ref).astype(bf16)             # [gpb*n, hid]
    y1 = jnp.concatenate(
        [jnp.dot(adjs[g], xw1[g * n:(g + 1) * n], preferred_element_type=f32)
         for g in range(gpb)], axis=0) + bc1
    y1 = jnp.where(y1 >= 0.0, y1, 0.01 * y1)

    # ---- conv2: A @ (y1 @ W2) + b2 (adjacency still resident in VMEM) -----
    xw2 = mm(y1.astype(bf16), wc2_ref).astype(bf16)
    emb = jnp.concatenate(
        [jnp.dot(adjs[g], xw2[g * n:(g + 1) * n], preferred_element_type=f32)
         for g in range(gpb)], axis=0) + bc2

    # ---- classifier over concat(emb, struct_emb); lane-dense 128 output ---
    logits = (mm(emb.astype(bf16), wcle_ref)
              + mm(struct_emb.astype(bf16), wcls_ref) + bcl)    # [gpb*n, 128]
    lane = jax.lax.broadcasted_iota(jnp.int32, logits.shape, 1)
    logits = jnp.where(lane < out_dim, logits, -1e30)           # mask padding

    # ---- log-softmax (f32) -------------------------------------------------
    m = jnp.max(logits, axis=-1, keepdims=True)
    z = logits - m
    lse = jnp.log(jnp.sum(jnp.exp(z), axis=-1, keepdims=True))
    out_ref[...] = (z - lse).astype(out_ref.dtype)


# ----------------------------------------------------------------------------
# Parameter setup (deterministic, in-script)
# ----------------------------------------------------------------------------

def init_params(key, node_feat_dim, hid_dim, out_dim):
    input_dim = node_feat_dim + hid_dim
    ks = jax.random.split(key, 8)

    def lin(k, fan_in, fan_out):
        bound = 1.0 / jnp.sqrt(fan_in)
        kw, kb = jax.random.split(k)
        w = jax.random.uniform(kw, (fan_in, fan_out), jnp.float32, -bound, bound)
        b = jax.random.uniform(kb, (fan_out,), jnp.float32, -bound, bound)
        return w, b

    params = {}
    params["gl_w"] = jax.random.uniform(ks[0], (node_feat_dim,), jnp.float32, 0.5, 1.5)
    params["mlp1"] = lin(ks[1], input_dim, hid_dim)
    params["grouping"] = lin(ks[2], hid_dim, 4 * hid_dim)
    params["mlp2"] = lin(ks[3], 4 * hid_dim + input_dim, 2 * hid_dim)
    params["conv1"] = lin(ks[4], 2 * hid_dim, hid_dim)
    params["conv2"] = lin(ks[5], hid_dim, hid_dim)
    params["bilstm"] = lin(ks[6], hid_dim, 2 * hid_dim)
    params["classifier"] = lin(ks[7], hid_dim + 2 * hid_dim, out_dim)
    params["bn_gamma"] = jnp.ones((node_feat_dim,), jnp.float32)
    params["bn_beta"] = jnp.zeros((node_feat_dim,), jnp.float32)
    params["bn_mean"] = jnp.zeros((node_feat_dim,), jnp.float32)
    params["bn_var"] = jnp.ones((node_feat_dim,), jnp.float32)
    return params


def sinusoidal_pe(node_ids, dim):
    # PE table build (one-off glue); DMA'd into the kernel as part of the
    # [pos_emb | node_feats] slab so the kernel needs no in-kernel sin/cos.
    pos = node_ids.astype(jnp.float32)[:, None]
    i = jnp.arange(dim // 2, dtype=jnp.float32)[None, :]
    div = jnp.exp(-jnp.log(10000.0) * (2.0 * i) / dim)
    ang = pos * div
    return jnp.concatenate([jnp.sin(ang), jnp.cos(ang)], axis=-1)


# ----------------------------------------------------------------------------
# Forward pass (test_epoch semantics, eval mode) — one fused, batched call
# ----------------------------------------------------------------------------

def deeper_gcn_forward(params, sg_nodes, node_feats, init_adj, hid_dim, out_dim,
                       epsilon=0.1, graph_skip_conn=0.5, graphs_per_block=2):
    b, n, f = node_feats.shape
    gpb = min(graphs_per_block, b)
    assert b % gpb == 0, "batch must be a multiple of graphs_per_block"
    assert 4 * hid_dim <= OUT_PAD and 2 * hid_dim <= OUT_PAD and f <= OUT_PAD
    nb = b // gpb
    bf16 = jnp.bfloat16

    # Fold eval BatchNorm into a scale/shift pair (param-only prep).
    bn_scale = params["bn_gamma"] / jnp.sqrt(params["bn_var"] + 1e-5)
    bn_shift = params["bn_beta"] - params["bn_mean"] * bn_scale

    # mlp1 consumes concat(pos_emb, node_feats) directly -> whole weight.
    w1, b1 = params["mlp1"]
    # mlp2 consumes concat(x_group, pos_emb, node_feats) = concat(x_group, np_feat).
    w2, b2 = params["mlp2"]
    w2_g, w2_np = w2[:4 * hid_dim], w2[4 * hid_dim:]
    # Classifier over concat(emb, struct_emb); pad output to 128 lanes.
    wcl, bcl = params["classifier"]
    pad = OUT_PAD - out_dim
    wcl_e = jnp.pad(wcl[:hid_dim], ((0, 0), (0, pad)))
    wcl_s = jnp.pad(wcl[hid_dim:], ((0, 0), (0, pad)))
    bcl_p = jnp.pad(bcl, (0, pad))

    wls, bls = params["bilstm"]
    wg, bg = params["grouping"]
    wc1, bc1 = params["conv1"]
    wc2, bc2 = params["conv2"]

    # Pack every small per-channel vector into one [10, 128] f32 slab.
    def row(v):
        return jnp.pad(v.astype(jnp.float32), (0, OUT_PAD - v.shape[0]))
    bias_stack = jnp.stack([row(bn_scale), row(bn_shift), row(params["gl_w"]),
                            row(b1), row(bls), row(bg), row(b2),
                            row(bc1), row(bc2), row(bcl_p)])

    # Positional embedding + raw feats as a single per-node slab [B*N, hid+F].
    pos_emb = sinusoidal_pe(sg_nodes.reshape(-1), hid_dim)
    np_feat = jnp.concatenate([pos_emb, node_feats.reshape(b * n, f)], axis=-1)

    # Pre-cast all weights to bf16 (half the DMA bytes, no in-kernel packing).
    weights = (w1.astype(bf16), wls.astype(bf16), wg.astype(bf16),
               w2_g.astype(bf16), w2_np.astype(bf16),
               wc1.astype(bf16), wc2.astype(bf16),
               wcl_e.astype(bf16), wcl_s.astype(bf16))

    const2d = lambda i: (0, 0)                    # weights stay VMEM-resident
    in_specs = (
        [pl.BlockSpec((gpb * n, hid_dim + f), lambda i: (i, 0)),
         pl.BlockSpec((gpb, n, n), lambda i: (i, 0, 0))]
        + [pl.BlockSpec(w.shape, const2d) for w in weights]
        + [pl.BlockSpec(bias_stack.shape, const2d)]
    )

    # TODO(synk): if cluster size N grows toward ~2k, tile the A@(XW)
    # aggregation over adjacency columns instead of keeping NxN resident
    # (v7x has only 64 MiB VMEM); at N=128 the full blend fits trivially.
    out_padded = pl.pallas_call(
        functools.partial(
            _fused_forward_kernel,
            gpb=gpb, n=n, hid=hid_dim, feat_dim=f, out_dim=out_dim,
            epsilon=epsilon, skip_conn=graph_skip_conn),
        out_shape=jax.ShapeDtypeStruct((b * n, OUT_PAD), jnp.float32),
        grid=(nb,),
        in_specs=in_specs,
        out_specs=pl.BlockSpec((gpb * n, OUT_PAD), lambda i: (i, 0)),
        compiler_params=pltpu.CompilerParams(
            dimension_semantics=("parallel",),
            vmem_limit_bytes=32 * 1024 * 1024),
    )(np_feat, init_adj, *weights, bias_stack)

    # TODO(synk): LSTM(args), mutiple.QGrouping/MLGrouping and PClassifier
    # internals are unavailable in the reference; they are approximated by
    # learned linear maps inside the fused kernel.
    return out_padded[:, :out_dim].reshape(b, n, out_dim)


# ----------------------------------------------------------------------------
# Main
# ----------------------------------------------------------------------------

if __name__ == "__main__":
    B = 4              # cluster subgraphs per call (batched grid)
    N = 128            # nodes per cluster subgraph
    NODE_FEAT_DIM = 32
    HID_DIM = 32
    OUT_DIM = 8

    key = jax.random.PRNGKey(0)
    k_feat, k_adj, k_param = jax.random.split(key, 3)

    sg_nodes = (jnp.tile(jnp.arange(N, dtype=jnp.int32)[None, :], (B, 1))
                + N * jnp.arange(B, dtype=jnp.int32)[:, None])
    node_feats = jax.random.normal(k_feat, (B, N, NODE_FEAT_DIM), jnp.float32)

    # Symmetric random sparse-ish adjacency with self loops, per graph.
    a = (jax.random.uniform(k_adj, (B, N, N)) > 0.9).astype(jnp.float32)
    init_adj = jnp.clip(a + jnp.swapaxes(a, 1, 2)
                        + jnp.eye(N, dtype=jnp.float32)[None], 0.0, 1.0)

    params = init_params(k_param, NODE_FEAT_DIM, HID_DIM, OUT_DIM)

    fwd = jax.jit(functools.partial(deeper_gcn_forward,
                                    hid_dim=HID_DIM, out_dim=OUT_DIM))
    out = fwd(params, sg_nodes, node_feats, init_adj)
    jax.block_until_ready(out)

    assert out.shape == (B, N, OUT_DIM)
    assert bool(jnp.all(jnp.isfinite(out)))
    # rows of log_softmax must sum (in prob space) to ~1
    assert bool(jnp.allclose(jnp.sum(jnp.exp(out), axis=-1), 1.0, atol=1e-4))

    print("KERNEL_OK")
</pallas_src>

<mosaic_0001>
module attributes {stable_mosaic.version = 11 : i64} {
  func.func @_fused_forward_kernel(%arg0: i32, %arg1: memref<256x64xf32, #tpu.memory_space<vmem>>, %arg2: memref<2x128x128xf32, #tpu.memory_space<vmem>>, %arg3: memref<64x32xbf16, #tpu.memory_space<vmem>>, %arg4: memref<32x64xbf16, #tpu.memory_space<vmem>>, %arg5: memref<32x128xbf16, #tpu.memory_space<vmem>>, %arg6: memref<128x64xbf16, #tpu.memory_space<vmem>>, %arg7: memref<64x64xbf16, #tpu.memory_space<vmem>>, %arg8: memref<64x32xbf16, #tpu.memory_space<vmem>>, %arg9: memref<32x32xbf16, #tpu.memory_space<vmem>>, %arg10: memref<32x128xbf16, #tpu.memory_space<vmem>>, %arg11: memref<64x128xbf16, #tpu.memory_space<vmem>>, %arg12: memref<10x128xf32, #tpu.memory_space<vmem>>, %arg13: memref<256x128xf32, #tpu.memory_space<vmem>>) attributes {dimension_semantics = [#tpu.dimension_semantics<parallel>], iteration_bounds = array<i64: 2>, scalar_prefetch = 0 : i64, scratch_operands = 0 : i64, tpu.core_type = #tpu.core_type<tc>, window_params = [{transform_indices = @transform_0, window_bounds = array<i64: 256, 64>}, {transform_indices = @transform_1, window_bounds = array<i64: 2, 128, 128>}, {pipeline_mode = #tpu.pipeline_mode<synchronous>, transform_indices = @transform_2, window_bounds = array<i64: 64, 32>}, {pipeline_mode = #tpu.pipeline_mode<synchronous>, transform_indices = @transform_3, window_bounds = array<i64: 32, 64>}, {pipeline_mode = #tpu.pipeline_mode<synchronous>, transform_indices = @transform_4, window_bounds = array<i64: 32, 128>}, {pipeline_mode = #tpu.pipeline_mode<synchronous>, transform_indices = @transform_5, window_bounds = array<i64: 128, 64>}, {pipeline_mode = #tpu.pipeline_mode<synchronous>, transform_indices = @transform_6, window_bounds = array<i64: 64, 64>}, {pipeline_mode = #tpu.pipeline_mode<synchronous>, transform_indices = @transform_7, window_bounds = array<i64: 64, 32>}, {pipeline_mode = #tpu.pipeline_mode<synchronous>, transform_indices = @transform_8, window_bounds = array<i64: 32, 32>}, {pipeline_mode = #tpu.pipeline_mode<synchronous>, transform_indices = @transform_9, window_bounds = array<i64: 32, 128>}, {pipeline_mode = #tpu.pipeline_mode<synchronous>, transform_indices = @transform_10, window_bounds = array<i64: 64, 128>}, {pipeline_mode = #tpu.pipeline_mode<synchronous>, transform_indices = @transform_11, window_bounds = array<i64: 10, 128>}, {transform_indices = @transform_12, window_bounds = array<i64: 256, 128>}]} {
    %c0 = arith.constant 0 : index
    %c0_0 = arith.constant 0 : index
    %0 = vector.load %arg1[%c0, %c0_0] : memref<256x64xf32, #tpu.memory_space<vmem>>, vector<256x64xf32>
    %1 = vector.extract_strided_slice %0 {offsets = [0, 32], sizes = [256, 32], strides = [1, 1]} : vector<256x64xf32> to vector<256x32xf32>
    %2 = vector.extract_strided_slice %0 {offsets = [0, 0], sizes = [256, 32], strides = [1, 1]} : vector<256x64xf32> to vector<256x32xf32>
    %c0_1 = arith.constant 0 : index
    %c0_2 = arith.constant 0 : index
    %3 = vector.load %arg12[%c0_1, %c0_2] : memref<10x128xf32, #tpu.memory_space<vmem>>, vector<1x32xf32>
    %c1 = arith.constant 1 : index
    %c0_3 = arith.constant 0 : index
    %4 = vector.load %arg12[%c1, %c0_3] : memref<10x128xf32, #tpu.memory_space<vmem>>, vector<1x32xf32>
    %c2 = arith.constant 2 : index
    %c0_4 = arith.constant 0 : index
    %5 = vector.load %arg12[%c2, %c0_4] : memref<10x128xf32, #tpu.memory_space<vmem>>, vector<1x32xf32>
    %c3 = arith.constant 3 : index
    %c0_5 = arith.constant 0 : index
    %6 = vector.load %arg12[%c3, %c0_5] : memref<10x128xf32, #tpu.memory_space<vmem>>, vector<1x32xf32>
    %c4 = arith.constant 4 : index
    %c0_6 = arith.constant 0 : index
    %7 = vector.load %arg12[%c4, %c0_6] : memref<10x128xf32, #tpu.memory_space<vmem>>, vector<1x64xf32>
    %c5 = arith.constant 5 : index
    %c0_7 = arith.constant 0 : index
    %8 = vector.load %arg12[%c5, %c0_7] : memref<10x128xf32, #tpu.memory_space<vmem>>, vector<1x128xf32>
    %c6 = arith.constant 6 : index
    %c0_8 = arith.constant 0 : index
    %9 = vector.load %arg12[%c6, %c0_8] : memref<10x128xf32, #tpu.memory_space<vmem>>, vector<1x64xf32>
    %c7 = arith.constant 7 : index
    %c0_9 = arith.constant 0 : index
    %10 = vector.load %arg12[%c7, %c0_9] : memref<10x128xf32, #tpu.memory_space<vmem>>, vector<1x32xf32>
    %c8 = arith.constant 8 : index
    %c0_10 = arith.constant 0 : index
    %11 = vector.load %arg12[%c8, %c0_10] : memref<10x128xf32, #tpu.memory_space<vmem>>, vector<1x32xf32>
    %c9 = arith.constant 9 : index
    %c0_11 = arith.constant 0 : index
    %12 = vector.load %arg12[%c9, %c0_11] : memref<10x128xf32, #tpu.memory_space<vmem>>, vector<1x128xf32>
    %13 = vector.broadcast %3 : vector<1x32xf32> to vector<256x32xf32>
    %14 = arith.mulf %1, %13 : vector<256x32xf32>
    %15 = vector.broadcast %4 : vector<1x32xf32> to vector<256x32xf32>
    %16 = arith.addf %14, %15 : vector<256x32xf32>
    %17 = vector.broadcast %5 : vector<1x32xf32> to vector<256x32xf32>
    %18 = arith.mulf %16, %17 : vector<256x32xf32>
    %19 = arith.mulf %18, %18 : vector<256x32xf32>
    %cst = arith.constant dense<0.000000e+00> : vector<256xf32>
    %20 = vector.multi_reduction <add>, %19, %cst [1] : vector<256x32xf32> to vector<256xf32>
    %21 = vector.shape_cast %20 : vector<256xf32> to vector<256x1xf32>
    %cst_12 = arith.constant 9.99999993E-9 : f32
    %22 = vector.broadcast %cst_12 : f32 to vector<256x1xf32>
    %23 = arith.addf %21, %22 : vector<256x1xf32>
    %24 = math.rsqrt %23 : vector<256x1xf32>
    %25 = vector.broadcast %24 : vector<256x1xf32> to vector<256x32xf32>
    %26 = arith.mulf %18, %25 : vector<256x32xf32>
    %27 = vector.extract_strided_slice %26 {offsets = [0, 0], sizes = [128, 32], strides = [1, 1]} : vector<256x32xf32> to vector<128x32xf32>
    %cst_13 = arith.constant dense<0.000000e+00> : vector<128x128xf32>
    %28 = tpu.matmul %27, %27, %cst_13 {dimension_numbers = #tpu.dot_dimension_numbers<[1], [1], [0], [0], [0, 0, 1, 0], [], []>} : vector<128x32xf32>, vector<128x32xf32>, vector<128x128xf32> -> vector<128x128xf32>
    %cst_14 = arith.constant 1.000000e-01 : f32
    %29 = vector.broadcast %cst_14 : f32 to vector<128x128xf32>
    %30 = arith.cmpf ogt, %28, %29 : vector<128x128xf32>
    %cst_15 = arith.constant 0.000000e+00 : f32
    %31 = vector.broadcast %cst_15 : f32 to vector<128x128xf32>
    %32 = arith.select %30, %28, %31 : vector<128x128xi1>, vector<128x128xf32>
    %cst_16 = arith.constant dense<0.000000e+00> : vector<128xf32>
    %33 = vector.multi_reduction <add>, %32, %cst_16 [1] : vector<128x128xf32> to vector<128xf32>
    %34 = vector.shape_cast %33 : vector<128xf32> to vector<128x1xf32>
    %cst_17 = arith.constant 9.99999993E-9 : f32
    %35 = vector.broadcast %cst_17 : f32 to vector<128x1xf32>
    %36 = arith.addf %34, %35 : vector<128x1xf32>
    %37 = vector.broadcast %36 : vector<128x1xf32> to vector<128x128xf32>
    %38 = arith.divf %32, %37 : vector<128x128xf32>
    %c0_18 = arith.constant 0 : index
    %c0_19 = arith.constant 0 : index
    %c0_20 = arith.constant 0 : index
    %39 = vector.load %arg2[%c0_18, %c0_19, %c0_20] : memref<2x128x128xf32, #tpu.memory_space<vmem>>, vector<1x128x128xf32>
    %40 = vector.shape_cast %39 : vector<1x128x128xf32> to vector<128x128xf32>
    %cst_21 = arith.constant 5.000000e-01 : f32
    %41 = vector.broadcast %cst_21 : f32 to vector<128x128xf32>
    %42 = arith.mulf %41, %40 : vector<128x128xf32>
    %cst_22 = arith.constant 5.000000e-01 : f32
    %43 = vector.broadcast %cst_22 : f32 to vector<128x128xf32>
    %44 = arith.mulf %43, %38 : vector<128x128xf32>
    %45 = arith.addf %42, %44 : vector<128x128xf32>
    %46 = arith.truncf %45 : vector<128x128xf32> to vector<128x128xbf16>
    %47 = vector.extract_strided_slice %26 {offsets = [128, 0], sizes = [128, 32], strides = [1, 1]} : vector<256x32xf32> to vector<128x32xf32>
    %cst_23 = arith.constant dense<0.000000e+00> : vector<128x128xf32>
    %48 = tpu.matmul %47, %47, %cst_23 {dimension_numbers = #tpu.dot_dimension_numbers<[1], [1], [0], [0], [0, 0, 1, 0], [], []>} : vector<128x32xf32>, vector<128x32xf32>, vector<128x128xf32> -> vector<128x128xf32>
    %cst_24 = arith.constant 1.000000e-01 : f32
    %49 = vector.broadcast %cst_24 : f32 to vector<128x128xf32>
    %50 = arith.cmpf ogt, %48, %49 : vector<128x128xf32>
    %cst_25 = arith.constant 0.000000e+00 : f32
    %51 = vector.broadcast %cst_25 : f32 to vector<128x128xf32>
    %52 = arith.select %50, %48, %51 : vector<128x128xi1>, vector<128x128xf32>
    %cst_26 = arith.constant dense<0.000000e+00> : vector<128xf32>
    %53 = vector.multi_reduction <add>, %52, %cst_26 [1] : vector<128x128xf32> to vector<128xf32>
    %54 = vector.shape_cast %53 : vector<128xf32> to vector<128x1xf32>
    %cst_27 = arith.constant 9.99999993E-9 : f32
    %55 = vector.broadcast %cst_27 : f32 to vector<128x1xf32>
    %56 = arith.addf %54, %55 : vector<128x1xf32>
    %57 = vector.broadcast %56 : vector<128x1xf32> to vector<128x128xf32>
    %58 = arith.divf %52, %57 : vector<128x128xf32>
    %c1_28 = arith.constant 1 : index
    %c0_29 = arith.constant 0 : index
    %c0_30 = arith.constant 0 : index
    %59 = vector.load %arg2[%c1_28, %c0_29, %c0_30] : memref<2x128x128xf32, #tpu.memory_space<vmem>>, vector<1x128x128xf32>
    %60 = vector.shape_cast %59 : vector<1x128x128xf32> to vector<128x128xf32>
    %cst_31 = arith.constant 5.000000e-01 : f32
    %61 = vector.broadcast %cst_31 : f32 to vector<128x128xf32>
    %62 = arith.mulf %61, %60 : vector<128x128xf32>
    %cst_32 = arith.constant 5.000000e-01 : f32
    %63 = vector.broadcast %cst_32 : f32 to vector<128x128xf32>
    %64 = arith.mulf %63, %58 : vector<128x128xf32>
    %65 = arith.addf %62, %64 : vector<128x128xf32>
    %66 = arith.truncf %65 : vector<128x128xf32> to vector<128x128xbf16>
    %67 = arith.truncf %0 : vector<256x64xf32> to vector<256x64xbf16>
    %c0_33 = arith.constant 0 : index
    %c0_34 = arith.constant 0 : index
    %68 = vector.load %arg3[%c0_33, %c0_34] : memref<64x32xbf16, #tpu.memory_space<vmem>>, vector<64x32xbf16>
    %cst_35 = arith.constant dense<0.000000e+00> : vector<256x32xf32>
    %69 = tpu.matmul %67, %68, %cst_35 {dimension_numbers = #tpu.dot_dimension_numbers<[1], [0], [0], [1], [0, 0, 1, 1], [], []>} : vector<256x64xbf16>, vector<64x32xbf16>, vector<256x32xf32> -> vector<256x32xf32>
    %70 = vector.broadcast %6 : vector<1x32xf32> to vector<256x32xf32>
    %71 = arith.addf %69, %70 : vector<256x32xf32>
    %cst_36 = arith.constant 0.000000e+00 : f32
    %72 = vector.broadcast %cst_36 : f32 to vector<256x32xf32>
    %73 = arith.maximumf %71, %72 : vector<256x32xf32>
    %74 = arith.truncf %2 : vector<256x32xf32> to vector<256x32xbf16>
    %c0_37 = arith.constant 0 : index
    %c0_38 = arith.constant 0 : index
    %75 = vector.load %arg4[%c0_37, %c0_38] : memref<32x64xbf16, #tpu.memory_space<vmem>>, vector<32x64xbf16>
    %cst_39 = arith.constant dense<0.000000e+00> : vector<256x64xf32>
    %76 = tpu.matmul %74, %75, %cst_39 {dimension_numbers = #tpu.dot_dimension_numbers<[1], [0], [0], [1], [0, 0, 1, 1], [], []>} : vector<256x32xbf16>, vector<32x64xbf16>, vector<256x64xf32> -> vector<256x64xf32>
    %77 = vector.broadcast %7 : vector<1x64xf32> to vector<256x64xf32>
    %78 = arith.addf %76, %77 : vector<256x64xf32>
    %79 = arith.truncf %73 : vector<256x32xf32> to vector<256x32xbf16>
    %c0_40 = arith.constant 0 : index
    %c0_41 = arith.constant 0 : index
    %80 = vector.load %arg5[%c0_40, %c0_41] : memref<32x128xbf16, #tpu.memory_space<vmem>>, vector<32x128xbf16>
    %cst_42 = arith.constant dense<0.000000e+00> : vector<256x128xf32>
    %81 = tpu.matmul %79, %80, %cst_42 {dimension_numbers = #tpu.dot_dimension_numbers<[1], [0], [0], [1], [0, 0, 1, 1], [], []>} : vector<256x32xbf16>, vector<32x128xbf16>, vector<256x128xf32> -> vector<256x128xf32>
    %82 = vector.broadcast %8 : vector<1x128xf32> to vector<256x128xf32>
    %83 = arith.addf %81, %82 : vector<256x128xf32>
    %84 = arith.truncf %83 : vector<256x128xf32> to vector<256x128xbf16>
    %c0_43 = arith.constant 0 : index
    %c0_44 = arith.constant 0 : index
    %85 = vector.load %arg6[%c0_43, %c0_44] : memref<128x64xbf16, #tpu.memory_space<vmem>>, vector<128x64xbf16>
    %cst_45 = arith.constant dense<0.000000e+00> : vector<256x64xf32>
    %86 = tpu.matmul %84, %85, %cst_45 {dimension_numbers = #tpu.dot_dimension_numbers<[1], [0], [0], [1], [0, 0, 1, 1], [], []>} : vector<256x128xbf16>, vector<128x64xbf16>, vector<256x64xf32> -> vector<256x64xf32>
    %c0_46 = arith.constant 0 : index
    %c0_47 = arith.constant 0 : index
    %87 = vector.load %arg7[%c0_46, %c0_47] : memref<64x64xbf16, #tpu.memory_space<vmem>>, vector<64x64xbf16>
    %cst_48 = arith.constant dense<0.000000e+00> : vector<256x64xf32>
    %88 = tpu.matmul %67, %87, %cst_48 {dimension_numbers = #tpu.dot_dimension_numbers<[1], [0], [0], [1], [0, 0, 1, 1], [], []>} : vector<256x64xbf16>, vector<64x64xbf16>, vector<256x64xf32> -> vector<256x64xf32>
    %89 = arith.addf %86, %88 : vector<256x64xf32>
    %90 = vector.broadcast %9 : vector<1x64xf32> to vector<256x64xf32>
    %91 = arith.addf %89, %90 : vector<256x64xf32>
    %cst_49 = arith.constant 0.000000e+00 : f32
    %92 = vector.broadcast %cst_49 : f32 to vector<256x64xf32>
    %93 = arith.maximumf %91, %92 : vector<256x64xf32>
    %94 = arith.truncf %93 : vector<256x64xf32> to vector<256x64xbf16>
    %c0_50 = arith.constant 0 : index
    %c0_51 = arith.constant 0 : index
    %95 = vector.load %arg8[%c0_50, %c0_51] : memref<64x32xbf16, #tpu.memory_space<vmem>>, vector<64x32xbf16>
    %cst_52 = arith.constant dense<0.000000e+00> : vector<256x32xf32>
    %96 = tpu.matmul %94, %95, %cst_52 {dimension_numbers = #tpu.dot_dimension_numbers<[1], [0], [0], [1], [0, 0, 1, 1], [], []>} : vector<256x64xbf16>, vector<64x32xbf16>, vector<256x32xf32> -> vector<256x32xf32>
    %97 = arith.truncf %96 : vector<256x32xf32> to vector<256x32xbf16>
    %98 = vector.extract_strided_slice %97 {offsets = [0, 0], sizes = [128, 32], strides = [1, 1]} : vector<256x32xbf16> to vector<128x32xbf16>
    %cst_53 = arith.constant dense<0.000000e+00> : vector<128x32xf32>
    %99 = tpu.matmul %46, %98, %cst_53 {dimension_numbers = #tpu.dot_dimension_numbers<[1], [0], [0], [1], [0, 0, 1, 1], [], []>} : vector<128x128xbf16>, vector<128x32xbf16>, vector<128x32xf32> -> vector<128x32xf32>
    %100 = vector.extract_strided_slice %97 {offsets = [128, 0], sizes = [128, 32], strides = [1, 1]} : vector<256x32xbf16> to vector<128x32xbf16>
    %cst_54 = arith.constant dense<0.000000e+00> : vector<128x32xf32>
    %101 = tpu.matmul %66, %100, %cst_54 {dimension_numbers = #tpu.dot_dimension_numbers<[1], [0], [0], [1], [0, 0, 1, 1], [], []>} : vector<128x128xbf16>, vector<128x32xbf16>, vector<128x32xf32> -> vector<128x32xf32>
    %102 = tpu.concatenate %99, %101 in 0 : vector<128x32xf32>, vector<128x32xf32> -> vector<256x32xf32>
    %103 = vector.broadcast %10 : vector<1x32xf32> to vector<256x32xf32>
    %104 = arith.addf %102, %103 : vector<256x32xf32>
    %cst_55 = arith.constant 0.000000e+00 : f32
    %105 = vector.broadcast %cst_55 : f32 to vector<256x32xf32>
    %106 = arith.cmpf oge, %104, %105 : vector<256x32xf32>
    %cst_56 = arith.constant 0.00999999977 : f32
    %107 = vector.broadcast %cst_56 : f32 to vector<256x32xf32>
    %108 = arith.mulf %107, %104 : vector<256x32xf32>
    %109 = arith.select %106, %104, %108 : vector<256x32xi1>, vector<256x32xf32>
    %110 = arith.truncf %109 : vector<256x32xf32> to vector<256x32xbf16>
    %c0_57 = arith.constant 0 : index
    %c0_58 = arith.constant 0 : index
    %111 = vector.load %arg9[%c0_57, %c0_58] : memref<32x32xbf16, #tpu.memory_space<vmem>>, vector<32x32xbf16>
    %cst_59 = arith.constant dense<0.000000e+00> : vector<256x32xf32>
    %112 = tpu.matmul %110, %111, %cst_59 {dimension_numbers = #tpu.dot_dimension_numbers<[1], [0], [0], [1], [0, 0, 1, 1], [], []>} : vector<256x32xbf16>, vector<32x32xbf16>, vector<256x32xf32> -> vector<256x32xf32>
    %113 = arith.truncf %112 : vector<256x32xf32> to vector<256x32xbf16>
    %114 = vector.extract_strided_slice %113 {offsets = [0, 0], sizes = [128, 32], strides = [1, 1]} : vector<256x32xbf16> to vector<128x32xbf16>
    %cst_60 = arith.constant dense<0.000000e+00> : vector<128x32xf32>
    %115 = tpu.matmul %46, %114, %cst_60 {dimension_numbers = #tpu.dot_dimension_numbers<[1], [0], [0], [1], [0, 0, 1, 1], [], []>} : vector<128x128xbf16>, vector<128x32xbf16>, vector<128x32xf32> -> vector<128x32xf32>
    %116 = vector.extract_strided_slice %113 {offsets = [128, 0], sizes = [128, 32], strides = [1, 1]} : vector<256x32xbf16> to vector<128x32xbf16>
    %cst_61 = arith.constant dense<0.000000e+00> : vector<128x32xf32>
    %117 = tpu.matmul %66, %116, %cst_61 {dimension_numbers = #tpu.dot_dimension_numbers<[1], [0], [0], [1], [0, 0, 1, 1], [], []>} : vector<128x128xbf16>, vector<128x32xbf16>, vector<128x32xf32> -> vector<128x32xf32>
    %118 = tpu.concatenate %115, %117 in 0 : vector<128x32xf32>, vector<128x32xf32> -> vector<256x32xf32>
    %119 = vector.broadcast %11 : vector<1x32xf32> to vector<256x32xf32>
    %120 = arith.addf %118, %119 : vector<256x32xf32>
    %121 = arith.truncf %120 : vector<256x32xf32> to vector<256x32xbf16>
    %c0_62 = arith.constant 0 : index
    %c0_63 = arith.constant 0 : index
    %122 = vector.load %arg10[%c0_62, %c0_63] : memref<32x128xbf16, #tpu.memory_space<vmem>>, vector<32x128xbf16>
    %cst_64 = arith.constant dense<0.000000e+00> : vector<256x128xf32>
    %123 = tpu.matmul %121, %122, %cst_64 {dimension_numbers = #tpu.dot_dimension_numbers<[1], [0], [0], [1], [0, 0, 1, 1], [], []>} : vector<256x32xbf16>, vector<32x128xbf16>, vector<256x128xf32> -> vector<256x128xf32>
    %124 = arith.truncf %78 : vector<256x64xf32> to vector<256x64xbf16>
    %c0_65 = arith.constant 0 : index
    %c0_66 = arith.constant 0 : index
    %125 = vector.load %arg11[%c0_65, %c0_66] : memref<64x128xbf16, #tpu.memory_space<vmem>>, vector<64x128xbf16>
    %cst_67 = arith.constant dense<0.000000e+00> : vector<256x128xf32>
    %126 = tpu.matmul %124, %125, %cst_67 {dimension_numbers = #tpu.dot_dimension_numbers<[1], [0], [0], [1], [0, 0, 1, 1], [], []>} : vector<256x64xbf16>, vector<64x128xbf16>, vector<256x128xf32> -> vector<256x128xf32>
    %127 = arith.addf %123, %126 : vector<256x128xf32>
    %128 = vector.broadcast %12 : vector<1x128xf32> to vector<256x128xf32>
    %129 = arith.addf %127, %128 : vector<256x128xf32>
    %130 = tpu.iota {dimensions = array<i32: 1>} : vector<256x128xi32>
    %c8_i32 = arith.constant 8 : i32
    %131 = vector.broadcast %c8_i32 : i32 to vector<256x128xi32>
    %132 = arith.cmpi slt, %130, %131 : vector<256x128xi32>
    %cst_68 = arith.constant -1.000000e+30 : f32
    %133 = vector.broadcast %cst_68 : f32 to vector<256x128xf32>
    %134 = arith.select %132, %129, %133 : vector<256x128xi1>, vector<256x128xf32>
    %cst_69 = arith.constant dense<0xFF800000> : vector<256xf32>
    %135 = vector.multi_reduction <maximumf>, %134, %cst_69 [1] : vector<256x128xf32> to vector<256xf32>
    %136 = vector.shape_cast %135 : vector<256xf32> to vector<256x1xf32>
    %137 = vector.broadcast %136 : vector<256x1xf32> to vector<256x128xf32>
    %138 = arith.subf %134, %137 : vector<256x128xf32>
    %139 = math.exp %138 : vector<256x128xf32>
    %cst_70 = arith.constant dense<0.000000e+00> : vector<256xf32>
    %140 = vector.multi_reduction <add>, %139, %cst_70 [1] : vector<256x128xf32> to vector<256xf32>
    %141 = vector.shape_cast %140 : vector<256xf32> to vector<256x1xf32>
    %142 = math.log %141 : vector<256x1xf32>
    %143 = vector.broadcast %142 : vector<256x1xf32> to vector<256x128xf32>
    %144 = arith.subf %138, %143 : vector<256x128xf32>
    %c0_71 = arith.constant 0 : index
    %c0_72 = arith.constant 0 : index
    %145 = vector.load %arg13[%c0_71, %c0_72] : memref<256x128xf32, #tpu.memory_space<vmem>>, vector<256x128xf32>
    tpu.vector_store %arg13[%c0_71, %c0_72], %144 {strides = array<i32>} : memref<256x128xf32, #tpu.memory_space<vmem>>, vector<256x128xf32>,
    return
  }
  func.func @transform_0(%arg0: i32) -> (i32, i32) {
    %c0_i32 = arith.constant 0 : i32
    %c0_i32_0 = arith.constant 0 : i32
    return %arg0, %c0_i32 : i32, i32
  }
  func.func @transform_1(%arg0: i32) -> (i32, i32, i32) {
    %c0_i32 = arith.constant 0 : i32
    %c0_i32_0 = arith.constant 0 : i32
    %c0_i32_1 = arith.constant 0 : i32
    return %arg0, %c0_i32, %c0_i32_0 : i32, i32, i32
  }
  func.func @transform_2(%arg0: i32) -> (i32, i32) {
    %c0_i32 = arith.constant 0 : i32
    %c0_i32_0 = arith.constant 0 : i32
    %c0_i32_1 = arith.constant 0 : i32
    return %c0_i32, %c0_i32_0 : i32, i32
  }
  func.func @transform_3(%arg0: i32) -> (i32, i32) {
    %c0_i32 = arith.constant 0 : i32
    %c0_i32_0 = arith.constant 0 : i32
    %c0_i32_1 = arith.constant 0 : i32
    return %c0_i32, %c0_i32_0 : i32, i32
  }
  func.func @transform_4(%arg0: i32) -> (i32, i32) {
    %c0_i32 = arith.constant 0 : i32
    %c0_i32_0 = arith.constant 0 : i32
    %c0_i32_1 = arith.constant 0 : i32
    return %c0_i32, %c0_i32_0 : i32, i32
  }
  func.func @transform_5(%arg0: i32) -> (i32, i32) {
    %c0_i32 = arith.constant 0 : i32
    %c0_i32_0 = arith.constant 0 : i32
    %c0_i32_1 = arith.constant 0 : i32
    return %c0_i32, %c0_i32_0 : i32, i32
  }
  func.func @transform_6(%arg0: i32) -> (i32, i32) {
    %c0_i32 = arith.constant 0 : i32
    %c0_i32_0 = arith.constant 0 : i32
    %c0_i32_1 = arith.constant 0 : i32
    return %c0_i32, %c0_i32_0 : i32, i32
  }
  func.func @transform_7(%arg0: i32) -> (i32, i32) {
    %c0_i32 = arith.constant 0 : i32
    %c0_i32_0 = arith.constant 0 : i32
    %c0_i32_1 = arith.constant 0 : i32
    return %c0_i32, %c0_i32_0 : i32, i32
  }
  func.func @transform_8(%arg0: i32) -> (i32, i32) {
    %c0_i32 = arith.constant 0 : i32
    %c0_i32_0 = arith.constant 0 : i32
    %c0_i32_1 = arith.constant 0 : i32
    return %c0_i32, %c0_i32_0 : i32, i32
  }
  func.func @transform_9(%arg0: i32) -> (i32, i32) {
    %c0_i32 = arith.constant 0 : i32
    %c0_i32_0 = arith.constant 0 : i32
    %c0_i32_1 = arith.constant 0 : i32
    return %c0_i32, %c0_i32_0 : i32, i32
  }
  func.func @transform_10(%arg0: i32) -> (i32, i32) {
    %c0_i32 = arith.constant 0 : i32
    %c0_i32_0 = arith.constant 0 : i32
    %c0_i32_1 = arith.constant 0 : i32
    return %c0_i32, %c0_i32_0 : i32, i32
  }
  func.func @transform_11(%arg0: i32) -> (i32, i32) {
    %c0_i32 = arith.constant 0 : i32
    %c0_i32_0 = arith.constant 0 : i32
    %c0_i32_1 = arith.constant 0 : i32
    return %c0_i32, %c0_i32_0 : i32, i32
  }
  func.func @transform_12(%arg0: i32) -> (i32, i32) {
    %c0_i32 = arith.constant 0 : i32
    %c0_i32_0 = arith.constant 0 : i32
    return %arg0, %c0_i32 : i32, i32
  }
}

</mosaic_0001>

<bundles_post_ra>
// kernel: deeper_gcn_forward.1
= control target key start
LH: loop header
LB: loop body
LE: loop exit
PB: predicated region body
PF: predicated region fallthrough
CT: control target
= control target key end

     0   :  { %s5778_s21 = smov 0   ;;  %s8764_s0 = inlined_call_operand.vmem [shape: f32[512,64], index: 0, kind: input, shape index: {}]   ;;  %s8765_s1 = inlined_call_operand.vmem [shape: f32[4,128,128], index: 1, kind: input, shape index: {}]   ;;  %s8766_s2 = inlined_call_operand.vmem [shape: bf16[64,32], index: 2, kind: input, shape index: {}]   ;;  %s8767_s3 = inlined_call_operand.vmem [shape: bf16[32,64], index: 3, kind: input, shape index: {}]   ;;  %s8768_s4 = inlined_call_operand.vmem [shape: bf16[32,128], index: 4, kind: input, shape index: {}]   ;;  %s8769_s5 = inlined_call_operand.vmem [shape: bf16[128,64], index: 5, kind: input, shape index: {}]   ;;  %s8770_s6 = inlined_call_operand.vmem [shape: bf16[64,64], index: 6, kind: input, shape index: {}]   ;;  %s8771_s7 = inlined_call_operand.vmem [shape: bf16[64,32], index: 7, kind: input, shape index: {}]   ;;  %s8772_s8 = inlined_call_operand.vmem [shape: bf16[32,32], index: 8, kind: input, shape index: {}]   ;;  %s8773_s9 = inlined_call_operand.vmem [shape: bf16[32,128], index: 9, kind: input, shape index: {}]   ;;  %s8774_s10 = inlined_call_operand.vmem [shape: bf16[64,128], index: 10, kind: input, shape index: {}]   ;;  %s8775_s11 = inlined_call_operand.vmem [shape: f32[10,128], index: 11, kind: input, shape index: {}]   ;;  %s8776_s12 = inlined_call_operand.vmem [shape: f32[512,128], index: 12, kind: output, shape index: {}]  }
   0x1 LB: > { %s5004_s22 = sadd.s32 4294967295, %s5709_s21   ;;  %p5008_p0 = scmp.ge.s32.totalorder %s5709_s21, 1  ;;  %s5709_s21 = sphi %s5778_s21, %s22_s21  }
   0x2   : > { %p375_p1 = scmp.lt.s32.totalorder %s5709_s21, 3 }
   0x4   : > { %p376_p2 = pnand %p5008_p0, %p375_p1 }
   0x6   : > { %379 = sbr.rel (%p376_p2) target bundleno = 2728 (0xaa8), region = 68 }
   0xb   : > { %v5409_v0 = vld [vmem:[%s8775_s11] ss:$0 sm:$0xff]  ;;  %s5711_s25 = smov 32   ;;  %v5411_v1 = vld [vmem:[%s8775_s11 + $0x2] ss:$0 sm:$0xff]  ;;  %s5009_s30 = sshll.u32 %s5004_s22, 5 }
   0xc   : > { %487 = vrot.lane.b32.xlu0 %v5409_v0, %s5711_s25  ;;  %561 = vrot.lane.b32.xlu1 %v5411_v1, %s5711_s25  ;;  %v5410_v2 = vld [vmem:[%s8775_s11 + $0x1] ss:$0 sm:$0xff]  ;;  %p424_p3 = scmp.lt.s32.totalorder %s5009_s30, 63  ;;  %s5712_s17 = smov 96   ;;  %vm756_vm0 = vcmask 261120  }
   0xd   : > { %s5011_s19 = sshll.u32 %s5004_s22, 1 }
   0xe   : > { %s8954_s30 = smov (!%p424_p3, %s5009_s30), 63  ;;  %p430_p4 = scmp.lt.s32.totalorder %s5011_s19, 3 }
   0xf   : > { %s5010_s13 = sshll.u32 %s8954_s30, 3 }
  0x10   : > { %s5807_s16 = scalar_lea.vmem %s8764_s0, %s5010_s13  ;;  %s8956_s19 = smov (!%p430_p4, %s5011_s19), 3 }
  0x11   : > { %v458_v4 = vld [vmem:[%s5807_s16 + $0x78] sm:$0xff]  ;;  %v457_v5 = vld [vmem:[%s5807_s16 + $0x70] sm:$0xff]  ;;  %v455_v6 = vld [vmem:[%s5807_s16 + $0x60] sm:$0xff]  ;;  %s5354_s22 = sshll.u32 %s8956_s19, 7  ;;  %s8634_s18 = scalar_lea.vmem %s8776_s12, %s5010_s13 }
  0x12   : > { %v456_v10 = vld [vmem:[%s5807_s16 + $0x68] sm:$0xff]  ;;  %v454_v13 = vld [vmem:[%s5807_s16 + $0x58] sm:$0xff]  ;;  %v453_v30 = vld [vmem:[%s5807_s16 + $0x50] sm:$0xff]  ;;  %s7321_s24 = scalar_lea.vmem %s8765_s1, %s5354_s22 }
  0x13   : > { %v452_v17 = vld [vmem:[%s5807_s16 + $0x48] sm:$0xff]  ;;  %v451_v31 = vld [vmem:[%s5807_s16 + $0x40] sm:$0xff]  ;;  %v449_v34 = vld [vmem:[%s5807_s16 + $0x30] sm:$0xff] }
  0x14   : > { %524 = vrot.lane.b32.xlu0 %v5410_v2, %s5711_s25  ;;  %v450_v45 = vld [vmem:[%s5807_s16 + $0x38] sm:$0xff]  ;;  %v448_v46 = vld [vmem:[%s5807_s16 + $0x28] sm:$0xff]  ;;  %v447_v49 = vld [vmem:[%s5807_s16 + $0x20] sm:$0xff] }
  0x15   : > { %v445_v60 = vld [vmem:[%s5807_s16 + $0x10] sm:$0xff]  ;;  %v444_v61 = vld [vmem:[%s5807_s16 + $0x8] sm:$0xff]  ;;  %v446_v0 = vld [vmem:[%s5807_s16 + $0x18] sm:$0xff] }
  0x7e   : > { %v5800_v3 = vpop.permute.xlu0 %487  ;;  %v5818_v12 = vpop.permute.xlu1 %561 }
  0x7f   : > { %v505_v7 = vmul.f32 %v5800_v3, %v458_v4  ;;  %v504_v8 = vmul.f32 %v5800_v3, %v457_v5  ;;  %v502_v9 = vmul.f32 %v5800_v3, %v455_v6  ;;  %v503_v18 = vmul.f32 %v5800_v3, %v456_v10 }
  0x80   : > { %v501_v22 = vmul.f32 %v5800_v3, %v454_v13  ;;  %v499_v24 = vmul.f32 %v5800_v3, %v452_v17  ;;  %v500_v36 = vmul.f32 %v5800_v3, %v453_v30  ;;  %v498_v37 = vmul.f32 %v5800_v3, %v451_v31 }
  0x81   : > { %v496_v38 = vmul.f32 %v5800_v3, %v449_v34  ;;  %v497_v51 = vmul.f32 %v5800_v3, %v450_v45  ;;  %v495_v52 = vmul.f32 %v5800_v3, %v448_v46  ;;  %v494_v53 = vmul.f32 %v5800_v3, %v447_v49 }
  0x82   : > { %v492_v2 = vmul.f32 %v5800_v3, %v445_v60  ;;  %v491_v4 = vmul.f32 %v5800_v3, %v444_v61  ;;  %v493_v5 = vmul.f32 %v5800_v3, %v446_v0 }
  0x86   : > { %v5816_v11 = vpop.permute.xlu0 %524 }
  0x87   : > { %v542_v14 = vadd.f32 %v5816_v11, %v505_v7  ;;  %v541_v15 = vadd.f32 %v5816_v11, %v504_v8  ;;  %v539_v16 = vadd.f32 %v5816_v11, %v502_v9  ;;  %v540_v23 = vadd.f32 %v5816_v11, %v503_v18 }
  0x88   : > { %v538_v28 = vadd.f32 %v5816_v11, %v501_v22  ;;  %v536_v29 = vadd.f32 %v5816_v11, %v499_v24  ;;  %v537_v41 = vadd.f32 %v5816_v11, %v500_v36  ;;  %v535_v42 = vadd.f32 %v5816_v11, %v498_v37 }
  0x89   : > { %v5827_v19 = vmul.f32 %v5818_v12, %v542_v14  ;;  %v5830_v20 = vmul.f32 %v5818_v12, %v541_v15  ;;  %v5833_v21 = vmul.f32 %v5818_v12, %v539_v16  ;;  %v5852_v32 = vmul.f32 %v5818_v12, %v540_v23  ;;  %v443_v16 = vld [vmem:[%s5807_s16] sm:$0xff] }
  0x8a   : > { %v5855_v33 = vmul.f32 %v5818_v12, %v538_v28  ;;  %v5859_v35 = vmul.f32 %v5818_v12, %v536_v29  ;;  %v533_v44 = vadd.f32 %v5816_v11, %v496_v38  ;;  %v5879_v47 = vmul.f32 %v5818_v12, %v537_v41 }
  0x8b   : > { %v611_v25 = vmul.f32 %v5827_v19, %v5827_v19  ;;  %v610_v26 = vmul.f32 %v5830_v20, %v5830_v20  ;;  %v608_v27 = vmul.f32 %v5833_v21, %v5833_v21  ;;  %v609_v39 = vmul.f32 %v5852_v32, %v5852_v32 }
  0x8c   : > { %v607_v40 = vmul.f32 %v5855_v33, %v5855_v33  ;;  %v605_v43 = vmul.f32 %v5859_v35, %v5859_v35  ;;  %v5882_v48 = vmul.f32 %v5818_v12, %v535_v42  ;;  %v5886_v50 = vmul.f32 %v5818_v12, %v533_v44 }
  0x8d   : > { %690 = vrot.lane.b32.xlu1 %v611_v25, %s5712_s17  ;;  %688 = vrot.lane.b32.xlu2 %v610_v26, %s5712_s17  ;;  %v606_v54 = vmul.f32 %v5879_v47, %v5879_v47  ;;  %v534_v56 = vadd.f32 %v5816_v11, %v497_v51  ;;  %v532_v57 = vadd.f32 %v5816_v11, %v495_v52 }
  0x8e   : > { %684 = vrot.lane.b32.xlu0 %v608_v27, %s5712_s17  ;;  %v604_v55 = vmul.f32 %v5882_v48, %v5882_v48  ;;  %v602_v58 = vmul.f32 %v5886_v50, %v5886_v50  ;;  %v531_v59 = vadd.f32 %v5816_v11, %v494_v53  ;;  %v529_v8 = vadd.f32 %v5816_v11, %v492_v2 }
  0x8f   : > { %v5906_v62 = vmul.f32 %v5818_v12, %v534_v56  ;;  %v5909_v63 = vmul.f32 %v5818_v12, %v532_v57  ;;  %v528_v9 = vadd.f32 %v5816_v11, %v491_v4  ;;  %v530_v13 = vadd.f32 %v5816_v11, %v493_v5 }
  0x90   : > { %v5913_v1 = vmul.f32 %v5818_v12, %v531_v59  ;;  %v5931_v14 = vmul.f32 %v5818_v12, %v529_v8  ;;  %v490_v18 = vmul.f32 %v5800_v3, %v443_v16 }
  0x91   : > { %v603_v6 = vmul.f32 %v5906_v62, %v5906_v62  ;;  %v601_v7 = vmul.f32 %v5909_v63, %v5909_v63  ;;  %v5934_v15 = vmul.f32 %v5818_v12, %v528_v9  ;;  %v5938_v17 = vmul.f32 %v5818_v12, %v530_v13 }
  0x92   : > { %v600_v10 = vmul.f32 %v5913_v1, %v5913_v1  ;;  %v598_v22 = vmul.f32 %v5931_v14, %v5931_v14  ;;  %v527_v25 = vadd.f32 %v5816_v11, %v490_v18 }
  0x93   : > { %v597_v23 = vmul.f32 %v5934_v15, %v5934_v15  ;;  %v599_v24 = vmul.f32 %v5938_v17, %v5938_v17 }
  0x94   : > { %v5952_v26 = vmul.f32 %v5818_v12, %v527_v25 }
  0x95   : > { %686 = vrot.lane.b32.xlu2 %v609_v39, %s5712_s17  ;;  %682 = vrot.lane.b32.xlu1 %v607_v40, %s5712_s17 }
  0x96   : > { %678 = vrot.lane.b32.xlu0 %v605_v43, %s5712_s17  ;;  %v596_v27 = vmul.f32 %v5952_v26, %v5952_v26 }
  0x9d   : > { %680 = vrot.lane.b32.xlu2 %v606_v54, %s5712_s17  ;;  %676 = vrot.lane.b32.xlu1 %v604_v55, %s5712_s17 }
  0x9e   : > { %672 = vrot.lane.b32.xlu0 %v602_v58, %s5712_s17 }
  0xa5   : > { %674 = vrot.lane.b32.xlu2 %v603_v6, %s5712_s17  ;;  %670 = vrot.lane.b32.xlu1 %v601_v7, %s5712_s17 }
  0xa6   : > { %668 = vrot.lane.b32.xlu0 %v600_v10, %s5712_s17 }
  0xad   : > { %664 = vrot.lane.b32.xlu2 %v598_v22, %s5712_s17  ;;  %662 = vrot.lane.b32.xlu1 %v597_v23, %s5712_s17 }
  0xae   : > { %666 = vrot.lane.b32.xlu0 %v599_v24, %s5712_s17 }
  0xb6   : > { %660 = vrot.lane.b32.xlu0 %v596_v27, %s5712_s17 }
  0xe7   : > { %v689_v28 = vpop.permute.xlu2 %688 }
  0xe8   : > { %v799_v29 = vsel %vm756_vm0, %v689_v28, 0.0 }
  0xe9   : > { %800 = vadd.xlane.f32.xlu1 %v799_v29 }
  0xef   : > { %v687_v30 = vpop.permute.xlu2 %686 }
  0xf0   : > { %v796_v31 = vsel %vm756_vm0, %v687_v30, 0.0 }
  0xf1   : > { %797 = vadd.xlane.f32.xlu0 %v796_v31 }
  0xf7   : > { %v681_v39 = vpop.permute.xlu2 %680 }
  0xf8   : > { %v787_v43 = vsel %vm756_vm0, %v681_v39, 0.0 }
  0xff   : > { %v691_v34 = vpop.permute.xlu1 %690  ;;  %v675_v51 = vpop.permute.xlu2 %674 }
 0x100   : > { %v685_v36 = vpop.permute.xlu0 %684  ;;  %v802_v37 = vsel %vm756_vm0, %v691_v34, 0.0  ;;  %v778_v54 = vsel %vm756_vm0, %v675_v51, 0.0 }
 0x101   : > { %803 = vadd.xlane.f32.xlu2 %v802_v37  ;;  %v793_v38 = vsel %vm756_vm0, %v685_v36, 0.0 }
 0x102   : > { %794 = vadd.xlane.f32.xlu1 %v793_v38 }
 0x107   : > { %v683_v40 = vpop.permute.xlu1 %682  ;;  %v665_v57 = vpop.permute.xlu2 %664 }
 0x108   : > { %v679_v41 = vpop.permute.xlu0 %678  ;;  %v790_v42 = vsel %vm756_vm0, %v683_v40, 0.0  ;;  %v763_v60 = vsel %vm756_vm0, %v665_v57, 0.0 }
 0x109   : > { %791 = vadd.xlane.f32.xlu2 %v790_v42  ;;  %v784_v44 = vsel %vm756_vm0, %v679_v41, 0.0 }
 0x10a   : > { %788 = vadd.xlane.f32.xlu1 %v787_v43  ;;  %785 = vadd.xlane.f32.xlu0 %v784_v44 }
 0x10f   : > { %v677_v45 = vpop.permute.xlu1 %676 }
 0x110   : > { %v673_v46 = vpop.permute.xlu0 %672  ;;  %v781_v49 = vsel %vm756_vm0, %v677_v45, 0.0 }
 0x111   : > { %782 = vadd.xlane.f32.xlu2 %v781_v49  ;;  %v775_v59 = vsel %vm756_vm0, %v673_v46, 0.0 }
 0x117   : > { %v671_v52 = vpop.permute.xlu1 %670 }
 0x118   : > { %v669_v53 = vpop.permute.xlu0 %668  ;;  %v772_v55 = vsel %vm756_vm0, %v671_v52, 0.0 }
 0x119   : > { %779 = vadd.xlane.f32.xlu2 %v778_v54  ;;  %773 = vadd.xlane.f32.xlu1 %v772_v55  ;;  %v769_v56 = vsel %vm756_vm0, %v669_v53, 0.0 }
 0x11a   : > { %770 = vadd.xlane.f32.xlu0 %v769_v56 }
 0x11f   : > { %v663_v58 = vpop.permute.xlu1 %662 }
 0x120   : > { %v760_v61 = vsel %vm756_vm0, %v663_v58, 0.0  ;;  %v667_v0 = vpop.permute.xlu0 %666 }
 0x121   : > { %776 = vadd.xlane.f32.xlu2 %v775_v59  ;;  %764 = vadd.xlane.f32.xlu1 %v763_v60  ;;  %v766_v2 = vsel %vm756_vm0, %v667_v0, 0.0 }
 0x122   : > { %761 = vadd.xlane.f32.xlu0 %v760_v61 }
 0x128   : > { %v661_v4 = vpop.permute.xlu0 %660 }
 0x129   : > { %767 = vadd.xlane.f32.xlu2 %v766_v2  ;;  %v757_v5 = vsel %vm756_vm0, %v661_v4, 0.0 }
 0x131   : > { %758 = vadd.xlane.f32.xlu2 %v757_v5 }
 0x15c   : > { %v801_v6 = vpop.xlane.xlu1 %800 }
 0x15d   : > { %v867_v7 = vadd.f32 1e-08, %v801_v6 }
 0x15f   : > { %5419 = vrsqrt.f32 %v867_v7  ;;  %vm1031_vm2 = vweird.f32 %v867_v7 }
 0x164   : > { %v798_v8 = vpop.xlane.xlu0 %797 }
 0x165   : > { %v5420_v9 = vpop.eup %5419  ;;  %v866_v10 = vadd.f32 1e-08, %v798_v8 }
 0x166   : > { %v1026_v13 = vmul.f32 %v5420_v9, %v867_v7  ;;  %vm1032_vm1 = vweird.f32 %v5420_v9 }
 0x167   : > { %5421 = vrsqrt.f32 %v866_v10  ;;  %vm1033_vm3 = vmor %vm1031_vm2, %vm1032_vm1  ;;  %vm1021_vm5 = vweird.f32 %v866_v10 }
 0x168   : > { %v1027_v16 = vmul.f32 %v5420_v9, %v1026_v13 }
 0x16a   : > { %v1028_v18 = vmul.f32 0.5, %v1027_v16 }
 0x16c   : > { %v1029_v22 = vsub.f32 1.5, %v1028_v18 }
 0x16d   : > { %v5422_v23 = vpop.eup %5421 }
 0x16e   : > { %v1016_v24 = vmul.f32 %v5422_v23, %v866_v10  ;;  %v1030_v25 = vmul.f32 %v5420_v9, %v1029_v22  ;;  %vm1022_vm4 = vweird.f32 %v5422_v23 }
 0x16f   : > { %vm1023_vm6 = vmor %vm1021_vm5, %vm1022_vm4 }
 0x170   : > { %v1017_v27 = vmul.f32 %v5422_v23, %v1016_v24  ;;  %v1034_v28 = vsel %vm1033_vm3, %v5420_v9, %v1030_v25 }
 0x171   : > { %v1219_v29 = vmul.f32 %v1034_v28, %v5830_v20 }
 0x172   : > { %v1018_v30 = vmul.f32 0.5, %v1017_v27 }
 0x173   : > { %1281 = vrot.lane.b32.xlu0 %v1219_v29, %s5712_s17 }
 0x174   : > { %v1019_v31 = vsub.f32 1.5, %v1018_v30  ;;  %v804_v34 = vpop.xlane.xlu2 %803 }
 0x175   : > { %v868_v36 = vadd.f32 1e-08, %v804_v34  ;;  %v795_v37 = vpop.xlane.xlu1 %794 }
 0x176   : > { %v865_v38 = vadd.f32 1e-08, %v795_v37  ;;  %v1020_v39 = vmul.f32 %v5422_v23, %v1019_v31 }
 0x177   : > { %5423 = vrsqrt.f32 %v868_v36  ;;  %vm1041_vm9 = vweird.f32 %v868_v36 }
 0x178   : > { %5425 = vrsqrt.f32 %v865_v38  ;;  %v1024_v40 = vsel %vm1023_vm6, %v5422_v23, %v1020_v39  ;;  %vm1011_vm10 = vweird.f32 %v865_v38 }
 0x179   : > { %v1218_v41 = vmul.f32 %v1024_v40, %v5852_v32 }
 0x17b   : > { %1279 = vrot.lane.b32.xlu2 %v1218_v41, %s5712_s17 }
 0x17c   : > { %v792_v20 = vpop.xlane.xlu2 %791 }
 0x17d   : > { %v5424_v42 = vpop.eup %5423  ;;  %v5977_v43 = vadd.f32 1e-08, %v792_v20  ;;  %v789_v44 = vpop.xlane.xlu1 %788 }
 0x17e   : > { %v786_v45 = vpop.xlane.xlu0 %785  ;;  %v5426_v46 = vpop.eup %5425  ;;  %v1036_v49 = vmul.f32 %v5424_v42, %v868_v36  ;;  %v5979_v51 = vadd.f32 1e-08, %v789_v44  ;;  %vm1042_vm7 = vweird.f32 %v5424_v42 }
 0x17f   : > { %v5981_v52 = vadd.f32 1e-08, %v786_v45  ;;  %v1006_v53 = vmul.f32 %v5426_v46, %v865_v38  ;;  %5427 = vrsqrt.f32 %v5977_v43  ;;  %vm1012_vm8 = vweird.f32 %v5426_v46  ;;  %vm1043_vm11 = vmor %vm1041_vm9, %vm1042_vm7 }
 0x180   : > { %v1037_v54 = vmul.f32 %v5424_v42, %v1036_v49  ;;  %5429 = vrsqrt.f32 %v5979_v51  ;;  %vm1013_vm12 = vmor %vm1011_vm10, %vm1012_vm8  ;;  %vm1001_vm13 = vweird.f32 %v5977_v43  ;;  %vm991_vm1 = vweird.f32 %v5979_v51 }
 0x181   : > { %v1007_v32 = vmul.f32 %v5426_v46, %v1006_v53  ;;  %5431 = vrsqrt.f32 %v5981_v52  ;;  %vm981_vm4 = vweird.f32 %v5981_v52 }
 0x182   : > { %v1038_v55 = vmul.f32 0.5, %v1037_v54 }
 0x183   : > { %v1008_v56 = vmul.f32 0.5, %v1007_v32 }
 0x184   : > { %v1039_v57 = vsub.f32 1.5, %v1038_v55  ;;  %v783_v58 = vpop.xlane.xlu2 %782 }
 0x185   : > { %v5428_v59 = vpop.eup %5427  ;;  %v1009_v60 = vsub.f32 1.5, %v1008_v56  ;;  %v5986_v61 = vadd.f32 1e-08, %v783_v58 }
 0x186   : > { %v5430_v0 = vpop.eup %5429  ;;  %v996_v2 = vmul.f32 %v5428_v59, %v5977_v43  ;;  %v1040_v4 = vmul.f32 %v5424_v42, %v1039_v57  ;;  %vm1002_vm14 = vweird.f32 %v5428_v59 }
 0x187   : > { %v5432_v5 = vpop.eup %5431  ;;  %v986_v6 = vmul.f32 %v5430_v0, %v5979_v51  ;;  %5433 = vrsqrt.f32 %v5986_v61  ;;  %v1010_v7 = vmul.f32 %v5426_v46, %v1009_v60  ;;  %vm992_vm15 = vweird.f32 %v5430_v0  ;;  %vm1003_vm2 = vmor %vm1001_vm13, %vm1002_vm14 }
 0x188   : > { %v997_v8 = vmul.f32 %v5428_v59, %v996_v2  ;;  %v976_v9 = vmul.f32 %v5432_v5, %v5981_v52  ;;  %v1044_v10 = vsel %vm1043_vm11, %v5424_v42, %v1040_v4  ;;  %vm982_vm3 = vweird.f32 %v5432_v5  ;;  %vm993_vm5 = vmor %vm991_vm1, %vm992_vm15 }
 0x189   : > { %v987_v13 = vmul.f32 %v5430_v0, %v986_v6  ;;  %v1220_v16 = vmul.f32 %v1044_v10, %v5827_v19  ;;  %v1014_v18 = vsel %vm1013_vm12, %v5426_v46, %v1010_v7  ;;  %vm983_vm6 = vmor %vm981_vm4, %vm982_vm3  ;;  %vm971_vm8 = vweird.f32 %v5986_v61 }
 0x18a   : > { %v998_v22 = vmul.f32 0.5, %v997_v8  ;;  %v977_v23 = vmul.f32 %v5432_v5, %v976_v9  ;;  %v1217_v24 = vmul.f32 %v1014_v18, %v5833_v21 }
 0x18b   : > { %v988_v25 = vmul.f32 0.5, %v987_v13  ;;  %1283 = vrot.lane.b32.xlu1 %v1220_v16, %s5712_s17 }
 0x18c   : > { %v999_v27 = vsub.f32 1.5, %v998_v22  ;;  %v978_v28 = vmul.f32 0.5, %v977_v23  ;;  %1277 = vrot.lane.b32.xlu0 %v1217_v24, %s5712_s17  ;;  %v780_v29 = vpop.xlane.xlu2 %779  ;;  %v774_v30 = vpop.xlane.xlu1 %773 }
 0x18d   : > { %v5434_v31 = vpop.eup %5433  ;;  %v989_v34 = vsub.f32 1.5, %v988_v25  ;;  %v5997_v19 = vadd.f32 1e-08, %v780_v29  ;;  %v5999_v36 = vadd.f32 1e-08, %v774_v30  ;;  %v771_v37 = vpop.xlane.xlu0 %770 }
 0x18e   : > { %v979_v21 = vsub.f32 1.5, %v978_v28  ;;  %v966_v38 = vmul.f32 %v5434_v31, %v5986_v61  ;;  %v6002_v39 = vadd.f32 1e-08, %v771_v37  ;;  %v1000_v40 = vmul.f32 %v5428_v59, %v999_v27 }
 0x18f   : > { %5435 = vrsqrt.f32 %v5997_v19  ;;  %v990_v41 = vmul.f32 %v5430_v0, %v989_v34  ;;  %vm972_vm7 = vweird.f32 %v5434_v31  ;;  %vm961_vm12 = vweird.f32 %v5997_v19 }
 0x190   : > { %v967_v20 = vmul.f32 %v5434_v31, %v966_v38  ;;  %5437 = vrsqrt.f32 %v5999_v36  ;;  %v1004_v42 = vsel %vm1003_vm2, %v5428_v59, %v1000_v40  ;;  %v980_v46 = vmul.f32 %v5432_v5, %v979_v21  ;;  %vm973_vm9 = vmor %vm971_vm8, %vm972_vm7 }
 0x191   : > { %5439 = vrsqrt.f32 %v6002_v39  ;;  %v1216_v44 = vmul.f32 %v1004_v42, %v5855_v33  ;;  %v994_v45 = vsel %vm993_vm5, %v5430_v0, %v990_v41  ;;  %vm941_vm13 = vweird.f32 %v5999_v36 }
 0x192   : > { %v968_v49 = vmul.f32 0.5, %v967_v20  ;;  %v1215_v51 = vmul.f32 %v994_v45, %v5879_v47  ;;  %v984_v43 = vsel %vm983_vm6, %v5432_v5, %v980_v46  ;;  %vm931_vm2 = vweird.f32 %v6002_v39 }
 0x193   : > { %1275 = vrot.lane.b32.xlu1 %v1216_v44, %s5712_s17  ;;  %v1214_v52 = vmul.f32 %v984_v43, %v5859_v35 }
 0x194   : > { %v969_v53 = vsub.f32 1.5, %v968_v49  ;;  %1273 = vrot.lane.b32.xlu2 %v1215_v51, %s5712_s17  ;;  %v777_v54 = vpop.xlane.xlu2 %776  ;;  %v765_v32 = vpop.xlane.xlu1 %764 }
 0x195   : > { %v5436_v55 = vpop.eup %5435  ;;  %v6016_v56 = vadd.f32 1e-08, %v777_v54  ;;  %v6018_v33 = vadd.f32 1e-08, %v765_v32  ;;  %v762_v57 = vpop.xlane.xlu0 %761  ;;  %1271 = vrot.lane.b32.xlu0 %v1214_v52, %s5712_s17 }
 0x196   : > { %v5438_v58 = vpop.eup %5437  ;;  %v956_v47 = vmul.f32 %v5436_v55, %v5997_v19  ;;  %v6022_v59 = vadd.f32 1e-08, %v762_v57  ;;  %v970_v60 = vmul.f32 %v5434_v31, %v969_v53  ;;  %vm962_vm10 = vweird.f32 %v5436_v55 }
 0x197   : > { %v6024_v0 = vpop.eup %5439  ;;  %v936_v35 = vmul.f32 %v5438_v58, %v5999_v36  ;;  %5441 = vrsqrt.f32 %v6016_v56  ;;  %vm942_vm11 = vweird.f32 %v5438_v58  ;;  %vm963_vm14 = vmor %vm961_vm12, %vm962_vm10  ;;  %vm951_vm4 = vweird.f32 %v6016_v56 }
 0x198   : > { %v957_v2 = vmul.f32 %v5436_v55, %v956_v47  ;;  %v926_v4 = vmul.f32 %v6024_v0, %v6002_v39  ;;  %5443 = vrsqrt.f32 %v6018_v33  ;;  %v974_v6 = vsel %vm973_vm9, %v5434_v31, %v970_v60  ;;  %vm943_vm15 = vmor %vm941_vm13, %vm942_vm11 }
 0x199   : > { %v937_v5 = vmul.f32 %v5438_v58, %v936_v35  ;;  %5445 = vrsqrt.f32 %v6022_v59  ;;  %v1213_v61 = vmul.f32 %v974_v6, %v5882_v48  ;;  %vm932_vm1 = vweird.f32 %v6024_v0 }
 0x19a   : > { %v958_v7 = vmul.f32 0.5, %v957_v2  ;;  %v927_v8 = vmul.f32 %v6024_v0, %v926_v4  ;;  %vm933_vm6 = vmor %vm931_vm2, %vm932_vm1  ;;  %vm911_vm7 = vweird.f32 %v6018_v33  ;;  %vm901_vm11 = vweird.f32 %v6022_v59 }
 0x19b   : > { %v938_v9 = vmul.f32 0.5, %v937_v5  ;;  %1269 = vrot.lane.b32.xlu1 %v1213_v61, %s5712_s17 }
 0x19c   : > { %v959_v10 = vsub.f32 1.5, %v958_v7  ;;  %v928_v13 = vmul.f32 0.5, %v927_v8  ;;  %v768_v16 = vpop.xlane.xlu2 %767 }
 0x19d   : > { %v5442_v18 = vpop.eup %5441  ;;  %v939_v22 = vsub.f32 1.5, %v938_v9  ;;  %v6036_v23 = vadd.f32 1e-08, %v768_v16 }
 0x19e   : > { %v5444_v24 = vpop.eup %5443  ;;  %v929_v25 = vsub.f32 1.5, %v928_v13  ;;  %v946_v27 = vmul.f32 %v5442_v18, %v6016_v56  ;;  %v960_v28 = vmul.f32 %v5436_v55, %v959_v10  ;;  %vm952_vm3 = vweird.f32 %v5442_v18 }
 0x19f   : > { %v6040_v48 = vpop.eup %5445  ;;  %v906_v29 = vmul.f32 %v5444_v24, %v6018_v33  ;;  %5447 = vrsqrt.f32 %v6036_v23  ;;  %v940_v30 = vmul.f32 %v5438_v58, %v939_v22  ;;  %vm912_vm5 = vweird.f32 %v5444_v24  ;;  %vm953_vm8 = vmor %vm951_vm4, %vm952_vm3 }
 0x1a0   : > { %v947_v31 = vmul.f32 %v5442_v18, %v946_v27  ;;  %v896_v34 = vmul.f32 %v6040_v48, %v6022_v59  ;;  %v964_v19 = vsel %vm963_vm14, %v5436_v55, %v960_v28  ;;  %v930_v20 = vmul.f32 %v6024_v0, %v929_v25  ;;  %vm913_vm9 = vmor %vm911_vm7, %vm912_vm5  ;;  %v472_v25 = vld [vmem:[%s5807_s16 + $0xe8] sm:$0xff] }
 0x1a1   : > { %v907_v37 = vmul.f32 %v5444_v24, %v906_v29  ;;  %v944_v21 = vsel %vm943_vm15, %v5438_v58, %v940_v30  ;;  %v1212_v38 = vmul.f32 %v964_v19, %v5906_v62  ;;  %v474_v62 = vld [vmem:[%s5807_s16 + $0xf8] sm:$0xff]  ;;  %vm902_vm10 = vweird.f32 %v6040_v48  ;;  %v468_v27 = vld [vmem:[%s5807_s16 + $0xc8] sm:$0xff] }
 0x1a2   : > { %v948_v36 = vmul.f32 0.5, %v947_v31  ;;  %v897_v40 = vmul.f32 %v6040_v48, %v896_v34  ;;  %v1210_v41 = vmul.f32 %v944_v21, %v5909_v63  ;;  %v934_v52 = vsel %vm933_vm6, %v6024_v0, %v930_v20  ;;  %vm903_vm13 = vmor %vm901_vm11, %vm902_vm10 }
 0x1a3   : > { %v908_v42 = vmul.f32 0.5, %v907_v37  ;;  %1267 = vrot.lane.b32.xlu2 %v1212_v38, %s5712_s17  ;;  %v521_v32 = vmul.f32 %v5800_v3, %v474_v62  ;;  %v1209_v47 = vmul.f32 %v934_v52, %v5913_v1  ;;  %vm921_vm14 = vweird.f32 %v6036_v23 }
 0x1a4   : > { %v949_v44 = vsub.f32 1.5, %v948_v36  ;;  %v898_v45 = vmul.f32 0.5, %v897_v40  ;;  %1263 = vrot.lane.b32.xlu1 %v1210_v41, %s5712_s17  ;;  %v759_v46 = vpop.xlane.xlu2 %758  ;;  %v519_v29 = vmul.f32 %v5800_v3, %v472_v25  ;;  %v515_v34 = vmul.f32 %v5800_v3, %v468_v27  ;;  %v469_v41 = vld [vmem:[%s5807_s16 + $0xd0] sm:$0xff] }
 0x1a5   : > { %v5448_v49 = vpop.eup %5447  ;;  %v909_v51 = vsub.f32 1.5, %v908_v42  ;;  %v853_v43 = vadd.f32 1e-08, %v759_v46  ;;  %v558_v60 = vadd.f32 %v5816_v11, %v521_v32  ;;  %v516_v46 = vmul.f32 %v5800_v3, %v469_v41  ;;  %v464_v32 = vld [vmem:[%s5807_s16 + $0xa8] sm:$0xff] }
 0x1a6   : > { %v899_v63 = vsub.f32 1.5, %v898_v45  ;;  %v916_v53 = vmul.f32 %v5448_v49, %v6036_v23  ;;  %v950_v39 = vmul.f32 %v5442_v18, %v949_v44  ;;  %vm922_vm12 = vweird.f32 %v5448_v49  ;;  %v465_v44 = vld [vmem:[%s5807_s16 + $0xb0] sm:$0xff] }
 0x1a7   : > { %5449 = vrsqrt.f32 %v853_v43  ;;  %v910_v54 = vmul.f32 %v5444_v24, %v909_v51  ;;  %v6077_v4 = vmul.f32 %v5818_v12, %v558_v60  ;;  %vm923_vm15 = vmor %vm921_vm14, %vm922_vm12  ;;  %vm891_vm2 = vweird.f32 %v853_v43 }
 0x1a8   : > { %v917_v55 = vmul.f32 %v5448_v49, %v916_v53  ;;  %v954_v56 = vsel %vm953_vm8, %v5442_v18, %v950_v39  ;;  %v900_v35 = vmul.f32 %v6040_v48, %v899_v63  ;;  %v556_v21 = vadd.f32 %v5816_v11, %v519_v29 }
 0x1a9   : > { %v914_v57 = vsel %vm913_vm9, %v5444_v24, %v910_v54  ;;  %v1211_v58 = vmul.f32 %v954_v56, %v5886_v50  ;;  %v473_v50 = vld [vmem:[%s5807_s16 + $0xf0] sm:$0xff]  ;;  %v627_v22 = vmul.f32 %v6077_v4, %v6077_v4  ;;  %v552_v40 = vadd.f32 %v5816_v11, %v515_v34  ;;  %v466_v54 = vld [vmem:[%s5807_s16 + $0xb8] sm:$0xff] }
 0x1aa   : > { %v918_v0 = vmul.f32 0.5, %v917_v55  ;;  %v1207_v33 = vmul.f32 %v914_v57, %v5931_v14  ;;  %v471_v14 = vld [vmem:[%s5807_s16 + $0xe0] sm:$0xff]  ;;  %v904_v7 = vsel %vm903_vm13, %v6040_v48, %v900_v35  ;;  %v520_v59 = vmul.f32 %v5800_v3, %v473_v50 }
 0x1ab   : > { %1265 = vrot.lane.b32.xlu0 %v1211_v58, %s5712_s17  ;;  %1261 = vrot.lane.b32.xlu2 %v1209_v47, %s5712_s17  ;;  %v518_v9 = vmul.f32 %v5800_v3, %v471_v14  ;;  %v1206_v13 = vmul.f32 %v904_v7, %v5934_v15  ;;  %v6119_v20 = vmul.f32 %v5818_v12, %v556_v21  ;;  %v463_v57 = vld [vmem:[%s5807_s16 + $0xa0] sm:$0xff]  ;;  %v6177_v7 = vld [vmem:[%s5807_s16 + $0x98] sm:$0xff] }
 0x1ac   : > { %v919_v2 = vsub.f32 1.5, %v918_v0  ;;  %1257 = vrot.lane.b32.xlu1 %v1207_v33, %s5712_s17  ;;  %v557_v16 = vadd.f32 %v5816_v11, %v520_v59  ;;  %v6126_v45 = vmul.f32 %v5818_v12, %v552_v40  ;;  %v553_v63 = vadd.f32 %v5816_v11, %v516_v46  ;;  %v6251_v46 = vld [vmem:[%s5807_s16 + $0x90] sm:$0xff] }
 0x1ad   : > { %v5450_v1 = vpop.eup %5449  ;;  %v555_v23 = vadd.f32 %v5816_v11, %v518_v9  ;;  %v625_v51 = vmul.f32 %v6119_v20, %v6119_v20  ;;  %v513_v47 = vmul.f32 %v5800_v3, %v466_v54  ;;  %v511_v60 = vmul.f32 %v5800_v3, %v464_v32  ;;  %v6270_v32 = vld [vmem:[%s5807_s16 + $0x88] sm:$0xff] }
 0x1ae   : > { %v886_v5 = vmul.f32 %v5450_v1, %v853_v43  ;;  %v920_v6 = vmul.f32 %v5448_v49, %v919_v2  ;;  %vm892_vm1 = vweird.f32 %v5450_v1  ;;  %v6096_v15 = vmul.f32 %v5818_v12, %v557_v16 }
 0x1af   : > { %v6100_v28 = vmul.f32 %v5818_v12, %v555_v23  ;;  %vm893_vm3 = vmor %vm891_vm2, %vm892_vm1  ;;  %v621_v39 = vmul.f32 %v6126_v45, %v6126_v45  ;;  %v6146_v55 = vmul.f32 %v5818_v12, %v553_v63  ;;  %v510_v0 = vmul.f32 %v5800_v3, %v463_v57 }
 0x1b0   : > { %v887_v8 = vmul.f32 %v5450_v1, %v886_v5  ;;  %v924_v61 = vsel %vm923_vm15, %v5448_v49, %v920_v6  ;;  %v626_v37 = vmul.f32 %v6096_v15, %v6096_v15  ;;  %v512_v49 = vmul.f32 %v5800_v3, %v465_v44 }
 0x1b1   : > { %v1208_v10 = vmul.f32 %v924_v61, %v5938_v17  ;;  %v470_v17 = vld [vmem:[%s5807_s16 + $0xd8] sm:$0xff]  ;;  %v624_v36 = vmul.f32 %v6100_v28, %v6100_v28  ;;  %v622_v33 = vmul.f32 %v6146_v55, %v6146_v55  ;;  %v550_v2 = vadd.f32 %v5816_v11, %v513_v47 }
 0x1b2   : > { %v888_v18 = vmul.f32 0.5, %v887_v8  ;;  %v517_v30 = vmul.f32 %v5800_v3, %v470_v17  ;;  %v549_v52 = vadd.f32 %v5816_v11, %v512_v49  ;;  %v548_v50 = vadd.f32 %v5816_v11, %v511_v60 }
 0x1b3   : > { %1259 = vrot.lane.b32.xlu0 %v1208_v10, %s5712_s17  ;;  %1255 = vrot.lane.b32.xlu2 %v1206_v13, %s5712_s17  ;;  %v547_v14 = vadd.f32 %v5816_v11, %v510_v0  ;;  %v6171_v5 = vmul.f32 %v5818_v12, %v550_v2  ;;  %v509_v8 = vmul.f32 %v5800_v3, %v6177_v7 }
 0x1b4   : > { %v889_v24 = vsub.f32 1.5, %v888_v18  ;;  %722 = vrot.lane.b32.xlu1 %v627_v22, %s5712_s17  ;;  %v554_v38 = vadd.f32 %v5816_v11, %v517_v30  ;;  %v6153_v58 = vmul.f32 %v5818_v12, %v549_v52  ;;  %v6174_v6 = vmul.f32 %v5818_v12, %v548_v50 }
 0x1b5   : > { %v6180_v59 = vmul.f32 %v5818_v12, %v547_v14  ;;  %v619_v61 = vmul.f32 %v6171_v5, %v6171_v5  ;;  %v546_v13 = vadd.f32 %v5816_v11, %v509_v8  ;;  %v507_v0 = vmul.f32 %v5800_v3, %v6270_v32 }
 0x1b6   : > { %v890_v48 = vmul.f32 %v5450_v1, %v889_v24  ;;  %v6122_v42 = vmul.f32 %v5818_v12, %v554_v38  ;;  %v617_v9 = vmul.f32 %v6174_v6, %v6174_v6 }
 0x1b7   : > { %v616_v10 = vmul.f32 %v6180_v59, %v6180_v59  ;;  %v6195_v16 = vmul.f32 %v5818_v12, %v546_v13  ;;  %v544_v2 = vadd.f32 %v5816_v11, %v507_v0 }
 0x1b8   : > { %v894_v31 = vsel %vm893_vm3, %v5450_v1, %v890_v48  ;;  %v623_v43 = vmul.f32 %v6122_v42, %v6122_v42  ;;  %v618_v1 = vmul.f32 %v6153_v58, %v6153_v58 }
 0x1b9   : > { %v1205_v19 = vmul.f32 %v894_v31, %v5952_v26  ;;  %v467_v26 = vld [vmem:[%s5807_s16 + $0xc0] sm:$0xff]  ;;  %v615_v18 = vmul.f32 %v6195_v16, %v6195_v16 }
 0x1ba   : > { %v514_v62 = vmul.f32 %v5800_v3, %v467_v26 }
 0x1bb   : > { %1253 = vrot.lane.b32.xlu0 %v1205_v19, %s5712_s17  ;;  %720 = vrot.lane.b32.xlu2 %v626_v37, %s5712_s17 }
 0x1bc   : > { %716 = vrot.lane.b32.xlu1 %v624_v36, %s5712_s17  ;;  %v551_v53 = vadd.f32 %v5816_v11, %v514_v62 }
 0x1be   : > { %v6149_v56 = vmul.f32 %v5818_v12, %v551_v53  ;;  %v6260_v53 = vld [vmem:[%s5807_s16 + $0x80] sm:$0xff] }
 0x1bf   : > { %v506_v54 = vmul.f32 %v5800_v3, %v6260_v53 }
 0x1c0   : > { %v620_v35 = vmul.f32 %v6149_v56, %v6149_v56 }
 0x1c1   : > { %v543_v47 = vadd.f32 %v5816_v11, %v506_v54 }
 0x1c3   : > { %718 = vrot.lane.b32.xlu0 %v625_v51, %s5712_s17  ;;  %714 = vrot.lane.b32.xlu2 %v623_v43, %s5712_s17  ;;  %v508_v51 = vmul.f32 %v5800_v3, %v6251_v46 }
 0x1c4   : > { %710 = vrot.lane.b32.xlu1 %v621_v39, %s5712_s17 }
 0x1c5   : > { %v545_v43 = vadd.f32 %v5816_v11, %v508_v51 }
 0x1c7   : > { %v6265_v52 = vmul.f32 %v5818_v12, %v545_v43 }
 0x1c9   : > { %v614_v57 = vmul.f32 %v6265_v52, %v6265_v52 }
 0x1cb   : > { %712 = vrot.lane.b32.xlu0 %v622_v33, %s5712_s17  ;;  %708 = vrot.lane.b32.xlu2 %v620_v35, %s5712_s17  ;;  %v6282_v35 = vmul.f32 %v5818_v12, %v543_v47 }
 0x1cc   : > { %704 = vrot.lane.b32.xlu1 %v618_v1, %s5712_s17  ;;  %v6288_v1 = vmul.f32 %v5818_v12, %v544_v2 }
 0x1cd   : > { %v612_v50 = vmul.f32 %v6282_v35, %v6282_v35 }
 0x1ce   : > { %v613_v3 = vmul.f32 %v6288_v1, %v6288_v1 }
 0x1d3   : > { %706 = vrot.lane.b32.xlu0 %v619_v61, %s5712_s17  ;;  %702 = vrot.lane.b32.xlu2 %v617_v9, %s5712_s17 }
 0x1d4   : > { %700 = vrot.lane.b32.xlu1 %v616_v10, %s5712_s17 }
 0x1d5   : > { %v6200_v22 = vpop.permute.xlu2 %1279 }
 0x1dc   : > { %698 = vrot.lane.b32.xlu1 %v615_v18, %s5712_s17 }
 0x1e5   : > { %v6210_v17 = vpop.permute.xlu0 %1281 }
 0x1ee   : > { %v6202_v23 = vpop.permute.xlu2 %1273 }
 0x1fd   : > { %v6204_v24 = vpop.permute.xlu1 %1283  ;;  %v6206_v25 = vpop.permute.xlu2 %1267 }
 0x1fe   : > { %5016 = vmatpush.xpose.msk.msra.mxu0 %vm756_vm0, %v6204_v24  ;;  %v6220_v29 = vpop.permute.xlu0 %1277 }
 0x202   : > { %5017 = vmatpush.xpose.msk.msra.mxu0 %vm756_vm0, %v6210_v17 }
 0x205   : > { %v6214_v27 = vpop.permute.xlu1 %1275  ;;  %v6216_v48 = vpop.permute.xlu2 %1261 }
 0x206   : > { %5018 = vmatpush.xpose.msk.msra.mxu0 %vm756_vm0, %v6200_v22 }
 0x207   : > { %v6230_v34 = vpop.permute.xlu0 %1271 }
 0x20a   : > { %5019 = vmatpush.xpose.msk.msra.mxu0 %vm756_vm0, %v6220_v29 }
 0x20d   : > { %v1256_v30 = vpop.permute.xlu2 %1255  ;;  %v6224_v31 = vpop.permute.xlu1 %1269 }
 0x20e   : > { %5020 = vmatpush.xpose.msk.msra.mxu0 %vm756_vm0, %v6214_v27 }
 0x212   : > { %5021 = vmatpush.xpose.msk.msra.mxu0 %vm756_vm0, %v6202_v23 }
 0x215   : > { %v721_v19 = vpop.permute.xlu2 %720 }
 0x216   : > { %v6232_v37 = vpop.permute.xlu1 %1263  ;;  %5022 = vmatpush.xpose.msk.msra.mxu0 %vm756_vm0, %v6230_v34  ;;  %v847_v21 = vsel %vm756_vm0, %v721_v19, 0.0 }
 0x217   : > { %848 = vadd.xlane.f32.xlu2 %v847_v21 }
 0x21a   : > { %5023 = vmatpush.xpose.msk.msra.mxu0 %vm756_vm0, %v6224_v31 }
 0x21d   : > { %v6239_v38 = vpop.permute.xlu0 %1265  ;;  %v715_v60 = vpop.permute.xlu2 %714 }
 0x21e   : > { %v1258_v36 = vpop.permute.xlu1 %1257  ;;  %5024 = vmatpush.xpose.msk.msra.mxu0 %vm756_vm0, %v6206_v25  ;;  %v838_v33 = vsel %vm756_vm0, %v715_v60, 0.0 }
 0x222   : > { %5025 = vmatpush.xpose.msk.msra.mxu0 %vm756_vm0, %v6239_v38 }
 0x225   : > { %v1260_v40 = vpop.permute.xlu0 %1259  ;;  %v709_v61 = vpop.permute.xlu2 %708 }
 0x226   : > { %v723_v41 = vpop.permute.xlu1 %722  ;;  %5026 = vmatpush.xpose.msk.msra.mxu0 %vm756_vm0, %v6232_v37  ;;  %v829_v12 = vsel %vm756_vm0, %v709_v61, 0.0 }
 0x227   : > { %v850_v26 = vsel %vm756_vm0, %v723_v41, 0.0 }
 0x228   : > { %851 = vadd.xlane.f32.xlu0 %v850_v26 }
 0x22a   : > { %5027 = vmatpush.xpose.msk.msra.mxu0 %vm756_vm0, %v6216_v48 }
 0x22d   : > { %v1254_v44 = vpop.permute.xlu0 %1253  ;;  %v703_v13 = vpop.permute.xlu2 %702 }
 0x22e   : > { %v717_v62 = vpop.permute.xlu1 %716  ;;  %5028 = vmatpush.xpose.msk.msra.mxu0 %vm756_vm0, %v1260_v40  ;;  %v820_v18 = vsel %vm756_vm0, %v703_v13, 0.0 }
 0x22f   : > { %v841_v49 = vsel %vm756_vm0, %v717_v62, 0.0 }
 0x230   : > { %842 = vadd.xlane.f32.xlu2 %v841_v49 }
 0x232   : > { %5029 = vmatpush.xpose.msk.msra.mxu0 %vm756_vm0, %v1258_v36 }
 0x235   : > { %v719_v63 = vpop.permute.xlu0 %718 }
 0x236   : > { %5030 = vmatpush.xpose.msk.msra.mxu0 %vm756_vm0, %v1256_v30  ;;  %v844_v39 = vsel %vm756_vm0, %v719_v63, 0.0  ;;  %v711_v11 = vpop.permute.xlu1 %710 }
 0x237   : > { %845 = vadd.xlane.f32.xlu1 %v844_v39 }
 0x23a   : > { %5031 = vmatpush.xpose.msk.msra.mxu0 %vm756_vm0, %v1254_v44 }
 0x23c   : > { %696 = vrot.lane.b32.xlu0 %v614_v57, %s5712_s17 }
 0x23d   : > { %5032 = vmatmul.msk.f32.vlgmr.msra.gmra.mxu0 %vm756_vm0, %v1254_v44  ;;  %v713_v14 = vpop.permute.xlu0 %712 }
 0x23e   : > { %v835_v8 = vsel %vm756_vm0, %v713_v14, 0.0  ;;  %v705_v9 = vpop.permute.xlu1 %704 }
 0x23f   : > { %839 = vadd.xlane.f32.xlu1 %v838_v33  ;;  %v823_v10 = vsel %vm756_vm0, %v705_v9, 0.0 }
 0x244   : > { %692 = vrot.lane.b32.xlu0 %v612_v50, %s5712_s17 }
 0x245   : > { %5033 = vmatmul.msk.f32.gmra.mxu0 %vm756_vm0, %v1256_v30 }
 0x246   : > { %v701_v30 = vpop.permute.xlu1 %700 }
 0x247   : > { %836 = vadd.xlane.f32.xlu1 %v835_v8  ;;  %v817_v19 = vsel %vm756_vm0, %v701_v30, 0.0 }
 0x248   : > { %694 = vrot.lane.b32.xlu2 %v613_v3, %s5712_s17 }
 0x24d   : > { %5034 = vmatmul.msk.f32.gmra.mxu0 %vm756_vm0, %v1258_v36  ;;  %v707_v36 = vpop.permute.xlu0 %706 }
 0x24e   : > { %v699_v21 = vpop.permute.xlu1 %698  ;;  %v826_v41 = vsel %vm756_vm0, %v707_v36, 0.0 }
 0x24f   : > { %830 = vadd.xlane.f32.xlu1 %v829_v12 }
 0x255   : > { %5035 = vmatmul.msk.f32.gmra.mxu0 %vm756_vm0, %v1260_v40  ;;  %v832_v40 = vsel %vm756_vm0, %v711_v11, 0.0 }
 0x257   : > { %824 = vadd.xlane.f32.xlu1 %v823_v10 }
 0x25d   : > { %5036 = vmatmul.msk.f32.gmra.mxu0 %vm756_vm0, %v6216_v48  ;;  %v814_v48 = vsel %vm756_vm0, %v699_v21, 0.0 }
 0x25f   : > { %821 = vadd.xlane.f32.xlu1 %v820_v18 }
 0x265   : > { %5037 = vmatmul.msk.f32.gmra.mxu0 %vm756_vm0, %v6232_v37 }
 0x267   : > { %818 = vadd.xlane.f32.xlu1 %v817_v19 }
 0x26d   : > { %5038 = vmatmul.msk.f32.gmra.mxu0 %vm756_vm0, %v6239_v38 }
 0x26e   : > { %833 = vadd.xlane.f32.xlu0 %v832_v40 }
 0x26f   : > { %815 = vadd.xlane.f32.xlu1 %v814_v48 }
 0x271   : > { %827 = vadd.xlane.f32.xlu2 %v826_v41 }
 0x275   : > { %5039 = vmatmul.msk.f32.gmra.mxu0 %vm756_vm0, %v6206_v25 }
 0x27d   : > { %5040 = vmatmul.msk.f32.gmra.mxu0 %vm756_vm0, %v6224_v31 }
 0x285   : > { %5041 = vmatmul.msk.f32.gmra.mxu0 %vm756_vm0, %v6230_v34 }
 0x28a   : > { %v849_v37 = vpop.xlane.xlu2 %848 }
 0x28b   : > { %v6323_v25 = vadd.f32 1e-08, %v849_v37 }
 0x28d   : > { %5042 = vmatmul.msk.f32.gmra.mxu0 %vm756_vm0, %v6202_v23  ;;  %vm1191_vm11 = vweird.f32 %v6323_v25 }
 0x295   : > { %5043 = vmatmul.msk.f32.gmra.mxu0 %vm756_vm0, %v6214_v27 }
 0x29b   : > { %v852_v38 = vpop.xlane.xlu0 %851 }
 0x29c   : > { %v884_v26 = vadd.f32 1e-08, %v852_v38 }
 0x29d   : > { %5044 = vmatmul.msk.f32.gmra.mxu0 %vm756_vm0, %v6220_v29 }
 0x29e   : > { %5451 = vrsqrt.f32 %v884_v26  ;;  %vm1201_vm5 = vweird.f32 %v884_v26 }
 0x29f   : > { %5453 = vrsqrt.f32 %v6323_v25 }
 0x2a3   : > { %v843_v44 = vpop.xlane.xlu2 %842 }
 0x2a4   : > { %v5452_v31 = vpop.eup %5451  ;;  %v881_v34 = vadd.f32 1e-08, %v843_v44 }
 0x2a5   : > { %v1196_v62 = vmul.f32 %v5452_v31, %v884_v26  ;;  %5045 = vmatmul.msk.f32.gmra.mxu0 %vm756_vm0, %v6200_v22  ;;  %v6328_v49 = vpop.eup %5453  ;;  %vm1202_vm4 = vweird.f32 %v5452_v31 }
 0x2a6   : > { %5455 = vrsqrt.f32 %v881_v34  ;;  %v1186_v57 = vmul.f32 %v6328_v49, %v6323_v25  ;;  %vm1203_vm6 = vmor %vm1201_vm5, %vm1202_vm4  ;;  %vm1171_vm8 = vweird.f32 %v881_v34  ;;  %vm1192_vm10 = vweird.f32 %v6328_v49 }
 0x2a7   : > { %v1197_v23 = vmul.f32 %v5452_v31, %v1196_v62  ;;  %vm1193_vm12 = vmor %vm1191_vm11, %vm1192_vm10  ;;  %vm2361_vm11 = vcmask 523264  }
 0x2a8   : > { %v1187_v50 = vmul.f32 %v6328_v49, %v1186_v57 }
 0x2a9   : > { %v1198_v27 = vmul.f32 0.5, %v1197_v23 }
 0x2aa   : > { %v846_v51 = vpop.xlane.xlu1 %845  ;;  %v1188_v9 = vmul.f32 0.5, %v1187_v50 }
 0x2ab   : > { %v1199_v43 = vsub.f32 1.5, %v1198_v27  ;;  %v695_v29 = vpop.permute.xlu2 %694  ;;  %v6330_v63 = vadd.f32 1e-08, %v846_v51 }
 0x2ac   : > { %v5456_v39 = vpop.eup %5455  ;;  %v808_v54 = vsel %vm756_vm0, %v695_v29, 0.0  ;;  %v1189_v21 = vsub.f32 1.5, %v1188_v9 }
 0x2ad   : > { %v1166_v47 = vmul.f32 %v5456_v39, %v881_v34  ;;  %5457 = vrsqrt.f32 %v6330_v63  ;;  %809 = vadd.xlane.f32.xlu1 %v808_v54  ;;  %5046 = vmatmul.msk.f32.gmra.mxu0 %vm756_vm0, %v6210_v17  ;;  %v1200_v60 = vmul.f32 %v5452_v31, %v1199_v43  ;;  %vm1172_vm7 = vweird.f32 %v5456_v39 }
 0x2ae   : > { %v697_v22 = vpop.permute.xlu0 %696  ;;  %vm1173_vm9 = vmor %vm1171_vm8, %vm1172_vm7  ;;  %vm1181_vm14 = vweird.f32 %v6330_v63 }
 0x2af   : > { %v1167_v0 = vmul.f32 %v5456_v39, %v1166_v47  ;;  %v811_v33 = vsel %vm756_vm0, %v697_v22, 0.0  ;;  %v1204_v2 = vsel %vm1203_vm6, %v5452_v31, %v1200_v60 }
 0x2b0   : > { %812 = vadd.xlane.f32.xlu0 %v811_v33  ;;  %v1236_v3 = vmul.f32 %v1204_v2, %v6077_v4 }
 0x2b1   : > { %v1168_v14 = vmul.f32 0.5, %v1167_v0 }
 0x2b2   : > { %v840_v8 = vpop.xlane.xlu1 %839  ;;  %1820 = vrot.lane.b32.xlu2 %v1236_v3, %s5712_s17 }
 0x2b3   : > { %v5458_v11 = vpop.eup %5457  ;;  %v1169_v61 = vsub.f32 1.5, %v1168_v14  ;;  %v880_v17 = vadd.f32 1e-08, %v840_v8 }
 0x2b4   : > { %v1176_v12 = vmul.f32 %v5458_v11, %v6330_v63  ;;  %vm1182_vm13 = vweird.f32 %v5458_v11 }
 0x2b5   : > { %5459 = vrsqrt.f32 %v880_v17  ;;  %5047 = vmatmul.msk.f32.gmra.mxu0 %vm756_vm0, %v6204_v24  ;;  %v1170_v10 = vmul.f32 %v5456_v39, %v1169_v61  ;;  %v1190_v24 = vmul.f32 %v6328_v49, %v1189_v21  ;;  %vm1183_vm15 = vmor %vm1181_vm14, %vm1182_vm13  ;;  %vm1161_vm4 = vweird.f32 %v880_v17 }
 0x2b6   : > { %v693_v13 = vpop.permute.xlu0 %692  ;;  %v1177_v18 = vmul.f32 %v5458_v11, %v1176_v12  ;;  %v5358_v12 = vld [vmem:[%s8766_s2 + $0x18] sm:$0xff] }
 0x2b7   : > { %v805_v4 = vsel %vm756_vm0, %v693_v13, 0.0  ;;  %v1174_v30 = vsel %vm1173_vm9, %v5456_v39, %v1170_v10  ;;  %2414 = vmatpush.bf16.msrb.mxu0 %v5358_v12  ;;  %5387 = vmatpush.bf16.msra.mxu2 %v5358_v12  ;;  %v5678_v12 = vld [vmem:[%s5807_s16 + $0x18] sm:$0xff] }
 0x2b8   : > { %806 = vadd.xlane.f32.xlu0 %v805_v4  ;;  %v1233_v19 = vmul.f32 %v1174_v30, %v6100_v28  ;;  %v1178_v48 = vmul.f32 0.5, %v1177_v18  ;;  %v1194_v28 = vsel %vm1193_vm12, %v6328_v49, %v1190_v24  ;;  %v5356_v30 = vld [vmem:[%s8766_s2 + $0x8] sm:$0xff] }
 0x2b9   : > { %v1235_v43 = vmul.f32 %v1194_v28, %v6096_v15  ;;  %v5675_v28 = vld [vmem:[%s5807_s16 + $0x8] sm:$0xff] }
 0x2ba   : > { %v837_v36 = vpop.xlane.xlu1 %836  ;;  %1814 = vrot.lane.b32.xlu2 %v1233_v19, %s5712_s17  ;;  %v1179_v38 = vsub.f32 1.5, %v1178_v48  ;;  %v6352_v27 = vpop.f32.mrf.mxu0 }
 0x2bb   : > { %v5460_v40 = vpop.eup %5459  ;;  %v879_v41 = vadd.f32 1e-08, %v837_v36 }
 0x2bc   : > { %v1156_v37 = vmul.f32 %v5460_v40, %v880_v17  ;;  %v1180_v23 = vmul.f32 %v5458_v11, %v1179_v38  ;;  %vm1162_vm2 = vweird.f32 %v5460_v40 }
 0x2bd   : > { %5461 = vrsqrt.f32 %v879_v41  ;;  %vm1151_vm3 = vweird.f32 %v879_v41  ;;  %vm1163_vm6 = vmor %vm1161_vm4, %vm1162_vm2 }
 0x2be   : > { %v1157_v26 = vmul.f32 %v5460_v40, %v1156_v37  ;;  %v1184_v49 = vsel %vm1183_vm15, %v5458_v11, %v1180_v23 }
 0x2bf   : > { %v1234_v47 = vmul.f32 %v1184_v49, %v6119_v20 }
 0x2c0   : > { %v1158_v34 = vmul.f32 0.5, %v1157_v26 }
 0x2c2   : > { %v831_v44 = vpop.xlane.xlu1 %830  ;;  %v1159_v29 = vsub.f32 1.5, %v1158_v34  ;;  %v6359_v0 = vpop.f32.mrf.mxu0 }
 0x2c3   : > { %v5462_v31 = vpop.eup %5461  ;;  %v877_v62 = vadd.f32 1e-08, %v831_v44  ;;  %v5676_v44 = vld [vmem:[%s5807_s16] sm:$0xff] }
 0x2c4   : > { %v1146_v51 = vmul.f32 %v5462_v31, %v879_v41  ;;  %vm1152_vm1 = vweird.f32 %v5462_v31  ;;  %v1160_v60 = vmul.f32 %v5460_v40, %v1159_v29 }
 0x2c5   : > { %5463 = vrsqrt.f32 %v877_v62  ;;  %vm1153_vm5 = vmor %vm1151_vm3, %vm1152_vm1  ;;  %vm1131_vm8 = vweird.f32 %v877_v62 }
 0x2c6   : > { %v1147_v25 = vmul.f32 %v5462_v31, %v1146_v51  ;;  %1818 = vrot.lane.b32.xlu1 %v1235_v43, %s5712_s17  ;;  %v1164_v14 = vsel %vm1163_vm6, %v5460_v40, %v1160_v60  ;;  %v5355_v40 = vld [vmem:[%s8766_s2] sm:$0xff] }
 0x2c7   : > { %v1232_v11 = vmul.f32 %v1164_v14, %v6122_v42  ;;  %v5357_v42 = vld [vmem:[%s8766_s2 + $0x10] sm:$0xff] }
 0x2c8   : > { %v1148_v39 = vmul.f32 0.5, %v1147_v25  ;;  %2415 = vmatpush.bf16.msrb.mxu0 %v5357_v42  ;;  %5388 = vmatpush.bf16.msra.mxu2 %v5357_v42 }
 0x2ca   : > { %v1149_v54 = vsub.f32 1.5, %v1148_v39  ;;  %v825_v57 = vpop.xlane.xlu1 %824  ;;  %v6368_v9 = vpop.f32.mrf.mxu0 }
 0x2cb   : > { %v5464_v22 = vpop.eup %5463  ;;  %v6373_v10 = vadd.f32 1e-08, %v825_v57 }
 0x2cc   : > { %v1126_v15 = vmul.f32 %v5464_v22, %v877_v62  ;;  %1816 = vrot.lane.b32.xlu0 %v1234_v47, %s5712_s17  ;;  %v1150_v63 = vmul.f32 %v5462_v31, %v1149_v54  ;;  %vm1132_vm7 = vweird.f32 %v5464_v22  ;;  %2416 = vmatpush.bf16.msrb.mxu0 %v5356_v30 }
 0x2cd   : > { %vm1133_vm9 = vmor %vm1131_vm8, %vm1132_vm7  ;;  %5389 = vmatpush.bf16.msra.mxu2 %v5356_v30  ;;  %vm1111_vm6 = vweird.f32 %v6373_v10 }
 0x2ce   : > { %v1127_v33 = vmul.f32 %v5464_v22, %v1126_v15  ;;  %v1154_v2 = vsel %vm1153_vm5, %v5462_v31, %v1150_v63  ;;  %v6393_v31 = vpack.c.bf16 %v5675_v28, %v5676_v44 }
 0x2cf   : > { %v1231_v50 = vmul.f32 %v1154_v2, %v6146_v55 }
 0x2d0   : > { %v1128_v3 = vmul.f32 0.5, %v1127_v33  ;;  %2417 = vmatpush.bf16.msrb.mxu0 %v5355_v40 }
 0x2d1   : > { %1810 = vrot.lane.b32.xlu1 %v1231_v50, %s5712_s17  ;;  %5390 = vmatpush.bf16.msra.mxu2 %v5355_v40 }
 0x2d2   : > { %v1129_v20 = vsub.f32 1.5, %v1128_v3  ;;  %v822_v8 = vpop.xlane.xlu1 %821  ;;  %v6387_v41 = vpop.f32.mrf.mxu0 }
 0x2d3   : > { %v874_v61 = vadd.f32 1e-08, %v822_v8  ;;  %5112 = vmatmul.msk.bf16.vlgmr.msrb.gmra.mxu0 %vm2361_vm11, %v6393_v31 }
 0x2d4   : > { %1812 = vrot.lane.b32.xlu0 %v1232_v11, %s5712_s17  ;;  %v1130_v17 = vmul.f32 %v5464_v22, %v1129_v20 }
 0x2d5   : > { %5465 = vrsqrt.f32 %v874_v61  ;;  %vm1101_vm12 = vweird.f32 %v874_v61 }
 0x2d6   : > { %v1134_v55 = vsel %vm1133_vm9, %v5464_v22, %v1130_v17  ;;  %5467 = vrsqrt.f32 %v6373_v10  ;;  %v5677_v17 = vld [vmem:[%s5807_s16 + $0x10] sm:$0xff] }
 0x2d7   : > { %v1229_v18 = vmul.f32 %v1134_v55, %v6149_v56  ;;  %v6421_v55 = vpack.c.bf16 %v5678_v12, %v5677_v17 }
 0x2da   : > { %v819_v13 = vpop.xlane.xlu1 %818  ;;  %v6411_v60 = vpop.f32.mrf.mxu0 }
 0x2db   : > { %v5466_v4 = vpop.eup %5465  ;;  %v6380_v21 = vadd.f32 1e-08, %v819_v13 }
 0x2dc   : > { %v1096_v19 = vmul.f32 %v5466_v4, %v874_v61  ;;  %1806 = vrot.lane.b32.xlu0 %v1229_v18, %s5712_s17  ;;  %vm1102_vm10 = vweird.f32 %v5466_v4  ;;  %v6395_v34 = vpop.eup %5467  ;;  %v5360_v61 = vld [vmem:[%s8767_s3 + $0x8] sm:$0xff] }
 0x2dd   : > { %5469 = vrsqrt.f32 %v6380_v21  ;;  %vm1103_vm13 = vmor %vm1101_vm12, %vm1102_vm10  ;;  %v1106_v25 = vmul.f32 %v6395_v34, %v6373_v10  ;;  %2586 = vmatpush.bf16.msra.mxu3 %v5360_v61  ;;  %vm1112_vm4 = vweird.f32 %v6395_v34  ;;  %vm1091_vm9 = vweird.f32 %v6380_v21 }
 0x2de   : > { %v1097_v36 = vmul.f32 %v5466_v4, %v1096_v19  ;;  %v5359_v19 = vld [vmem:[%s8767_s3] sm:$0xff]  ;;  %vm1113_vm7 = vmor %vm1111_vm6, %vm1112_vm4 }
 0x2df   : > { %v1107_v57 = vmul.f32 %v6395_v34, %v1106_v25 }
 0x2e0   : > { %v1098_v56 = vmul.f32 0.5, %v1097_v36 }
 0x2e1   : > { %v834_v48 = vpop.xlane.xlu0 %833  ;;  %v1108_v2 = vmul.f32 0.5, %v1107_v57  ;;  %2587 = vmatpush.bf16.msra.mxu3 %v5359_v19  ;;  %v5681_v57 = vld [vmem:[%s5807_s16 + $0x30] sm:$0xff] }
 0x2e2   : > { %v1099_v37 = vsub.f32 1.5, %v1098_v56  ;;  %v878_v24 = vadd.f32 1e-08, %v834_v48  ;;  %v816_v38 = vpop.xlane.xlu1 %815  ;;  %v6429_v56 = vpop.f32.mrf.mxu0 }
 0x2e3   : > { %v6389_v26 = vadd.f32 1e-08, %v816_v38  ;;  %v6400_v43 = vpop.eup %5469  ;;  %v1109_v42 = vsub.f32 1.5, %v1108_v2  ;;  %5113 = vmatmul.msk.bf16.gmra.mxu0 %vm2361_vm11, %v6421_v55 }
 0x2e4   : > { %5471 = vrsqrt.f32 %v878_v24  ;;  %v828_v62 = vpop.xlane.xlu2 %827  ;;  %v1100_v51 = vmul.f32 %v5466_v4, %v1099_v37  ;;  %v1086_v54 = vmul.f32 %v6400_v43, %v6380_v21  ;;  %vm1141_vm15 = vweird.f32 %v878_v24  ;;  %5136 = vmatmul.msk.bf16.vlgmr.msra.gmra.mxu3 %vm756_vm0, %v6393_v31 }
 0x2e5   : > { %v876_v23 = vadd.f32 1e-08, %v828_v62  ;;  %5473 = vrsqrt.f32 %v6389_v26  ;;  %vm1092_vm8 = vweird.f32 %v6400_v43 }
 0x2e6   : > { %v1104_v29 = vsel %vm1103_vm13, %v5466_v4, %v1100_v51  ;;  %v1087_v33 = vmul.f32 %v6400_v43, %v1086_v54  ;;  %vm1093_vm10 = vmor %vm1091_vm9, %vm1092_vm8  ;;  %vm1081_vm13 = vweird.f32 %v6389_v26  ;;  %vm1383_vm9 = vcmp.gt.f32.partialorder %v6359_v0, 0.1 }
 0x2e7   : > { %5475 = vrsqrt.f32 %v876_v23  ;;  %v1226_v49 = vmul.f32 %v1104_v29, %v6174_v6  ;;  %vm1121_vm3 = vweird.f32 %v876_v23 }
 0x2e8   : > { %v1088_v8 = vmul.f32 0.5, %v1087_v33 }
 0x2e9   : > { %1800 = vrot.lane.b32.xlu0 %v1226_v49, %s5712_s17 }
 0x2ea   : > { %v5472_v39 = vpop.eup %5471  ;;  %v1089_v36 = vsub.f32 1.5, %v1088_v8  ;;  %v6448_v51 = vpop.f32.mrf.mxu0 }
 0x2eb   : > { %v1136_v47 = vmul.f32 %v5472_v39, %v878_v24  ;;  %v6409_v22 = vpop.eup %5473  ;;  %vm1142_vm14 = vweird.f32 %v5472_v39  ;;  %v1110_v24 = vmul.f32 %v6395_v34, %v1109_v42  ;;  %v5683_v42 = vld [vmem:[%s5807_s16 + $0x48] sm:$0xff] }
 0x2ec   : > { %v1076_v14 = vmul.f32 %v6409_v22, %v6389_v26  ;;  %vm1143_vm1 = vmor %vm1141_vm15, %vm1142_vm14  ;;  %vm1082_vm12 = vweird.f32 %v6409_v22  ;;  %v5680_v26 = vld [vmem:[%s5807_s16 + $0x20] sm:$0xff] }
 0x2ed   : > { %v5476_v15 = vpop.eup %5475  ;;  %v1137_v63 = vmul.f32 %v5472_v39, %v1136_v47  ;;  %v1114_v62 = vsel %vm1113_vm7, %v6395_v34, %v1110_v24  ;;  %vm1083_vm14 = vmor %vm1081_vm13, %vm1082_vm12  ;;  %v5682_v47 = vld [vmem:[%s5807_s16 + $0x38] sm:$0xff]  ;;  %vm1386_vm12 = vcmp.gt.f32.partialorder %v6411_v60, 0.1  ;;  %vm1384_vm13 = vcmp.gt.f32.partialorder %v6368_v9, 0.1 }
 0x2ee   : > { %v1116_v6 = vmul.f32 %v5476_v15, %v876_v23  ;;  %v1077_v13 = vmul.f32 %v6409_v22, %v1076_v14  ;;  %vm1122_vm2 = vweird.f32 %v5476_v15  ;;  %v1227_v10 = vmul.f32 %v1114_v62, %v6153_v58 }
 0x2ef   : > { %v1138_v50 = vmul.f32 0.5, %v1137_v63  ;;  %vm1123_vm5 = vmor %vm1121_vm3, %vm1122_vm2 }
 0x2f0   : > { %v1117_v3 = vmul.f32 %v5476_v15, %v1116_v6  ;;  %v1078_v37 = vmul.f32 0.5, %v1077_v13  ;;  %v5684_v13 = vld [vmem:[%s5807_s16 + $0x40] sm:$0xff] }
 0x2f1   : > { %v1139_v20 = vsub.f32 1.5, %v1138_v50 }
 0x2f2   : > { %v1118_v11 = vmul.f32 0.5, %v1117_v3  ;;  %v1079_v44 = vsub.f32 1.5, %v1078_v37 }
 0x2f3   : > { %v1140_v18 = vmul.f32 %v5472_v39, %v1139_v20 }
 0x2f4   : > { %v1119_v4 = vsub.f32 1.5, %v1118_v11  ;;  %v1080_v23 = vmul.f32 %v6409_v22, %v1079_v44  ;;  %5137 = vmatmul.msk.bf16.gmra.mxu3 %vm756_vm0, %v6421_v55 }
 0x2f5   : > { %v1144_v30 = vsel %vm1143_vm1, %v5472_v39, %v1140_v18  ;;  %v6489_v18 = vpack.c.bf16 %v5683_v42, %v5684_v13 }
 0x2f6   : > { %v1230_v40 = vmul.f32 %v1144_v30, %v6126_v45  ;;  %v1120_v48 = vmul.f32 %v5476_v15, %v1119_v4  ;;  %v1090_v45 = vmul.f32 %v6400_v43, %v1089_v36  ;;  %v1084_v58 = vsel %vm1083_vm14, %v6409_v22, %v1080_v23  ;;  %v5686_v23 = vld [vmem:[%s5807_s16 + $0x68] sm:$0xff] }
 0x2f7   : > { %v1224_v21 = vmul.f32 %v1084_v58, %v6195_v16  ;;  %v6479_v22 = vpack.c.bf16 %v5682_v47, %v5681_v57  ;;  %vm1385_vm14 = vcmp.gt.f32.partialorder %v6387_v41, 0.1 }
 0x2f8   : > { %1808 = vrot.lane.b32.xlu2 %v1230_v40, %s5712_s17  ;;  %v1124_v38 = vsel %vm1123_vm5, %v5476_v15, %v1120_v48  ;;  %v6598_v13 = vsel %vm1385_vm14, %v6387_v41, 0.0 }
 0x2f9   : > { %v1228_v28 = vmul.f32 %v1124_v38, %v6171_v5  ;;  %v1094_v5 = vsel %vm1093_vm10, %v6400_v43, %v1090_v45  ;;  %v6457_v43 = vpop.f32.mrf.mxu0  ;;  %vm1382_vm10 = vcmp.gt.f32.partialorder %v6352_v27, 0.1 }
 0x2fa   : > { %v1225_v34 = vmul.f32 %v1094_v5, %v6180_v59  ;;  %v5679_v59 = vld [vmem:[%s5807_s16 + $0x28] sm:$0xff]  ;;  %v5685_v5 = vld [vmem:[%s5807_s16 + $0x60] sm:$0xff] }
 0x2fb   : > { %1804 = vrot.lane.b32.xlu1 %v1228_v28, %s5712_s17  ;;  %v6467_v29 = vpack.c.bf16 %v5679_v59, %v5680_v26  ;;  %v5687_v26 = vld [vmem:[%s5807_s16 + $0x58] sm:$0xff] }
 0x2fd   : > { %5114 = vmatmul.msk.bf16.gmra.mxu0 %vm2361_vm11, %v6467_v29 }
 0x300   : > { %1802 = vrot.lane.b32.xlu2 %v1227_v10, %s5712_s17 }
 0x301   : > { %v6469_v49 = vpop.f32.mrf.mxu0 }
 0x303   : > { %1798 = vrot.lane.b32.xlu1 %v1225_v34, %s5712_s17  ;;  %v6509_v34 = vpack.c.bf16 %v5686_v23, %v5685_v5  ;;  %v5691_v5 = vld [vmem:[%s5807_s16 + $0xa8] sm:$0xff]  ;;  %v5692_v23 = vld [vmem:[%s5807_s16 + $0xa0] sm:$0xff] }
 0x304   : > { %5138 = vmatmul.msk.bf16.gmra.mxu3 %vm756_vm0, %v6467_v29 }
 0x305   : > { %5118 = vmatmul.msk.bf16.vlgmr.msra.gmra.mxu2 %vm2361_vm11, %v6509_v34 }
 0x308   : > { %1796 = vrot.lane.b32.xlu2 %v1224_v21, %s5712_s17 }
 0x309   : > { %v6475_v16 = vpop.f32.mrf.mxu0 }
 0x30c   : > { %v6461_v25 = vpop.permute.xlu2 %1820 }
 0x30d   : > { %5048 = vmatpush.xpose.msk.msra.mxu1 %vm756_vm0, %v6461_v25  ;;  %5115 = vmatmul.msk.bf16.gmra.mxu0 %vm2361_vm11, %v6479_v22 }
 0x311   : > { %v6483_v33 = vpop.f32.mrf.mxu0 }
 0x314   : > { %5139 = vmatmul.msk.bf16.gmra.mxu3 %vm756_vm0, %v6479_v22  ;;  %v6522_v57 = vpop.permute.xlu2 %1814 }
 0x319   : > { %v6491_v4 = vpop.f32.mrf.mxu0 }
 0x31d   : > { %5116 = vmatmul.msk.bf16.gmra.mxu0 %vm2361_vm11, %v6489_v18 }
 0x320   : > { %v810_v39 = vpop.xlane.xlu1 %809 }
 0x321   : > { %v870_v54 = vadd.f32 1e-08, %v810_v39  ;;  %v6505_v10 = vpop.f32.mrf.mxu0  ;;  %v5688_v39 = vld [vmem:[%s5807_s16 + $0x50] sm:$0xff] }
 0x323   : > { %5477 = vrsqrt.f32 %v870_v54  ;;  %v813_v15 = vpop.xlane.xlu0 %812  ;;  %vm1061_vm1 = vweird.f32 %v870_v54 }
 0x324   : > { %v871_v63 = vadd.f32 1e-08, %v813_v15  ;;  %5140 = vmatmul.msk.bf16.gmra.mxu3 %vm756_vm0, %v6489_v18 }
 0x326   : > { %5479 = vrsqrt.f32 %v871_v63  ;;  %vm1071_vm4 = vweird.f32 %v871_v63 }
 0x329   : > { %v5478_v6 = vpop.eup %5477  ;;  %v6529_v47 = vpop.f32.mrf.mxu0 }
 0x32a   : > { %v1056_v2 = vmul.f32 %v5478_v6, %v870_v54  ;;  %vm1062_vm15 = vweird.f32 %v5478_v6  ;;  %v6520_v54 = vpack.c.bf16 %v5687_v26, %v5688_v39  ;;  %v6684_v39 = vld [vmem:[%s8775_s11 + $0x4] ss:$0 sm:$0xff] }
 0x32b   : > { %v807_v50 = vpop.xlane.xlu0 %806  ;;  %vm1063_vm2 = vmor %vm1061_vm1, %vm1062_vm15  ;;  %vm1389_vm15 = vcmp.gt.f32.partialorder %v6457_v43, 0.1  ;;  %vm1387_vm1 = vcmp.gt.f32.partialorder %v6429_v56, 0.1 }
 0x32c   : > { %v5480_v14 = vpop.eup %5479  ;;  %v1057_v3 = vmul.f32 %v5478_v6, %v1056_v2  ;;  %v869_v20 = vadd.f32 1e-08, %v807_v50 }
 0x32d   : > { %v1066_v8 = vmul.f32 %v5480_v14, %v871_v63  ;;  %vm1072_vm3 = vweird.f32 %v5480_v14  ;;  %5117 = vmatmul.msk.bf16.gmra.mxu0 %vm2361_vm11, %v6520_v54  ;;  %v5689_v63 = vld [vmem:[%s5807_s16 + $0x78] sm:$0xff] }
 0x32e   : > { %v1058_v11 = vmul.f32 0.5, %v1057_v3  ;;  %5481 = vrsqrt.f32 %v869_v20  ;;  %vm1073_vm5 = vmor %vm1071_vm4, %vm1072_vm3  ;;  %vm1051_vm7 = vweird.f32 %v869_v20  ;;  %vm1392_vm3 = vcmp.gt.f32.partialorder %v6483_v33, 0.1 }
 0x32f   : > { %v1067_v61 = vmul.f32 %v5480_v14, %v1066_v8  ;;  %v6564_v8 = vpack.c.bf16 %v6270_v32, %v6260_v53  ;;  %v5362_v53 = vld [vmem:[%s8768_s4 + $0x8] sm:$0xff]  ;;  %vm1390_vm4 = vcmp.gt.f32.partialorder %v6469_v49, 0.1 }
 0x330   : > { %v1059_v17 = vsub.f32 1.5, %v1058_v11  ;;  %v6567_v11 = vsel %vm1383_vm9, %v6359_v0, 0.0  ;;  %2756 = vmatpush.bf16.msra.mxu0 %v5362_v53  ;;  %v6594_v0 = vsel %vm1384_vm13, %v6368_v9, 0.0  ;;  %v6609_v9 = vpack.c.bf16 %v6177_v7, %v6251_v46 }
 0x331   : > { %v1068_v12 = vmul.f32 0.5, %v1067_v61  ;;  %v6545_v50 = vpop.f32.mrf.mxu0  ;;  %v6630_v46 = vsel %vm1387_vm1, %v6429_v56, 0.0 }
 0x332   : > { %v1060_v30 = vmul.f32 %v5478_v6, %v1059_v17  ;;  %v6574_v17 = vsel %vm1382_vm10, %v6352_v27, 0.0  ;;  %v6589_v27 = vsel %vm1386_vm12, %v6411_v60, 0.0  ;;  %v5361_v60 = vld [vmem:[%s8768_s4] sm:$0xff]  ;;  %vm1396_vm9 = vcmp.gt.f32.partialorder %v6545_v50, 0.1 }
 0x333   : > { %v1069_v19 = vsub.f32 1.5, %v1068_v12  ;;  %v6579_v12 = vld [vmem:[%s8775_s11 + $0x3] ss:$0 sm:$0xff] }
 0x334   : > { %v5482_v36 = vpop.eup %5481  ;;  %v1064_v40 = vsel %vm1063_vm2, %v5478_v6, %v1060_v30  ;;  %5141 = vmatmul.msk.bf16.gmra.mxu3 %vm756_vm0, %v6520_v54  ;;  %v5690_v6 = vld [vmem:[%s5807_s16 + $0x70] sm:$0xff]  ;;  %2757 = vmatpush.bf16.msra.mxu0 %v5361_v60  ;;  %vm1388_vm2 = vcmp.gt.f32.partialorder %v6448_v51, 0.1 }
 0x335   : > { %v1046_v48 = vmul.f32 %v5482_v36, %v869_v20  ;;  %v1222_v37 = vmul.f32 %v1064_v40, %v6288_v1  ;;  %v1070_v24 = vmul.f32 %v5480_v14, %v1069_v19  ;;  %vm1052_vm6 = vweird.f32 %v5482_v36 }
 0x336   : > { %vm1053_vm8 = vmor %vm1051_vm7, %vm1052_vm6  ;;  %v6543_v2 = vpack.c.bf16 %v5689_v63, %v5690_v6  ;;  %vm1395_vm6 = vcmp.gt.f32.partialorder %v6529_v47, 0.1  ;;  %vm1393_vm7 = vcmp.gt.f32.partialorder %v6491_v4, 0.1 }
 0x337   : > { %v1047_v38 = vmul.f32 %v5482_v36, %v1046_v48  ;;  %1792 = vrot.lane.b32.xlu1 %v1222_v37, %s5712_s17  ;;  %v1074_v28 = vsel %vm1073_vm5, %v5480_v14, %v1070_v24  ;;  %v6618_v48 = vsel %vm1389_vm15, %v6457_v43, 0.0  ;;  %v6634_v43 = vsel %vm1388_vm2, %v6448_v51, 0.0 }
 0x338   : > { %v6497_v45 = vpop.permute.xlu1 %1818  ;;  %v1223_v44 = vmul.f32 %v1074_v28, %v6265_v52  ;;  %5119 = vmatmul.msk.bf16.gmra.mxu2 %vm2361_vm11, %v6543_v2  ;;  %vm1391_vm5 = vcmp.gt.f32.partialorder %v6475_v16, 0.1  ;;  %v6654_v28 = vsel %vm1390_vm4, %v6469_v49, 0.0  ;;  %v6675_v26 = vsel %vm1395_vm6, %v6529_v47, 0.0 }
 0x339   : > { %v1048_v62 = vmul.f32 0.5, %v1047_v38  ;;  %5049 = vmatpush.xpose.msk.msra.mxu1 %vm756_vm0, %v6497_v45  ;;  %v6557_v20 = vpop.f32.mrf.mxu0  ;;  %v6645_v38 = vsel %vm1392_vm3, %v6483_v33, 0.0  ;;  %v6688_v63 = vsel %vm1393_vm7, %v6491_v4, 0.0 }
 0x33a   : > { %1794 = vrot.lane.b32.xlu0 %v1223_v44, %s5712_s17  ;;  %vm1397_vm10 = vcmp.gt.f32.partialorder %v6557_v20, 0.1 }
 0x33b   : > { %v1049_v1 = vsub.f32 1.5, %v1048_v62  ;;  %v6658_v62 = vsel %vm1391_vm5, %v6475_v16, 0.0 }
 0x33d   : > { %v1050_v52 = vmul.f32 %v5482_v36, %v1049_v1 }
 0x33e   : > { %v6511_v58 = vpop.permute.xlu0 %1816 }
 0x33f   : > { %5050 = vmatpush.xpose.msk.msra.mxu1 %vm756_vm0, %v6511_v58  ;;  %v1054_v21 = vsel %vm1053_vm8, %v5482_v36, %v1050_v52  ;;  %v6666_v52 = vpack.c.bf16 %v5691_v5, %v5692_v23  ;;  %vm1394_vm8 = vcmp.gt.f32.partialorder %v6505_v10, 0.1  ;;  %v5695_v5 = vld [vmem:[%s5807_s16 + $0xc8] sm:$0xff]  ;;  %v5696_v23 = vld [vmem:[%s5807_s16 + $0xc0] sm:$0xff] }
 0x340   : > { %v1221_v59 = vmul.f32 %v1054_v21, %v6282_v35  ;;  %v6692_v47 = vsel %vm1394_vm8, %v6505_v10, 0.0  ;;  %v6710_v10 = vsel %vm1397_vm10, %v6557_v20, 0.0 }
 0x342   : > { %1790 = vrot.lane.b32.xlu2 %v1221_v59, %s5712_s17 }
 0x343   : > { %5051 = vmatpush.xpose.msk.msra.mxu1 %vm756_vm0, %v6522_v57  ;;  %v6535_v35 = vpop.permute.xlu1 %1810 }
 0x344   : > { %5142 = vmatmul.msk.bf16.gmra.mxu3 %vm756_vm0, %v6509_v34 }
 0x346   : > { %v6531_v15 = vpop.permute.xlu0 %1812 }
 0x347   : > { %5052 = vmatpush.xpose.msk.msra.mxu1 %vm756_vm0, %v6531_v15 }
 0x348   : > { %5120 = vmatmul.msk.bf16.gmra.mxu2 %vm2361_vm11, %v6564_v8 }
 0x34b   : > { %5053 = vmatpush.xpose.msk.msra.mxu1 %vm756_vm0, %v6535_v35 }
 0x34e   : > { %v6553_v3 = vpop.permute.xlu0 %1806 }
 0x350   : > { %v2419_v61 = vpop.f32.mrf.mxu0 }
 0x351   : > { %v2420_v32 = vadd.f32 %v6579_v12, %v2419_v61 }
 0x352   : > { %v6549_v14 = vpop.permute.xlu2 %1808 }
 0x353   : > { %5054 = vmatpush.xpose.msk.msra.mxu1 %vm756_vm0, %v6549_v14  ;;  %v2499_v30 = vmax.f32 %v2420_v32, 0.0  ;;  %v6706_v32 = vsel %vm1396_vm9, %v6545_v50, 0.0 }
 0x354   : > { %5143 = vmatmul.msk.bf16.gmra.mxu3 %vm756_vm0, %v6543_v2 }
 0x357   : > { %5055 = vmatpush.xpose.msk.msra.mxu1 %vm756_vm0, %v6553_v3 }
 0x358   : > { %v2421_v42 = vpop.f32.mrf.mxu0  ;;  %5121 = vmatmul.msk.bf16.gmra.mxu2 %vm2361_vm11, %v6609_v9 }
 0x359   : > { %v2422_v19 = vadd.f32 %v6579_v12, %v2421_v42  ;;  %v5693_v42 = vld [vmem:[%s5807_s16 + $0xb0] sm:$0xff] }
 0x35a   : > { %v6623_v7 = vpop.permute.xlu2 %1802 }
 0x35b   : > { %v2500_v41 = vmax.f32 %v2422_v19, 0.0  ;;  %v6637_v24 = vpop.permute.xlu0 %1800 }
 0x35d   : > { %v2669_v40 = vpack.c.bf16 %v2500_v41, %v2499_v30  ;;  %v5694_v30 = vld [vmem:[%s5807_s16 + $0xb8] sm:$0xff] }
 0x35e   : > { %v6717_v19 = vpack.c.bf16 %v5694_v30, %v5693_v42 }
 0x35f   : > { %5160 = vmatmul.msk.bf16.vlgmr.msra.gmra.mxu0 %vm756_vm0, %v2669_v40 }
 0x360   : > { %v2424_v37 = vpop.f32.mrf.mxu0 }
 0x361   : > { %1416 = vadd.xlane.f32.xlu1 %v6567_v11  ;;  %v2425_v56 = vadd.f32 %v6579_v12, %v2424_v37 }
 0x362   : > { %v6668_v49 = vpop.permute.xlu2 %1796 }
 0x363   : > { %v2501_v33 = vmax.f32 %v2425_v56, 0.0 }
 0x364   : > { %1414 = vadd.xlane.f32.xlu0 %v6574_v17  ;;  %5144 = vmatmul.msk.bf16.gmra.mxu3 %vm756_vm0, %v6564_v8 }
 0x367   : > { %v2589_v16 = vpop.f32.mrf.mxu3 }
 0x368   : > { %v2426_v44 = vpop.f32.mrf.mxu0  ;;  %5122 = vmatmul.msk.bf16.gmra.mxu2 %vm2361_vm11, %v6666_v52  ;;  %v6696_v6 = vadd.f32 %v6684_v39, %v2589_v16 }
 0x369   : > { %1422 = vadd.xlane.f32.xlu1 %v6589_v27  ;;  %v2427_v1 = vadd.f32 %v6579_v12, %v2426_v44 }
 0x36a   : > { %8813 = vst [vmem:[#allocation2_spill] sm:$0xff] %v6696_v6 }
 0x36b   : > { %1418 = vadd.xlane.f32.xlu2 %v6594_v0  ;;  %v2502_v21 = vmax.f32 %v2427_v1, 0.0 }
 0x36c   : > { %1420 = vadd.xlane.f32.xlu0 %v6598_v13 }
 0x36d   : > { %v6611_v36 = vpop.permute.xlu1 %1804  ;;  %v2670_v59 = vpack.c.bf16 %v2502_v21, %v2501_v33  ;;  %v6735_v21 = vpack.c.bf16 %v5695_v5, %v5696_v23  ;;  %v5697_v23 = vld [vmem:[%s5807_s16 + $0xd8] sm:$0xff] }
 0x36e   : > { %5056 = vmatpush.xpose.msk.msra.mxu1 %vm756_vm0, %v6611_v36 }
 0x36f   : > { %5161 = vmatmul.msk.bf16.gmra.mxu0 %vm756_vm0, %v2670_v59  ;;  %v2591_v61 = vpop.f32.mrf.mxu3 }
 0x370   : > { %v6700_v53 = vadd.f32 %v6684_v39, %v2591_v61 }
 0x371   : > { %1428 = vadd.xlane.f32.xlu1 %v6618_v48 }
 0x372   : > { %5057 = vmatpush.xpose.msk.msra.mxu1 %vm756_vm0, %v6623_v7  ;;  %8814 = vst [vmem:[#allocation3_spill] sm:$0xff] %v6700_v53 }
 0x373   : > { %1424 = vadd.xlane.f32.xlu2 %v6630_v46 }
 0x374   : > { %1426 = vadd.xlane.f32.xlu0 %v6634_v43  ;;  %5145 = vmatmul.msk.bf16.gmra.mxu3 %vm756_vm0, %v6609_v9 }
 0x375   : > { %v6648_v51 = vpop.permute.xlu1 %1798 }
 0x376   : > { %5058 = vmatpush.xpose.msk.msra.mxu1 %vm756_vm0, %v6637_v24 }
 0x377   : > { %v2594_v60 = vpop.f32.mrf.mxu3 }
 0x378   : > { %5123 = vmatmul.msk.bf16.gmra.mxu2 %vm2361_vm11, %v6717_v19  ;;  %v6722_v41 = vadd.f32 %v6684_v39, %v2594_v60 }
 0x379   : > { %1434 = vadd.xlane.f32.xlu1 %v6645_v38 }
 0x37a   : > { %5059 = vmatpush.xpose.msk.msra.mxu1 %vm756_vm0, %v6648_v51  ;;  %v2429_v50 = vpop.f32.mrf.mxu0  ;;  %8815 = vst [vmem:[#allocation4_spill] sm:$0xff] %v6722_v41 }
 0x37b   : > { %1430 = vadd.xlane.f32.xlu2 %v6654_v28  ;;  %v2430_v40 = vadd.f32 %v6579_v12, %v2429_v50 }
 0x37c   : > { %1432 = vadd.xlane.f32.xlu0 %v6658_v62 }
 0x37d   : > { %v2503_v33 = vmax.f32 %v2430_v40, 0.0 }
 0x37e   : > { %5060 = vmatpush.xpose.msk.msra.mxu1 %vm756_vm0, %v6668_v49 }
 0x37f   : > { %v2596_v20 = vpop.f32.mrf.mxu3 }
 0x380   : > { %v6726_v37 = vadd.f32 %v6684_v39, %v2596_v20 }
 0x381   : > { %1440 = vadd.xlane.f32.xlu1 %v6675_v26 }
 0x382   : > { %8816 = vst [vmem:[#allocation5_spill] sm:$0xff] %v6726_v37  ;;  %v2431_v44 = vpop.f32.mrf.mxu0 }
 0x383   : > { %1436 = vadd.xlane.f32.xlu2 %v6688_v63  ;;  %v2432_v1 = vadd.f32 %v6579_v12, %v2431_v44 }
 0x384   : > { %1438 = vadd.xlane.f32.xlu0 %v6692_v47  ;;  %5146 = vmatmul.msk.bf16.gmra.mxu3 %vm756_vm0, %v6666_v52 }
 0x385   : > { %v2504_v16 = vmax.f32 %v2432_v1, 0.0 }
 0x387   : > { %v2599_v59 = vpop.f32.mrf.mxu3  ;;  %v2671_v61 = vpack.c.bf16 %v2504_v16, %v2503_v33  ;;  %v5698_v16 = vld [vmem:[%s5807_s16 + $0xd0] sm:$0xff] }
 0x388   : > { %5124 = vmatmul.msk.bf16.gmra.mxu2 %vm2361_vm11, %v6735_v21  ;;  %v6741_v30 = vadd.f32 %v6684_v39, %v2599_v59  ;;  %v6754_v59 = vpack.c.bf16 %v5697_v23, %v5698_v16 }
 0x389   : > { %5162 = vmatmul.msk.bf16.gmra.mxu0 %vm756_vm0, %v2671_v61 }
 0x38a   : > { %v2434_v42 = vpop.f32.mrf.mxu0  ;;  %8817 = vst [vmem:[#allocation6_spill] sm:$0xff] %v6741_v30 }
 0x38b   : > { %1442 = vadd.xlane.f32.xlu2 %v6706_v32  ;;  %v2435_v50 = vadd.f32 %v6579_v12, %v2434_v42 }
 0x38c   : > { %1444 = vadd.xlane.f32.xlu0 %v6710_v10 }
 0x38d   : > { %v2505_v33 = vmax.f32 %v2435_v50, 0.0 }
 0x38f   : > { %v2601_v60 = vpop.f32.mrf.mxu3 }
 0x390   : > { %v6745_v20 = vadd.f32 %v6684_v39, %v2601_v60 }
 0x392   : > { %8818 = vst [vmem:[#allocation7_spill] sm:$0xff] %v6745_v20  ;;  %v2436_v44 = vpop.f32.mrf.mxu0 }
 0x393   : > { %v2437_v1 = vadd.f32 %v6579_v12, %v2436_v44 }
 0x394   : > { %5147 = vmatmul.msk.bf16.gmra.mxu3 %vm756_vm0, %v6717_v19 }
 0x395   : > { %v2506_v61 = vmax.f32 %v2437_v1, 0.0 }
 0x397   : > { %v2672_v42 = vpack.c.bf16 %v2506_v61, %v2505_v33  ;;  %v2604_v61 = vpop.f32.mrf.mxu3 }
 0x398   : > { %5125 = vmatmul.msk.bf16.gmra.mxu2 %vm2361_vm11, %v6754_v59 }
 0x399   : > { %5163 = vmatmul.msk.bf16.gmra.mxu0 %vm756_vm0, %v2672_v42 }
 0x39a   : > { %v2439_v50 = vpop.f32.mrf.mxu0 }
 0x39b   : > { %v2440_v40 = vadd.f32 %v6579_v12, %v2439_v50  ;;  %v6770_v50 = vadd.f32 %v6684_v39, %v2604_v61 }
 0x39c   : > { %v1791_v44 = vpop.permute.xlu2 %1790 }
 0x39d   : > { %v2507_v16 = vmax.f32 %v2440_v40, 0.0  ;;  %8819 = vst [vmem:[#allocation8_spill] sm:$0xff] %v6770_v50  ;;  %v5701_v50 = vld [vmem:[%s5807_s16 + $0xf8] sm:$0xff] }
 0x3a2   : > { %v2441_v23 = vpop.f32.mrf.mxu0 }
 0x3a3   : > { %v2442_v33 = vadd.f32 %v6579_v12, %v2441_v23 }
 0x3a4   : > { %5148 = vmatmul.msk.bf16.gmra.mxu3 %vm756_vm0, %v6735_v21 }
 0x3a5   : > { %v2508_v1 = vmax.f32 %v2442_v33, 0.0 }
 0x3a7   : > { %v2673_v42 = vpack.c.bf16 %v2508_v1, %v2507_v16  ;;  %v5699_v1 = vld [vmem:[%s5807_s16 + $0xe0] sm:$0xff] }
 0x3a9   : > { %v1793_v60 = vpop.permute.xlu1 %1792  ;;  %5164 = vmatmul.msk.bf16.gmra.mxu0 %vm756_vm0, %v2673_v42 }
 0x3aa   : > { %v2444_v56 = vpop.f32.mrf.mxu0 }
 0x3ab   : > { %v2445_v40 = vadd.f32 %v6579_v12, %v2444_v56 }
 0x3ac   : > { %v1795_v5 = vpop.permute.xlu0 %1794 }
 0x3ad   : > { %5061 = vmatpush.xpose.msk.msra.mxu1 %vm756_vm0, %v1795_v5  ;;  %v2509_v42 = vmax.f32 %v2445_v40, 0.0 }
 0x3b1   : > { %5062 = vmatpush.xpose.msk.msra.mxu1 %vm756_vm0, %v1793_v60 }
 0x3b2   : > { %v2446_v16 = vpop.f32.mrf.mxu0 }
 0x3b3   : > { %v2447_v61 = vadd.f32 %v6579_v12, %v2446_v16 }
 0x3b4   : > { %5149 = vmatmul.msk.bf16.gmra.mxu3 %vm756_vm0, %v6754_v59 }
 0x3b5   : > { %5063 = vmatpush.xpose.msk.msra.mxu1 %vm756_vm0, %v1791_v44  ;;  %v2510_v56 = vmax.f32 %v2447_v61, 0.0 }
 0x3b8   : > { %5064 = vmatmul.msk.f32.vlgmr.msra.gmra.mxu1 %vm756_vm0, %v1791_v44  ;;  %v2606_v44 = vpop.f32.mrf.mxu3 }
 0x3b9   : > { %v6775_v23 = vadd.f32 %v6684_v39, %v2606_v44  ;;  %v2674_v44 = vpack.c.bf16 %v2510_v56, %v2509_v42 }
 0x3bb   : > { %8820 = vst [vmem:[#allocation9_spill] sm:$0xff] %v6775_v23  ;;  %5165 = vmatmul.msk.bf16.gmra.mxu0 %vm756_vm0, %v2674_v44 }
 0x3c0   : > { %5065 = vmatmul.msk.f32.gmra.mxu1 %vm756_vm0, %v1793_v60  ;;  %v5700_v60 = vld [vmem:[%s5807_s16 + $0xe8] sm:$0xff]  ;;  %v2609_v33 = vpop.f32.mrf.mxu3 }
 0x3c1   : > { %v6781_v4 = vpack.c.bf16 %v5700_v60, %v5699_v1  ;;  %v6793_v16 = vadd.f32 %v6684_v39, %v2609_v33 }
 0x3c3   : > { %5126 = vmatmul.msk.bf16.gmra.mxu2 %vm2361_vm11, %v6781_v4  ;;  %8821 = vst [vmem:[#allocation10_spill] sm:$0xff] %v6793_v16 }
 0x3c4   : > { %5150 = vmatmul.msk.bf16.gmra.mxu3 %vm756_vm0, %v6781_v4 }
 0x3c8   : > { %5066 = vmatmul.msk.f32.gmra.mxu1 %vm756_vm0, %v1795_v5  ;;  %v2449_v5 = vpop.f32.mrf.mxu2  ;;  %v2611_v1 = vpop.f32.mrf.mxu3 }
 0x3c9   : > { %v2450_v40 = vadd.f32 %v6579_v12, %v2449_v5  ;;  %v6798_v60 = vadd.f32 %v6684_v39, %v2611_v1  ;;  %v5702_v5 = vld [vmem:[%s5807_s16 + $0xf0] sm:$0xff]  ;;  %v5370_v1 = vld [vmem:[%s8769_s5 + $0x38] sm:$0xff] }
 0x3ca   : > { %v6805_v23 = vpack.c.bf16 %v5701_v50, %v5702_v5  ;;  %3040 = vmatpush.bf16.msrb.mxu3 %v5370_v1 }
 0x3cb   : > { %8822 = vst [vmem:[#allocation11_spill] sm:$0xff] %v6798_v60  ;;  %v2511_v42 = vmax.f32 %v2450_v40, 0.0 }
 0x3d0   : > { %5067 = vmatmul.msk.f32.gmra.mxu1 %vm756_vm0, %v6668_v49  ;;  %v2451_v61 = vpop.f32.mrf.mxu2 }
 0x3d1   : > { %v2452_v56 = vadd.f32 %v6579_v12, %v2451_v61 }
 0x3d3   : > { %v2512_v44 = vmax.f32 %v2452_v56, 0.0  ;;  %5127 = vmatmul.msk.bf16.gmra.mxu2 %vm2361_vm11, %v6805_v23 }
 0x3d4   : > { %5151 = vmatmul.msk.bf16.gmra.mxu3 %vm756_vm0, %v6805_v23 }
 0x3d5   : > { %v2675_v33 = vpack.c.bf16 %v2512_v44, %v2511_v42  ;;  %v5369_v44 = vld [vmem:[%s8769_s5 + $0x30] sm:$0xff] }
 0x3d6   : > { %3041 = vmatpush.bf16.msrb.mxu3 %v5369_v44 }
 0x3d7   : > { %5166 = vmatmul.msk.bf16.gmra.mxu0 %vm756_vm0, %v2675_v33  ;;  %v5368_v33 = vld [vmem:[%s8769_s5 + $0x28] sm:$0xff] }
 0x3d8   : > { %5068 = vmatmul.msk.f32.gmra.mxu1 %vm756_vm0, %v6648_v51  ;;  %v2614_v51 = vpop.f32.mrf.mxu3  ;;  %v2454_v40 = vpop.f32.mrf.mxu2 }
 0x3d9   : > { %v6820_v42 = vadd.f32 %v6684_v39, %v2614_v51 }
 0x3da   : > { %3042 = vmatpush.bf16.msrb.mxu3 %v5368_v33 }
 0x3db   : > { %8823 = vst [vmem:[#allocation12_spill] sm:$0xff] %v6820_v42 }
 0x3dc   : > { %v2759_v49 = vpop.f32.mrf.mxu0 }
 0x3e0   : > { %5069 = vmatmul.msk.f32.gmra.mxu1 %vm756_vm0, %v6637_v24  ;;  %v2616_v50 = vpop.f32.mrf.mxu3  ;;  %v2456_v61 = vpop.f32.mrf.mxu2  ;;  %v2455_v24 = vadd.f32 %v6579_v12, %v2454_v40 }
 0x3e1   : > { %v6823_v56 = vadd.f32 %v6684_v39, %v2616_v50  ;;  %v2457_v5 = vadd.f32 %v6579_v12, %v2456_v61  ;;  %v5366_v61 = vld [vmem:[%s8769_s5 + $0x18] sm:$0xff] }
 0x3e2   : > { %v2513_v51 = vmax.f32 %v2455_v24, 0.0 }
 0x3e3   : > { %8824 = vst [vmem:[#allocation13_spill] sm:$0xff] %v6823_v56  ;;  %v2514_v40 = vmax.f32 %v2457_v5, 0.0 }
 0x3e5   : > { %v2676_v42 = vpack.c.bf16 %v2514_v40, %v2513_v51  ;;  %v2761_v51 = vpop.f32.mrf.mxu0 }
 0x3e7   : > { %5167 = vmatmul.msk.bf16.gmra.mxu0 %vm756_vm0, %v2676_v42 }
 0x3e8   : > { %5070 = vmatmul.msk.f32.gmra.mxu1 %vm756_vm0, %v6623_v7  ;;  %v2619_v1 = vpop.f32.mrf.mxu3  ;;  %v2459_v50 = vpop.f32.mrf.mxu2  ;;  %v5367_v7 = vld [vmem:[%s8769_s5 + $0x20] sm:$0xff] }
 0x3e9   : > { %3043 = vmatpush.bf16.msrb.mxu3 %v5367_v7  ;;  %v2460_v5 = vadd.f32 %v6579_v12, %v2459_v50  ;;  %v5365_v7 = vld [vmem:[%s8769_s5 + $0x10] sm:$0xff]  ;;  %v6864_v50 = vld [vmem:[%s8775_s11 + $0x5] ss:$0 sm:$0xff] }
 0x3eb   : > { %v2515_v40 = vmax.f32 %v2460_v5, 0.0  ;;  %v2762_v5 = vadd.f32 %v6864_v50, %v2761_v51 }
 0x3ed   : > { %3044 = vmatpush.bf16.msrb.mxu3 %v5366_v61  ;;  %v5364_v61 = vld [vmem:[%s8769_s5 + $0x8] sm:$0xff] }
 0x3f0   : > { %5071 = vmatmul.msk.f32.gmra.mxu1 %vm756_vm0, %v6611_v36  ;;  %v2621_v24 = vpop.f32.mrf.mxu3  ;;  %v6849_v36 = vadd.f32 %v6684_v39, %v2619_v1  ;;  %v2461_v44 = vpop.f32.mrf.mxu2 }
 0x3f1   : > { %v6853_v33 = vadd.f32 %v6684_v39, %v2621_v24  ;;  %v2462_v42 = vadd.f32 %v6579_v12, %v2461_v44  ;;  %3045 = vmatpush.bf16.msrb.mxu3 %v5365_v7  ;;  %v2764_v7 = vpop.f32.mrf.mxu0 }
 0x3f2   : > { %8825 = vst [vmem:[#allocation14_spill] sm:$0xff] %v6849_v36 }
 0x3f3   : > { %8826 = vst [vmem:[#allocation15_spill] sm:$0xff] %v6853_v33  ;;  %v2516_v1 = vmax.f32 %v2462_v42, 0.0  ;;  %v5363_v42 = vld [vmem:[%s8769_s5] sm:$0xff] }
 0x3f5   : > { %v2677_v56 = vpack.c.bf16 %v2516_v1, %v2515_v40  ;;  %3046 = vmatpush.bf16.msrb.mxu3 %v5364_v61  ;;  %v5374_v40 = vld [vmem:[%s8770_s6 + $0x18] sm:$0xff] }
 0x3f6   : > { %2907 = vmatpush.bf16.msrb.mxu1 %v5374_v40 }
 0x3f7   : > { %5168 = vmatmul.msk.bf16.gmra.mxu0 %vm756_vm0, %v2677_v56 }
 0x3f8   : > { %5072 = vmatmul.msk.f32.gmra.mxu1 %vm756_vm0, %v6553_v3  ;;  %v2624_v24 = vpop.f32.mrf.mxu3  ;;  %v2464_v44 = vpop.f32.mrf.mxu2  ;;  %v2760_v3 = vadd.f32 %v6864_v50, %v2759_v49 }
 0x3f9   : > { %v6878_v33 = vadd.f32 %v6684_v39, %v2624_v24  ;;  %3047 = vmatpush.bf16.msrb.mxu3 %v5363_v42  ;;  %v2465_v1 = vadd.f32 %v6579_v12, %v2464_v44 }
 0x3fa   : > { %v2839_v36 = vpack.c.bf16 %v2762_v5, %v2760_v3  ;;  %v2766_v5 = vpop.f32.mrf.mxu0 }
 0x3fb   : > { %8827 = vst [vmem:[#allocation16_spill] sm:$0xff] %v6878_v33  ;;  %v2517_v61 = vmax.f32 %v2465_v1, 0.0  ;;  %v2767_v40 = vadd.f32 %v6864_v50, %v2766_v5 }
 0x3fc   : > { %3048 = vmatmul.bf16.vlgmr.msrb.gmra.mxu3 %v2839_v36  ;;  %v5372_v36 = vld [vmem:[%s8770_s6 + $0x8] sm:$0xff] }
 0x400   : > { %5073 = vmatmul.msk.f32.gmra.mxu1 %vm756_vm0, %v6549_v14  ;;  %v2626_v14 = vpop.f32.mrf.mxu3  ;;  %v2466_v51 = vpop.f32.mrf.mxu2 }
 0x401   : > { %v6883_v49 = vadd.f32 %v6684_v39, %v2626_v14  ;;  %v2467_v56 = vadd.f32 %v6579_v12, %v2466_v51  ;;  %v2765_v51 = vadd.f32 %v6864_v50, %v2764_v7 }
 0x403   : > { %8828 = vst [vmem:[#allocation17_spill] sm:$0xff] %v6883_v49  ;;  %v2518_v24 = vmax.f32 %v2467_v56, 0.0  ;;  %v2840_v1 = vpack.c.bf16 %v2767_v40, %v2765_v51  ;;  %v5371_v56 = vld [vmem:[%s8770_s6] sm:$0xff] }
 0x405   : > { %v2678_v14 = vpack.c.bf16 %v2518_v24, %v2517_v61 }
 0x406   : > { %v2769_v51 = vpop.f32.mrf.mxu0 }
 0x407   : > { %5169 = vmatmul.msk.bf16.gmra.mxu0 %vm756_vm0, %v2678_v14 }
 0x408   : > { %5074 = vmatmul.msk.f32.gmra.mxu1 %vm756_vm0, %v6535_v35  ;;  %v5373_v35 = vld [vmem:[%s8770_s6 + $0x10] sm:$0xff]  ;;  %v2629_v42 = vpop.f32.mrf.mxu3  ;;  %v2469_v44 = vpop.f32.mrf.mxu2 }
 0x409   : > { %2908 = vmatpush.bf16.msrb.mxu1 %v5373_v35  ;;  %v2470_v24 = vadd.f32 %v6579_v12, %v2469_v44 }
 0x40b   : > { %v2519_v14 = vmax.f32 %v2470_v24, 0.0 }
 0x40c   : > { %3053 = vmatmul.bf16.gmra.mxu3 %v2840_v1 }
 0x40d   : > { %2909 = vmatpush.bf16.msrb.mxu1 %v5372_v36 }
 0x40e   : > { %v2771_v1 = vpop.f32.mrf.mxu0 }
 0x40f   : > { %v2772_v36 = vadd.f32 %v6864_v50, %v2771_v1 }
 0x410   : > { %5075 = vmatmul.msk.f32.gmra.mxu1 %vm756_vm0, %v6531_v15  ;;  %v6907_v15 = vadd.f32 %v6684_v39, %v2629_v42  ;;  %v2631_v35 = vpop.f32.mrf.mxu3  ;;  %v2471_v61 = vpop.f32.mrf.mxu2 }
 0x411   : > { %2910 = vmatpush.bf16.msrb.mxu1 %v5371_v56  ;;  %v6912_v7 = vadd.f32 %v6684_v39, %v2631_v35  ;;  %v2472_v5 = vadd.f32 %v6579_v12, %v2471_v61  ;;  %v2770_v35 = vadd.f32 %v6864_v50, %v2769_v51 }
 0x412   : > { %8829 = vst [vmem:[#allocation18_spill] sm:$0xff] %v6907_v15 }
 0x413   : > { %8830 = vst [vmem:[#allocation19_spill] sm:$0xff] %v6912_v7  ;;  %v2520_v42 = vmax.f32 %v2472_v5, 0.0 }
 0x415   : > { %v2679_v56 = vpack.c.bf16 %v2520_v42, %v2519_v14  ;;  %v2841_v14 = vpack.c.bf16 %v2772_v36, %v2770_v35 }
 0x416   : > { %v2774_v3 = vpop.f32.mrf.mxu0 }
 0x417   : > { %5170 = vmatmul.msk.bf16.gmra.mxu0 %vm756_vm0, %v2679_v56  ;;  %v2775_v7 = vadd.f32 %v6864_v50, %v2774_v3 }
 0x418   : > { %5076 = vmatmul.msk.f32.gmra.mxu1 %vm756_vm0, %v6522_v57  ;;  %v2634_v40 = vpop.f32.mrf.mxu3  ;;  %v2474_v57 = vpop.f32.mrf.mxu2 }
 0x419   : > { %v6923_v44 = vadd.f32 %v6684_v39, %v2634_v40  ;;  %v2475_v5 = vadd.f32 %v6579_v12, %v2474_v57 }
 0x41b   : > { %8831 = vst [vmem:[#allocation20_spill] sm:$0xff] %v6923_v44  ;;  %v2521_v40 = vmax.f32 %v2475_v5, 0.0 }
 0x41c   : > { %3058 = vmatmul.bf16.gmra.mxu3 %v2841_v14 }
 0x41e   : > { %v2776_v57 = vpop.f32.mrf.mxu0 }
 0x41f   : > { %v2777_v5 = vadd.f32 %v6864_v50, %v2776_v57 }
 0x420   : > { %5077 = vmatmul.msk.f32.gmra.mxu1 %vm756_vm0, %v6511_v58  ;;  %v2636_v61 = vpop.f32.mrf.mxu3  ;;  %v2476_v58 = vpop.f32.mrf.mxu2 }
 0x421   : > { %v6929_v24 = vadd.f32 %v6684_v39, %v2636_v61  ;;  %v2477_v42 = vadd.f32 %v6579_v12, %v2476_v58 }
 0x423   : > { %8832 = vst [vmem:[#allocation21_spill] sm:$0xff] %v6929_v24  ;;  %v2522_v56 = vmax.f32 %v2477_v42, 0.0  ;;  %v2842_v42 = vpack.c.bf16 %v2777_v5, %v2775_v7 }
 0x425   : > { %v2680_v61 = vpack.c.bf16 %v2522_v56, %v2521_v40 }
 0x427   : > { %5171 = vmatmul.msk.bf16.gmra.mxu0 %vm756_vm0, %v2680_v61 }
 0x428   : > { %5078 = vmatmul.msk.f32.gmra.mxu1 %vm756_vm0, %v6497_v45  ;;  %v2639_v1 = vpop.f32.mrf.mxu3  ;;  %v2479_v45 = vpop.f32.mrf.mxu2 }
 0x429   : > { %v6940_v36 = vadd.f32 %v6684_v39, %v2639_v1  ;;  %v2480_v14 = vadd.f32 %v6579_v12, %v2479_v45 }
 0x42b   : > { %8833 = vst [vmem:[#allocation22_spill] sm:$0xff] %v6940_v36  ;;  %v2523_v1 = vmax.f32 %v2480_v14, 0.0 }
 0x42c   : > { %3063 = vmatmul.bf16.gmra.mxu3 %v2842_v42 }
 0x430   : > { %5079 = vmatmul.msk.f32.gmra.mxu1 %vm756_vm0, %v6461_v25  ;;  %v2641_v58 = vpop.f32.mrf.mxu3  ;;  %v2481_v3 = vpop.f32.mrf.mxu2 }
 0x431   : > { %v6949_v25 = vadd.f32 %v6684_v39, %v2641_v58  ;;  %v2482_v40 = vadd.f32 %v6579_v12, %v2481_v3 }
 0x433   : > { %8834 = vst [vmem:[#allocation23_spill] sm:$0xff] %v6949_v25  ;;  %v2524_v61 = vmax.f32 %v2482_v40, 0.0 }
 0x435   : > { %v1871_v15 = vpop.f32.mrf.mxu1  ;;  %v2681_v44 = vpack.c.bf16 %v2524_v61, %v2523_v1 }
 0x436   : > { %vm1919_vm12 = vcmp.gt.f32.partialorder %v1871_v15, 0.1 }
 0x437   : > { %v6942_v35 = vsel %vm1919_vm12, %v1871_v15, 0.0  ;;  %5172 = vmatmul.msk.bf16.gmra.mxu0 %vm756_vm0, %v2681_v44 }
 0x438   : > { %5192 = vmatmul.msk.bf16.vlgmr.msrb.gmra.mxu1 %vm2361_vm11, %v6393_v31  ;;  %1951 = vadd.xlane.f32.xlu0 %v6942_v35  ;;  %v2779_v31 = vpop.f32.mrf.mxu0  ;;  %v2644_v57 = vpop.f32.mrf.mxu3 }
 0x439   : > { %v2484_v51 = vpop.f32.mrf.mxu2  ;;  %v2780_v24 = vadd.f32 %v6864_v50, %v2779_v31  ;;  %v6962_v7 = vadd.f32 %v6684_v39, %v2644_v57 }
 0x43a   : > { %v2485_v40 = vadd.f32 %v6579_v12, %v2484_v51 }
 0x43b   : > { %8835 = vst [vmem:[#allocation24_spill] sm:$0xff] %v6962_v7 }
 0x43c   : > { %v2525_v57 = vmax.f32 %v2485_v40, 0.0 }
 0x43d   : > { %v6955_v56 = vpop.f32.mrf.mxu1 }
 0x43e   : > { %vm1920_vm3 = vcmp.gt.f32.partialorder %v6955_v56, 0.1 }
 0x440   : > { %v2781_v45 = vpop.f32.mrf.mxu0  ;;  %v2646_v5 = vpop.f32.mrf.mxu3 }
 0x441   : > { %v2782_v3 = vadd.f32 %v6864_v50, %v2781_v45  ;;  %v6968_v14 = vadd.f32 %v6684_v39, %v2646_v5  ;;  %v2486_v42 = vpop.f32.mrf.mxu2 }
 0x442   : > { %v2487_v61 = vadd.f32 %v6579_v12, %v2486_v42 }
 0x443   : > { %8836 = vst [vmem:[#allocation25_spill] sm:$0xff] %v6968_v14  ;;  %v2843_v1 = vpack.c.bf16 %v2782_v3, %v2780_v24 }
 0x444   : > { %v2526_v15 = vmax.f32 %v2487_v61, 0.0 }
 0x445   : > { %v6957_v58 = vpop.f32.mrf.mxu1  ;;  %3068 = vmatmul.bf16.gmra.mxu3 %v2843_v1 }
 0x446   : > { %v2682_v25 = vpack.c.bf16 %v2526_v15, %v2525_v57  ;;  %vm1921_vm6 = vcmp.gt.f32.partialorder %v6957_v58, 0.1 }
 0x448   : > { %5193 = vmatmul.msk.bf16.gmra.mxu1 %vm2361_vm11, %v6421_v55  ;;  %v2784_v45 = vpop.f32.mrf.mxu0  ;;  %v2649_v55 = vpop.f32.mrf.mxu3  ;;  %5173 = vmatmul.msk.bf16.gmra.mxu0 %vm756_vm0, %v2682_v25 }
 0x449   : > { %v2489_v5 = vpop.f32.mrf.mxu2  ;;  %v2785_v24 = vadd.f32 %v6864_v50, %v2784_v45  ;;  %v6982_v3 = vadd.f32 %v6684_v39, %v2649_v55 }
 0x44b   : > { %8837 = vst [vmem:[#allocation26_spill] sm:$0xff] %v6982_v3 }
 0x44d   : > { %v1880_v31 = vpop.f32.mrf.mxu1 }
 0x44e   : > { %vm1922_vm13 = vcmp.gt.f32.partialorder %v1880_v31, 0.1 }
 0x44f   : > { %v6974_v36 = vsel %vm1922_vm13, %v1880_v31, 0.0  ;;  %v2490_v31 = vadd.f32 %v6579_v12, %v2489_v5 }
 0x450   : > { %1957 = vadd.xlane.f32.xlu0 %v6974_v36  ;;  %v2786_v42 = vpop.f32.mrf.mxu0  ;;  %v2651_v40 = vpop.f32.mrf.mxu3 }
 0x451   : > { %v2787_v1 = vadd.f32 %v6864_v50, %v2786_v42  ;;  %v6988_v61 = vadd.f32 %v6684_v39, %v2651_v40  ;;  %v2491_v15 = vpop.f32.mrf.mxu2  ;;  %v2527_v44 = vmax.f32 %v2490_v31, 0.0 }
 0x452   : > { %v2492_v45 = vadd.f32 %v6579_v12, %v2491_v15 }
 0x453   : > { %8838 = vst [vmem:[#allocation27_spill] sm:$0xff] %v6988_v61  ;;  %v2844_v57 = vpack.c.bf16 %v2787_v1, %v2785_v24 }
 0x454   : > { %v2528_v42 = vmax.f32 %v2492_v45, 0.0 }
 0x455   : > { %v6977_v51 = vpop.f32.mrf.mxu1  ;;  %3073 = vmatmul.bf16.gmra.mxu3 %v2844_v57 }
 0x456   : > { %v2683_v33 = vpack.c.bf16 %v2528_v42, %v2527_v44  ;;  %vm1923_vm5 = vcmp.gt.f32.partialorder %v6977_v51, 0.1 }
 0x458   : > { %5194 = vmatmul.msk.bf16.gmra.mxu1 %vm2361_vm11, %v6467_v29  ;;  %v2789_v7 = vpop.f32.mrf.mxu0  ;;  %v2654_v14 = vpop.f32.mrf.mxu3  ;;  %5174 = vmatmul.msk.bf16.gmra.mxu0 %vm756_vm0, %v2683_v33 }
 0x459   : > { %v2494_v29 = vpop.f32.mrf.mxu2  ;;  %v2790_v49 = vadd.f32 %v6864_v50, %v2789_v7  ;;  %v6999_v5 = vadd.f32 %v6684_v39, %v2654_v14 }
 0x45a   : > { %v2495_v33 = vadd.f32 %v6579_v12, %v2494_v29 }
 0x45b   : > { %8839 = vst [vmem:[#allocation28_spill] sm:$0xff] %v6999_v5 }
 0x45d   : > { %v6994_v55 = vpop.f32.mrf.mxu1 }
 0x45e   : > { %vm1924_vm8 = vcmp.gt.f32.partialorder %v6994_v55, 0.1 }
 0x460   : > { %v2791_v24 = vpop.f32.mrf.mxu0  ;;  %v2656_v15 = vpop.f32.mrf.mxu3 }
 0x461   : > { %v2792_v31 = vadd.f32 %v6864_v50, %v2791_v24  ;;  %v7008_v44 = vadd.f32 %v6684_v39, %v2656_v15  ;;  %v2496_v7 = vpop.f32.mrf.mxu2 }
 0x462   : > { %v2497_v14 = vadd.f32 %v6579_v12, %v2496_v7 }
 0x463   : > { %8840 = vst [vmem:[#allocation29_spill] sm:$0xff] %v7008_v44  ;;  %v2845_v57 = vpack.c.bf16 %v2792_v31, %v2790_v49 }
 0x464   : > { %v2530_v24 = vmax.f32 %v2497_v14, 0.0 }
 0x465   : > { %v1889_v40 = vpop.f32.mrf.mxu1  ;;  %3078 = vmatmul.bf16.gmra.mxu3 %v2845_v57 }
 0x466   : > { %vm1925_vm14 = vcmp.gt.f32.partialorder %v1889_v40, 0.1 }
 0x467   : > { %v7001_v1 = vsel %vm1925_vm14, %v1889_v40, 0.0  ;;  %v2529_v40 = vmax.f32 %v2495_v33, 0.0 }
 0x468   : > { %5195 = vmatmul.msk.bf16.gmra.mxu1 %vm2361_vm11, %v6479_v22  ;;  %1963 = vadd.xlane.f32.xlu0 %v7001_v1  ;;  %v2659_v22 = vpop.f32.mrf.mxu3  ;;  %v2794_v3 = vpop.f32.mrf.mxu0 }
 0x469   : > { %v2684_v25 = vpack.c.bf16 %v2530_v24, %v2529_v40  ;;  %v7020_v29 = vadd.f32 %v6684_v39, %v2659_v22  ;;  %v2795_v15 = vadd.f32 %v6864_v50, %v2794_v3 }
 0x46b   : > { %5175 = vmatmul.msk.bf16.gmra.mxu0 %vm756_vm0, %v2684_v25  ;;  %8841 = vst [vmem:[#allocation30_spill] sm:$0xff] %v7020_v29 }
 0x46d   : > { %v7014_v42 = vpop.f32.mrf.mxu1 }
 0x46e   : > { %vm1926_vm7 = vcmp.gt.f32.partialorder %v7014_v42, 0.1 }
 0x470   : > { %v2661_v49 = vpop.f32.mrf.mxu3  ;;  %v2796_v7 = vpop.f32.mrf.mxu0 }
 0x471   : > { %v7025_v12 = vadd.f32 %v6684_v39, %v2661_v49  ;;  %v2797_v33 = vadd.f32 %v6864_v50, %v2796_v7 }
 0x473   : > { %8842 = vst [vmem:[#allocation31_spill] sm:$0xff] %v7025_v12  ;;  %v2846_v25 = vpack.c.bf16 %v2797_v33, %v2795_v15  ;;  %v7084_v12 = vsel %vm1920_vm3, %v6955_v56, 0.0 }
 0x475   : > { %v7016_v61 = vpop.f32.mrf.mxu1  ;;  %3083 = vmatmul.bf16.gmra.mxu3 %v2846_v25 }
 0x476   : > { %vm1927_vm10 = vcmp.gt.f32.partialorder %v7016_v61, 0.1 }
 0x478   : > { %5196 = vmatmul.msk.bf16.gmra.mxu1 %vm2361_vm11, %v6489_v18  ;;  %v2664_v40 = vpop.f32.mrf.mxu3  ;;  %v2799_v18 = vpop.f32.mrf.mxu0 }
 0x479   : > { %v7037_v3 = vadd.f32 %v6684_v39, %v2664_v40  ;;  %v2800_v15 = vadd.f32 %v6864_v50, %v2799_v18 }
 0x47b   : > { %8843 = vst [vmem:[#allocation32_spill] sm:$0xff] %v7037_v3 }
 0x47d   : > { %v1898_v57 = vpop.f32.mrf.mxu1 }
 0x47e   : > { %vm1928_vm15 = vcmp.gt.f32.partialorder %v1898_v57, 0.1 }
 0x47f   : > { %v7031_v14 = vsel %vm1928_vm15, %v1898_v57, 0.0 }
 0x480   : > { %1969 = vadd.xlane.f32.xlu0 %v7031_v14  ;;  %v2666_v22 = vpop.f32.mrf.mxu3  ;;  %v2801_v33 = vpop.f32.mrf.mxu0 }
 0x481   : > { %v7042_v49 = vadd.f32 %v6684_v39, %v2666_v22  ;;  %v2802_v57 = vadd.f32 %v6864_v50, %v2801_v33 }
 0x483   : > { %8844 = vst [vmem:[#allocation33_spill] sm:$0xff] %v7042_v49  ;;  %v2847_v31 = vpack.c.bf16 %v2802_v57, %v2800_v15  ;;  %v5378_v15 = vld [vmem:[%s8771_s7 + $0x18] sm:$0xff] }
 0x484   : > { %3294 = vmatpush.bf16.msrb.mxu2 %v5378_v15  ;;  %v5375_v15 = vld [vmem:[%s8771_s7] sm:$0xff] }
 0x485   : > { %v7034_v24 = vpop.f32.mrf.mxu1  ;;  %3088 = vmatmul.bf16.gmra.mxu3 %v2847_v31 }
 0x486   : > { %vm1929_vm9 = vcmp.gt.f32.partialorder %v7034_v24, 0.1 }
 0x488   : > { %5197 = vmatmul.msk.bf16.gmra.mxu1 %vm2361_vm11, %v6520_v54  ;;  %v3049_v40 = vpop.f32.mrf.mxu3  ;;  %v2804_v45 = vpop.f32.mrf.mxu0 }
 0x489   : > { %v2805_v18 = vadd.f32 %v6864_v50, %v2804_v45 }
 0x48d   : > { %v7048_v25 = vpop.f32.mrf.mxu1 }
 0x48e   : > { %vm1930_vm13 = vcmp.gt.f32.partialorder %v7048_v25, 0.1 }
 0x490   : > { %v3051_v39 = vpop.f32.mrf.mxu3  ;;  %v2806_v22 = vpop.f32.mrf.mxu0 }
 0x491   : > { %v2807_v33 = vadd.f32 %v6864_v50, %v2806_v22  ;;  %v5376_v22 = vld [vmem:[%s8771_s7 + $0x8] sm:$0xff] }
 0x493   : > { %v2848_v31 = vpack.c.bf16 %v2807_v33, %v2805_v18 }
 0x495   : > { %v1907_v29 = vpop.f32.mrf.mxu1  ;;  %3093 = vmatmul.bf16.gmra.mxu3 %v2848_v31 }
 0x496   : > { %vm1931_vm1 = vcmp.gt.f32.partialorder %v1907_v29, 0.1 }
 0x497   : > { %v7050_v54 = vsel %vm1931_vm1, %v1907_v29, 0.0 }
 0x498   : > { %8845 = vst [vmem:[#allocation34_spill] sm:$0xff] %v7050_v54  ;;  %5198 = vmatmul.msk.bf16.gmra.mxu1 %vm2361_vm11, %v6509_v34  ;;  %1975 = vadd.xlane.f32.xlu0 %v7050_v54  ;;  %v7062_v29 = vpop.f32.mrf.mxu3  ;;  %v5377_v34 = vld [vmem:[%s8771_s7 + $0x10] sm:$0xff]  ;;  %v2809_v57 = vpop.f32.mrf.mxu0 }
 0x499   : > { %3295 = vmatpush.bf16.msrb.mxu2 %v5377_v34  ;;  %v2810_v31 = vadd.f32 %v6864_v50, %v2809_v57 }
 0x49d   : > { %v7057_v7 = vpop.f32.mrf.mxu1  ;;  %3296 = vmatpush.bf16.msrb.mxu2 %v5376_v22 }
 0x49e   : > { %vm1932_vm12 = vcmp.gt.f32.partialorder %v7057_v7, 0.1 }
 0x4a0   : > { %v7072_v33 = vpop.f32.mrf.mxu3  ;;  %v2811_v34 = vpop.f32.mrf.mxu0 }
 0x4a1   : > { %v2812_v3 = vadd.f32 %v6864_v50, %v2811_v34  ;;  %3297 = vmatpush.bf16.msrb.mxu2 %v5375_v15 }
 0x4a3   : > { %v2849_v49 = vpack.c.bf16 %v2812_v3, %v2810_v31  ;;  %v7095_v3 = vsel %vm1923_vm5, %v6977_v51, 0.0  ;;  %v7110_v51 = vld [vmem:[%s8775_s11 + $0x6] ss:$0 sm:$0xff] }
 0x4a5   : > { %v1913_v45 = vpop.f32.mrf.mxu1  ;;  %3098 = vmatmul.bf16.gmra.mxu3 %v2849_v49  ;;  %v7103_v49 = vsel %vm1921_vm6, %v6957_v58, 0.0 }
 0x4a6   : > { %vm1933_vm2 = vcmp.gt.f32.partialorder %v1913_v45, 0.1 }
 0x4a7   : > { %v7070_v18 = vsel %vm1933_vm2, %v1913_v45, 0.0 }
 0x4a8   : > { %5199 = vmatmul.msk.bf16.gmra.mxu1 %vm2361_vm11, %v6543_v2  ;;  %1979 = vadd.xlane.f32.xlu1 %v7070_v18  ;;  %v7086_v2 = vpop.f32.mrf.mxu3  ;;  %v2814_v22 = vpop.f32.mrf.mxu0 }
 0x4a9   : > { %v2815_v31 = vadd.f32 %v6864_v50, %v2814_v22  ;;  %v7117_v22 = vsel %vm1926_vm7, %v7014_v42, 0.0 }
 0x4ad   : > { %v1916_v45 = vpop.f32.mrf.mxu1 }
 0x4ae   : > { %vm1934_vm4 = vcmp.gt.f32.partialorder %v1916_v45, 0.1 }
 0x4af   : > { %v7089_v57 = vsel %vm1934_vm4, %v1916_v45, 0.0 }
 0x4b0   : > { %1953 = vadd.xlane.f32.xlu1 %v7084_v12  ;;  %1981 = vadd.xlane.f32.xlu2 %v7089_v57  ;;  %v7097_v56 = vpop.f32.mrf.mxu3  ;;  %v2816_v45 = vpop.f32.mrf.mxu0 }
 0x4b1   : > { %v2817_v5 = vadd.f32 %v6864_v50, %v2816_v45  ;;  %v7124_v45 = vsel %vm1924_vm8, %v6994_v55, 0.0  ;;  %v7137_v55 = vsel %vm1927_vm10, %v7016_v61, 0.0 }
 0x4b3   : > { %v2850_v58 = vpack.c.bf16 %v2817_v5, %v2815_v31 }
 0x4b5   : > { %v2912_v34 = vpop.f32.mrf.mxu1  ;;  %3103 = vmatmul.bf16.gmra.mxu3 %v2850_v58 }
 0x4b6   : > { %v3050_v15 = vadd.f32 %v3049_v40, %v2912_v34 }
 0x4b8   : > { %5200 = vmatmul.msk.bf16.gmra.mxu1 %vm2361_vm11, %v6564_v8  ;;  %1959 = vadd.xlane.f32.xlu1 %v7095_v3  ;;  %v3130_v44 = vadd.f32 %v7110_v51, %v3050_v15  ;;  %v7119_v40 = vpop.f32.mrf.mxu3  ;;  %v2819_v31 = vpop.f32.mrf.mxu0 }
 0x4b9   : > { %1955 = vadd.xlane.f32.xlu2 %v7103_v49 }
 0x4ba   : > { %v3162_v60 = vmax.f32 %v3130_v44, 0.0 }
 0x4bd   : > { %v2914_v8 = vpop.f32.mrf.mxu1 }
 0x4be   : > { %v3052_v16 = vadd.f32 %v3051_v39, %v2914_v8 }
 0x4c0   : > { %v3131_v34 = vadd.f32 %v7110_v51, %v3052_v16  ;;  %1965 = vadd.xlane.f32.xlu1 %v7117_v22  ;;  %v7131_v16 = vsel %vm1929_vm9, %v7034_v24, 0.0  ;;  %v3066_v39 = vpop.f32.mrf.mxu3  ;;  %v2821_v8 = vpop.f32.mrf.mxu0 }
 0x4c1   : > { %1961 = vadd.xlane.f32.xlu2 %v7124_v45  ;;  %8846 = vst [vmem:[#allocation35_spill] sm:$0xff] %v7131_v16  ;;  %v2822_v58 = vadd.f32 %v6864_v50, %v2821_v8 }
 0x4c2   : > { %v3163_v5 = vmax.f32 %v3131_v34, 0.0 }
 0x4c4   : > { %v3194_v15 = vpack.c.bf16 %v3163_v5, %v3162_v60  ;;  %v2820_v60 = vadd.f32 %v6864_v50, %v2819_v31  ;;  %v7148_v5 = vsel %vm1932_vm12, %v7057_v7, 0.0 }
 0x4c5   : > { %v2917_v42 = vpop.f32.mrf.mxu1  ;;  %8847 = vst [vmem:[#allocation36_spill] sm:$0xff] %v7148_v5 }
 0x4c6   : > { %5256 = vmatmul.msk.bf16.vlgmr.msrb.gmra.mxu2 %vm2361_vm11, %v3194_v15  ;;  %v3055_v44 = vadd.f32 %v7062_v29, %v2917_v42  ;;  %v7153_v15 = vsel %vm1930_vm13, %v7048_v25, 0.0 }
 0x4c7   : > { %8848 = vst [vmem:[#allocation37_spill] sm:$0xff] %v7153_v15 }
 0x4c8   : > { %5201 = vmatmul.msk.bf16.gmra.mxu1 %vm2361_vm11, %v6609_v9  ;;  %1971 = vadd.xlane.f32.xlu1 %v7131_v16  ;;  %v2851_v9 = vpack.c.bf16 %v2822_v58, %v2820_v60  ;;  %v3132_v34 = vadd.f32 %v7110_v51, %v3055_v44  ;;  %v3069_v31 = vpop.f32.mrf.mxu3  ;;  %v2824_v8 = vpop.f32.mrf.mxu0 }
 0x4c9   : > { %1967 = vadd.xlane.f32.xlu2 %v7137_v55 }
 0x4ca   : > { %3108 = vmatmul.bf16.gmra.mxu3 %v2851_v9  ;;  %v3164_v42 = vmax.f32 %v3132_v34, 0.0 }
 0x4cd   : > { %v2919_v24 = vpop.f32.mrf.mxu1 }
 0x4ce   : > { %v3057_v61 = vadd.f32 %v7072_v33, %v2919_v24  ;;  %v2825_v33 = vadd.f32 %v6864_v50, %v2824_v8 }
 0x4d0   : > { %v3133_v29 = vadd.f32 %v7110_v51, %v3057_v61  ;;  %1977 = vadd.xlane.f32.xlu1 %v7148_v5  ;;  %v3071_v7 = vpop.f32.mrf.mxu3  ;;  %v2826_v9 = vpop.f32.mrf.mxu0 }
 0x4d1   : > { %1973 = vadd.xlane.f32.xlu2 %v7153_v15  ;;  %v2827_v25 = vadd.f32 %v6864_v50, %v2826_v9 }
 0x4d2   : > { %v3165_v60 = vmax.f32 %v3133_v29, 0.0 }
 0x4d3   : > { %v2852_v30 = vpack.c.bf16 %v2827_v25, %v2825_v33 }
 0x4d4   : > { %v3195_v44 = vpack.c.bf16 %v3165_v60, %v3164_v42 }
 0x4d5   : > { %v2922_v58 = vpop.f32.mrf.mxu1 }
 0x4d6   : > { %5257 = vmatmul.msk.bf16.gmra.mxu2 %vm2361_vm11, %v3195_v44  ;;  %v3060_v24 = vadd.f32 %v7086_v2, %v2922_v58 }
 0x4d8   : > { %5202 = vmatmul.msk.bf16.gmra.mxu1 %vm2361_vm11, %v6666_v52  ;;  %v3134_v34 = vadd.f32 %v7110_v51, %v3060_v24  ;;  %v3074_v42 = vpop.f32.mrf.mxu3  ;;  %v2829_v52 = vpop.f32.mrf.mxu0 }
 0x4d9   : > { %v2830_v58 = vadd.f32 %v6864_v50, %v2829_v52 }
 0x4da   : > { %3113 = vmatmul.bf16.gmra.mxu3 %v2852_v30  ;;  %v3166_v44 = vmax.f32 %v3134_v34, 0.0 }
 0x4dd   : > { %v2924_v61 = vpop.f32.mrf.mxu1 }
 0x4de   : > { %v3062_v29 = vadd.f32 %v7097_v56, %v2924_v61 }
 0x4e0   : > { %v3135_v60 = vadd.f32 %v7110_v51, %v3062_v29  ;;  %v3076_v2 = vpop.f32.mrf.mxu3  ;;  %v2831_v56 = vpop.f32.mrf.mxu0 }
 0x4e1   : > { %v2832_v30 = vadd.f32 %v6864_v50, %v2831_v56 }
 0x4e2   : > { %v3167_v20 = vmax.f32 %v3135_v60, 0.0 }
 0x4e3   : > { %v2853_v9 = vpack.c.bf16 %v2832_v30, %v2830_v58 }
 0x4e4   : > { %v3196_v41 = vpack.c.bf16 %v3167_v20, %v3166_v44 }
 0x4e5   : > { %v2927_v8 = vpop.f32.mrf.mxu1 }
 0x4e6   : > { %5258 = vmatmul.msk.bf16.gmra.mxu2 %vm2361_vm11, %v3196_v41  ;;  %v3065_v33 = vadd.f32 %v7119_v40, %v2927_v8 }
 0x4e8   : > { %5203 = vmatmul.msk.bf16.gmra.mxu1 %vm2361_vm11, %v6717_v19  ;;  %v3136_v25 = vadd.f32 %v7110_v51, %v3065_v33  ;;  %v3079_v20 = vpop.f32.mrf.mxu3  ;;  %v2834_v60 = vpop.f32.mrf.mxu0 }
 0x4e9   : > { %v2835_v40 = vadd.f32 %v6864_v50, %v2834_v60 }
 0x4ea   : > { %3118 = vmatmul.bf16.gmra.mxu3 %v2853_v9  ;;  %v3168_v34 = vmax.f32 %v3136_v25, 0.0 }
 0x4ed   : > { %v2929_v24 = vpop.f32.mrf.mxu1 }
 0x4ee   : > { %v3067_v61 = vadd.f32 %v3066_v39, %v2929_v24 }
 0x4f0   : > { %v3137_v41 = vadd.f32 %v7110_v51, %v3067_v61  ;;  %v3081_v52 = vpop.f32.mrf.mxu3  ;;  %v2836_v58 = vpop.f32.mrf.mxu0 }
 0x4f1   : > { %v2837_v39 = vadd.f32 %v6864_v50, %v2836_v58 }
 0x4f2   : > { %v3169_v29 = vmax.f32 %v3137_v41, 0.0 }
 0x4f3   : > { %v2854_v56 = vpack.c.bf16 %v2837_v39, %v2835_v40 }
 0x4f4   : > { %v3197_v19 = vpack.c.bf16 %v3169_v29, %v3168_v34 }
 0x4f5   : > { %v2932_v44 = vpop.f32.mrf.mxu1 }
 0x4f6   : > { %5259 = vmatmul.msk.bf16.gmra.mxu2 %vm2361_vm11, %v3197_v19  ;;  %v3070_v8 = vadd.f32 %v3069_v31, %v2932_v44 }
 0x4f8   : > { %5204 = vmatmul.msk.bf16.gmra.mxu1 %vm2361_vm11, %v6735_v21  ;;  %v3138_v30 = vadd.f32 %v7110_v51, %v3070_v8  ;;  %v3084_v41 = vpop.f32.mrf.mxu3 }
 0x4fa   : > { %3123 = vmatmul.bf16.gmra.mxu3 %v2854_v56  ;;  %v3170_v25 = vmax.f32 %v3138_v30, 0.0 }
 0x4fd   : > { %v2934_v33 = vpop.f32.mrf.mxu1 }
 0x4fe   : > { %v3072_v24 = vadd.f32 %v3071_v7, %v2934_v33 }
 0x500   : > { %v3139_v9 = vadd.f32 %v7110_v51, %v3072_v24  ;;  %v3086_v29 = vpop.f32.mrf.mxu3 }
 0x502   : > { %v3171_v61 = vmax.f32 %v3139_v9, 0.0 }
 0x504   : > { %v3198_v34 = vpack.c.bf16 %v3171_v61, %v3170_v25 }
 0x505   : > { %v2937_v21 = vpop.f32.mrf.mxu1 }
 0x506   : > { %5260 = vmatmul.msk.bf16.gmra.mxu2 %vm2361_vm11, %v3198_v34  ;;  %v3075_v31 = vadd.f32 %v3074_v42, %v2937_v21 }
 0x508   : > { %5205 = vmatmul.msk.bf16.gmra.mxu1 %vm2361_vm11, %v6754_v59  ;;  %v3140_v60 = vadd.f32 %v7110_v51, %v3075_v31  ;;  %v3089_v39 = vpop.f32.mrf.mxu3 }
 0x50a   : > { %v3172_v44 = vmax.f32 %v3140_v60, 0.0 }
 0x50d   : > { %v2939_v50 = vpop.f32.mrf.mxu1 }
 0x50e   : > { %v3077_v19 = vadd.f32 %v3076_v2, %v2939_v50 }
 0x510   : > { %v3141_v7 = vadd.f32 %v7110_v51, %v3077_v19  ;;  %v3091_v2 = vpop.f32.mrf.mxu3 }
 0x512   : > { %v3173_v40 = vmax.f32 %v3141_v7, 0.0 }
 0x514   : > { %v3199_v8 = vpack.c.bf16 %v3173_v40, %v3172_v44 }
 0x515   : > { %v2942_v58 = vpop.f32.mrf.mxu1 }
 0x516   : > { %5261 = vmatmul.msk.bf16.gmra.mxu2 %vm2361_vm11, %v3199_v8  ;;  %v3080_v33 = vadd.f32 %v3079_v20, %v2942_v58 }
 0x518   : > { %5206 = vmatmul.msk.bf16.gmra.mxu1 %vm2361_vm11, %v6781_v4  ;;  %v3142_v42 = vadd.f32 %v7110_v51, %v3080_v33  ;;  %v3094_v34 = vpop.f32.mrf.mxu3 }
 0x51a   : > { %v3174_v24 = vmax.f32 %v3142_v42, 0.0 }
 0x51d   : > { %v2944_v59 = vpop.f32.mrf.mxu1 }
 0x51e   : > { %v3082_v56 = vadd.f32 %v3081_v52, %v2944_v59 }
 0x520   : > { %v3143_v30 = vadd.f32 %v7110_v51, %v3082_v56  ;;  %v3096_v7 = vpop.f32.mrf.mxu3 }
 0x522   : > { %v3175_v9 = vmax.f32 %v3143_v30, 0.0 }
 0x524   : > { %v3200_v25 = vpack.c.bf16 %v3175_v9, %v3174_v24 }
 0x525   : > { %v2947_v61 = vpop.f32.mrf.mxu1 }
 0x526   : > { %5262 = vmatmul.msk.bf16.gmra.mxu2 %vm2361_vm11, %v3200_v25  ;;  %v3085_v21 = vadd.f32 %v3084_v41, %v2947_v61 }
 0x528   : > { %5207 = vmatmul.msk.bf16.gmra.mxu1 %vm2361_vm11, %v6805_v23  ;;  %v3144_v20 = vadd.f32 %v7110_v51, %v3085_v21  ;;  %v3099_v58 = vpop.f32.mrf.mxu3 }
 0x52a   : > { %v3176_v50 = vmax.f32 %v3144_v20, 0.0 }
 0x52d   : > { %v2949_v4 = vpop.f32.mrf.mxu1 }
 0x52e   : > { %v3087_v31 = vadd.f32 %v3086_v29, %v2949_v4 }
 0x530   : > { %v3145_v52 = vadd.f32 %v7110_v51, %v3087_v31  ;;  %v3101_v30 = vpop.f32.mrf.mxu3 }
 0x532   : > { %v3177_v60 = vmax.f32 %v3145_v52, 0.0 }
 0x534   : > { %v3201_v44 = vpack.c.bf16 %v3177_v60, %v3176_v50 }
 0x535   : > { %v2952_v19 = vpop.f32.mrf.mxu1 }
 0x536   : > { %5263 = vmatmul.msk.bf16.gmra.mxu2 %vm2361_vm11, %v3201_v44  ;;  %v3090_v40 = vadd.f32 %v3089_v39, %v2952_v19 }
 0x538   : > { %v3146_v23 = vadd.f32 %v7110_v51, %v3090_v40  ;;  %v3104_v50 = vpop.f32.mrf.mxu3 }
 0x53a   : > { %v3178_v59 = vmax.f32 %v3146_v23, 0.0 }
 0x53d   : > { %v2954_v8 = vpop.f32.mrf.mxu1 }
 0x53e   : > { %v3092_v33 = vadd.f32 %v3091_v2, %v2954_v8 }
 0x540   : > { %v3147_v41 = vadd.f32 %v7110_v51, %v3092_v33  ;;  %v3106_v23 = vpop.f32.mrf.mxu3 }
 0x542   : > { %v3179_v42 = vmax.f32 %v3147_v41, 0.0 }
 0x544   : > { %v3202_v56 = vpack.c.bf16 %v3179_v42, %v3178_v59 }
 0x545   : > { %v2957_v29 = vpop.f32.mrf.mxu1 }
 0x546   : > { %5264 = vmatmul.msk.bf16.gmra.mxu2 %vm2361_vm11, %v3202_v56  ;;  %v3095_v9 = vadd.f32 %v3094_v34, %v2957_v29 }
 0x548   : > { %v3148_v61 = vadd.f32 %v7110_v51, %v3095_v9 }
 0x549   : > { %v3299_v24 = vpop.f32.mrf.mxu2 }
 0x54a   : > { %v3379_v21 = vpack.c.bf16 %v3299_v24, %v3299_v24  ;;  %v3180_v2 = vmax.f32 %v3148_v61, 0.0 }
 0x54c   : > { %v7201_v60 = vunpack.c.l.b16 %v3379_v21 }
 0x54d   : > { %v2959_v25 = vpop.f32.mrf.mxu1 }
 0x54e   : > { %v3097_v39 = vadd.f32 %v3096_v7, %v2959_v25 }
 0x550   : > { %v3149_v4 = vadd.f32 %v7110_v51, %v3097_v39 }
 0x551   : > { %v3301_v20 = vpop.f32.mrf.mxu2 }
 0x552   : > { %v3181_v31 = vmax.f32 %v3149_v4, 0.0  ;;  %v3380_v52 = vpack.c.bf16 %v3301_v20, %v3301_v20  ;;  %v3109_v20 = vpop.f32.mrf.mxu3 }
 0x554   : > { %v3203_v19 = vpack.c.bf16 %v3181_v31, %v3180_v2  ;;  %v7203_v44 = vunpack.c.l.b16 %v3380_v52 }
 0x555   : > { %v2962_v40 = vpop.f32.mrf.mxu1 }
 0x556   : > { %5265 = vmatmul.msk.bf16.gmra.mxu2 %vm2361_vm11, %v3203_v19  ;;  %v3100_v8 = vadd.f32 %v3099_v58, %v2962_v40 }
 0x558   : > { %v3150_v41 = vadd.f32 %v7110_v51, %v3100_v8 }
 0x559   : > { %v3304_v7 = vpop.f32.mrf.mxu2 }
 0x55a   : > { %v3381_v42 = vpack.c.bf16 %v3304_v7, %v3304_v7  ;;  %v3182_v24 = vmax.f32 %v3150_v41, 0.0  ;;  %v3111_v8 = vpop.f32.mrf.mxu3 }
 0x55c   : > { %v7210_v61 = vunpack.c.l.b16 %v3381_v42 }
 0x55d   : > { %v2964_v33 = vpop.f32.mrf.mxu1 }
 0x55e   : > { %v3102_v59 = vadd.f32 %v3101_v30, %v2964_v33 }
 0x560   : > { %v3151_v29 = vadd.f32 %v7110_v51, %v3102_v59 }
 0x561   : > { %v3306_v56 = vpop.f32.mrf.mxu2 }
 0x562   : > { %v3183_v9 = vmax.f32 %v3151_v29, 0.0  ;;  %v3382_v25 = vpack.c.bf16 %v3306_v56, %v3306_v56 }
 0x564   : > { %v3204_v39 = vpack.c.bf16 %v3183_v9, %v3182_v24  ;;  %v7212_v21 = vunpack.c.l.b16 %v3382_v25 }
 0x565   : > { %v2967_v4 = vpop.f32.mrf.mxu1 }
 0x566   : > { %5266 = vmatmul.msk.bf16.gmra.mxu2 %vm2361_vm11, %v3204_v39  ;;  %v3105_v2 = vadd.f32 %v3104_v50, %v2967_v4  ;;  %v3114_v39 = vpop.f32.mrf.mxu3 }
 0x568   : > { %v3152_v52 = vadd.f32 %v7110_v51, %v3105_v2 }
 0x569   : > { %v3309_v30 = vpop.f32.mrf.mxu2 }
 0x56a   : > { %v3383_v40 = vpack.c.bf16 %v3309_v30, %v3309_v30  ;;  %v3184_v41 = vmax.f32 %v3152_v52, 0.0 }
 0x56c   : > { %v7219_v29 = vunpack.c.l.b16 %v3383_v40 }
 0x56d   : > { %v2969_v31 = vpop.f32.mrf.mxu1 }
 0x56e   : > { %v3107_v19 = vadd.f32 %v3106_v23, %v2969_v31 }
 0x570   : > { %v3153_v7 = vadd.f32 %v7110_v51, %v3107_v19 }
 0x571   : > { %v3311_v33 = vpop.f32.mrf.mxu2 }
 0x572   : > { %v3185_v59 = vmax.f32 %v3153_v7, 0.0  ;;  %v3384_v42 = vpack.c.bf16 %v3311_v33, %v3311_v33 }
 0x574   : > { %v3205_v56 = vpack.c.bf16 %v3185_v59, %v3184_v41  ;;  %v7221_v24 = vunpack.c.l.b16 %v3384_v42 }
 0x575   : > { %v2972_v9 = vpop.f32.mrf.mxu1 }
 0x576   : > { %5267 = vmatmul.msk.bf16.gmra.mxu2 %vm2361_vm11, %v3205_v56  ;;  %v3110_v25 = vadd.f32 %v3109_v20, %v2972_v9  ;;  %v3116_v56 = vpop.f32.mrf.mxu3 }
 0x578   : > { %v3154_v30 = vadd.f32 %v7110_v51, %v3110_v25 }
 0x579   : > { %v3314_v23 = vpop.f32.mrf.mxu2 }
 0x57a   : > { %v3385_v31 = vpack.c.bf16 %v3314_v23, %v3314_v23  ;;  %v3186_v40 = vmax.f32 %v3154_v30, 0.0 }
 0x57c   : > { %v7228_v41 = vunpack.c.l.b16 %v3385_v31 }
 0x57d   : > { %v2974_v4 = vpop.f32.mrf.mxu1 }
 0x57e   : > { %v3112_v2 = vadd.f32 %v3111_v8, %v2974_v4  ;;  %v3119_v30 = vpop.f32.mrf.mxu3 }
 0x580   : > { %v3155_v52 = vadd.f32 %v7110_v51, %v3112_v2 }
 0x581   : > { %v3316_v19 = vpop.f32.mrf.mxu2 }
 0x582   : > { %v3187_v7 = vmax.f32 %v3155_v52, 0.0  ;;  %v3386_v33 = vpack.c.bf16 %v3316_v19, %v3316_v19 }
 0x584   : > { %v3206_v59 = vpack.c.bf16 %v3187_v7, %v3186_v40  ;;  %v7230_v42 = vunpack.c.l.b16 %v3386_v33 }
 0x585   : > { %v2977_v34 = vpop.f32.mrf.mxu1 }
 0x586   : > { %5268 = vmatmul.msk.bf16.gmra.mxu2 %vm2361_vm11, %v3206_v59  ;;  %v3115_v9 = vadd.f32 %v3114_v39, %v2977_v34  ;;  %v3121_v33 = vpop.f32.mrf.mxu3  ;;  %v8851_v15 = vpack.c.b16 %v7230_v42, %v7228_v41  ;;  %v1703_v42 = vld [vmem:[%s7321_s24 + $0x8] sm:$0xff] }
 0x588   : > { %v3156_v25 = vadd.f32 %v7110_v51, %v3115_v9 }
 0x589   : > { %v7235_v8 = vpop.f32.mrf.mxu2 }
 0x58a   : > { %v3188_v52 = vmax.f32 %v3156_v25, 0.0 }
 0x58d   : > { %v2979_v23 = vpop.f32.mrf.mxu1 }
 0x58e   : > { %v3117_v4 = vadd.f32 %v3116_v56, %v2979_v23  ;;  %v3124_v20 = vpop.f32.mrf.mxu3 }
 0x590   : > { %v3157_v2 = vadd.f32 %v7110_v51, %v3117_v4 }
 0x591   : > { %v7239_v31 = vpop.f32.mrf.mxu2 }
 0x592   : > { %v3189_v19 = vmax.f32 %v3157_v2, 0.0 }
 0x594   : > { %v3207_v40 = vpack.c.bf16 %v3189_v19, %v3188_v52 }
 0x595   : > { %v2982_v7 = vpop.f32.mrf.mxu1 }
 0x596   : > { %5269 = vmatmul.msk.bf16.gmra.mxu2 %vm2361_vm11, %v3207_v40  ;;  %v3120_v58 = vadd.f32 %v3119_v30, %v2982_v7  ;;  %v3126_v40 = vpop.f32.mrf.mxu3 }
 0x598   : > { %v3158_v39 = vadd.f32 %v7110_v51, %v3120_v58 }
 0x599   : > { %v7242_v59 = vpop.f32.mrf.mxu2 }
 0x59a   : > { %v3190_v4 = vmax.f32 %v3158_v39, 0.0  ;;  %v1415_v39 = vpop.xlane.xlu0 %1414 }
 0x59b   : > { %v7249_v53 = vadd.f32 1e-08, %v1415_v39 }
 0x59d   : > { %v2984_v34 = vpop.f32.mrf.mxu1  ;;  %5483 = vrcp.f32 %v7249_v53  ;;  %vm1467_vm1 = vweird.f32 %v7249_v53 }
 0x59e   : > { %v3122_v9 = vadd.f32 %v3121_v33, %v2984_v34 }
 0x5a0   : > { %v3159_v56 = vadd.f32 %v7110_v51, %v3122_v9 }
 0x5a1   : > { %v3326_v23 = vpop.f32.mrf.mxu2 }
 0x5a2   : > { %v3191_v50 = vmax.f32 %v3159_v56, 0.0  ;;  %v1417_v56 = vpop.xlane.xlu1 %1416 }
 0x5a4   : > { %v3208_v25 = vpack.c.bf16 %v3191_v50, %v3190_v4  ;;  %v7252_v50 = vadd.f32 1e-08, %v1417_v56 }
 0x5a5   : > { %v2987_v2 = vpop.f32.mrf.mxu1 }
 0x5a6   : > { %5270 = vmatmul.msk.bf16.gmra.mxu2 %vm2361_vm11, %v3208_v25  ;;  %v3125_v52 = vadd.f32 %v3124_v20, %v2987_v2  ;;  %5485 = vrcp.f32 %v7252_v50  ;;  %v1419_v2 = vpop.xlane.xlu2 %1418  ;;  %vm1482_vm2 = vweird.f32 %v7252_v50 }
 0x5a7   : > { %v7264_v39 = vadd.f32 1e-08, %v1419_v2  ;;  %v3388_v2 = vpack.c.bf16 %v7239_v31, %v7239_v31 }
 0x5a8   : > { %v3160_v30 = vadd.f32 %v7110_v51, %v3125_v52 }
 0x5a9   : > { %v3329_v19 = vpop.f32.mrf.mxu2  ;;  %5487 = vrcp.f32 %v7264_v39  ;;  %vm1497_vm9 = vweird.f32 %v7264_v39 }
 0x5aa   : > { %v3192_v33 = vmax.f32 %v3160_v30, 0.0 }
 0x5ad   : > { %v2989_v37 = vpop.f32.mrf.mxu1 }
 0x5ae   : > { %v3127_v7 = vadd.f32 %v3126_v40, %v2989_v37  ;;  %v7256_v37 = vpop.eup %5483 }
 0x5af   : > { %v7258_v25 = vpop.eup %5485  ;;  %v1463_v30 = vmul.f32 %v7256_v37, %v7249_v53  ;;  %vm1468_vm14 = vweird.f32 %v7256_v37 }
 0x5b0   : > { %v3161_v58 = vadd.f32 %v7110_v51, %v3127_v7  ;;  %v3391_v7 = vpack.c.bf16 %v3329_v19, %v3329_v19  ;;  %vm1483_vm15 = vweird.f32 %v7258_v25  ;;  %vm7298_vm3 = vmor %vm1467_vm1, %vm1468_vm14 }
 0x5b1   : > { %v3331_v9 = vpop.f32.mrf.mxu2  ;;  %vm1484_vm4 = vmor %vm1482_vm2, %vm1483_vm15 }
 0x5b2   : > { %v3193_v34 = vmax.f32 %v3161_v58, 0.0  ;;  %v3392_v52 = vpack.c.bf16 %v3331_v9, %v3331_v9  ;;  %v1464_v9 = vsub.f32 1.0, %v1463_v30  ;;  %v3439_v16 = vunpack.c.l.b16 %v3391_v7 }
 0x5b4   : > { %v3209_v6 = vpack.c.bf16 %v3193_v34, %v3192_v33  ;;  %v1478_v34 = vmul.f32 %v7258_v25, %v7252_v50  ;;  %v3440_v54 = vunpack.c.l.b16 %v3392_v52  ;;  %v1465_v52 = vmul.f32 %v7256_v37, %v1464_v9 }
 0x5b5   : > { %v1488_v9 = vand.u32 2147483648, %v7252_v50 }
 0x5b6   : > { %5271 = vmatmul.msk.bf16.gmra.mxu2 %vm2361_vm11, %v3209_v6  ;;  %v1421_v6 = vpop.xlane.xlu0 %1420  ;;  %v1479_v19 = vsub.f32 1.0, %v1478_v34  ;;  %v1466_v31 = vadd.f32 %v7256_v37, %v1465_v52  ;;  %v1471_v34 = vand.u32 2147483647, %v7249_v53  ;;  %v1425_v52 = vpop.xlane.xlu2 %1424 }
 0x5b7   : > { %v7266_v56 = vadd.f32 1e-08, %v1421_v6  ;;  %v3436_v6 = vunpack.c.l.b16 %v3388_v2  ;;  %v1486_v2 = vand.u32 2147483647, %v7252_v50  ;;  %v1489_v50 = vor.u32 1.1754944e-38, %v1488_v9 }
 0x5b8   : > { %v1480_v30 = vmul.f32 %v7258_v25, %v1479_v19  ;;  %vm1472_vm5 = vcmp.eq.f32.partialorder %v1471_v34, 8.507059e+37  ;;  %v8852_v9 = vpack.c.b16 %v7221_v24, %v7219_v29  ;;  %v8853_v24 = vpack.c.b16 %v7212_v21, %v7210_v61 }
 0x5b9   : > { %v3334_v20 = vpop.f32.mrf.mxu2  ;;  %5489 = vrcp.f32 %v7266_v56  ;;  %vm1487_vm6 = vcmp.eq.f32.partialorder %v1486_v2, 8.507059e+37  ;;  %v1518_v29 = vand.u32 2147483648, %v7266_v56  ;;  %vm1512_vm10 = vweird.f32 %v7266_v56 }
 0x5ba   : > { %v3393_v51 = vpack.c.bf16 %v3334_v20, %v3334_v20  ;;  %v3390_v20 = vpack.c.bf16 %v3326_v23, %v3326_v23  ;;  %v3449_v23 = vpack.c.b16 %v3440_v54, %v3439_v16  ;;  %v1473_v16 = vand.u32 2147483648, %v7249_v53 }
 0x5bc   : > { %v3441_v58 = vunpack.c.l.b16 %v3393_v51 }
 0x5be   : > { %v1427_v21 = vpop.xlane.xlu0 %1426 }
 0x5c1   : > { %v3336_v4 = vpop.f32.mrf.mxu2 }
 0x5c2   : > { %v3394_v40 = vpack.c.bf16 %v3336_v4, %v3336_v4  ;;  %v3389_v4 = vpack.c.bf16 %v7242_v59, %v7242_v59  ;;  %v3387_v59 = vpack.c.bf16 %v7235_v8, %v7235_v8  ;;  %v1481_v8 = vadd.f32 %v7258_v25, %v1480_v30 }
 0x5c4   : > { %v3442_v33 = vunpack.c.l.b16 %v3394_v40  ;;  %v3438_v40 = vunpack.c.l.b16 %v3390_v20  ;;  %v1485_v30 = vsel %vm1484_vm4, %v7258_v25, %v1481_v8  ;;  %v1702_v8 = vld [vmem:[%s7321_s24] sm:$0xff] }
 0x5c6   : > { %v3450_v5 = vpack.c.b16 %v3442_v33, %v3441_v58  ;;  %v7282_v58 = vpop.eup %5487  ;;  %v3435_v33 = vunpack.c.l.b16 %v3387_v59  ;;  %v1474_v59 = vor.u32 1.1754944e-38, %v1473_v16 }
 0x5c7   : > { %v7286_v54 = vpop.eup %5489  ;;  %v1493_v53 = vmul.f32 %v7282_v58, %v7264_v39  ;;  %vm1498_vm7 = vweird.f32 %v7282_v58 }
 0x5c8   : > { %3459 = vmatpush.bf16.msrb.mxu0 %v3450_v5  ;;  %v3437_v5 = vunpack.c.l.b16 %v3389_v4  ;;  %v3447_v19 = vpack.c.b16 %v3436_v6, %v3435_v33  ;;  %v1490_v4 = vsel %vm1487_vm6, %v1489_v50, %v1485_v30  ;;  %vm1513_vm8 = vweird.f32 %v7286_v54  ;;  %vm7353_vm12 = vmor %vm1497_vm9, %vm1498_vm7 }
 0x5c9   : > { %v7271_v51 = vpop.f32.mrf.mxu2  ;;  %v1491_v41 = vmul.f32 %v1490_v4, %v6567_v11  ;;  %v1503_v11 = vand.u32 2147483648, %v7264_v39  ;;  %vm7359_vm13 = vmor %vm1512_vm10, %vm1513_vm8 }
 0x5ca   : > { %v3448_v7 = vpack.c.b16 %v3438_v40, %v3437_v5  ;;  %v1470_v40 = vsel %vm7298_vm3, %v7256_v37, %v1466_v31  ;;  %v1423_v5 = vpop.xlane.xlu1 %1422  ;;  %v1494_v31 = vsub.f32 1.0, %v1493_v53 }
 0x5cb   : > { %v1475_v6 = vsel %vm1472_vm5, %v1474_v59, %v1470_v40  ;;  %v7313_v37 = vadd.f32 1e-08, %v1423_v5  ;;  %v1719_v40 = vmul.f32 0.5, %v1703_v42 }
 0x5cc   : > { %3460 = vmatpush.bf16.msrb.mxu0 %v3449_v23  ;;  %v1508_v23 = vmul.f32 %v7286_v54, %v7266_v56  ;;  %v1476_v16 = vmul.f32 %v1475_v6, %v6574_v17  ;;  %v1495_v34 = vmul.f32 %v7282_v58, %v1494_v31  ;;  %v1735_v17 = vmul.f32 0.5, %v1491_v41 }
 0x5cd   : > { %v1501_v6 = vand.u32 2147483647, %v7264_v39  ;;  %v1516_v31 = vand.u32 2147483647, %v7266_v56  ;;  %v1504_v56 = vor.u32 1.1754944e-38, %v1503_v11  ;;  %v8858_v41 = vpack.c.b16 %v7203_v44, %v7201_v60 }
 0x5ce   : > { %v1509_v33 = vsub.f32 1.0, %v1508_v23  ;;  %v1734_v2 = vmul.f32 0.5, %v1476_v16  ;;  %v1496_v53 = vadd.f32 %v7282_v58, %v1495_v34  ;;  %v1751_v4 = vadd.f32 %v1735_v17, %v1719_v40 }
 0x5cf   : > { %v1519_v34 = vor.u32 1.1754944e-38, %v1518_v29  ;;  %vm1502_vm14 = vcmp.eq.f32.partialorder %v1501_v6, 8.507059e+37  ;;  %vm1517_vm15 = vcmp.eq.f32.partialorder %v1516_v31, 8.507059e+37  ;;  %vm1527_vm5 = vweird.f32 %v7313_v37 }
 0x5d0   : > { %3461 = vmatpush.bf16.msrb.mxu0 %v3448_v7  ;;  %v7311_v7 = vadd.f32 1e-08, %v1425_v52  ;;  %v1500_v16 = vsel %vm7353_vm12, %v7282_v58, %v1496_v53  ;;  %v7378_v58 = vadd.f32 1e-08, %v1427_v21  ;;  %v1704_v53 = vld [vmem:[%s7321_s24 + $0x10] sm:$0xff] }
 0x5d1   : > { %v7293_v20 = vpop.f32.mrf.mxu2 }
 0x5d2   : > { %5491 = vrcp.f32 %v7311_v7  ;;  %vm1542_vm2 = vweird.f32 %v7311_v7  ;;  %vm1557_vm10 = vweird.f32 %v7378_v58 }
 0x5d3   : > { %5493 = vrcp.f32 %v7313_v37 }
 0x5d4   : > { %3462 = vmatpush.bf16.msrb.mxu0 %v3447_v19  ;;  %v1718_v19 = vmul.f32 0.5, %v1702_v8  ;;  %5495 = vrcp.f32 %v7378_v58 }
 0x5d6   : > { %v1750_v30 = vadd.f32 %v1734_v2, %v1718_v19 }
 0x5d8   : > { %3463 = vmatpush.bf16.msrb.mxu0 %v8851_v15  ;;  %v1510_v15 = vmul.f32 %v7286_v54, %v1509_v33  ;;  %v7340_v52 = vpop.eup %5491  ;;  %v7376_v42 = vpack.c.bf16 %v1751_v4, %v1750_v30 }
 0x5d9   : > { %v7323_v25 = vpop.f32.mrf.mxu2  ;;  %v7348_v59 = vpop.eup %5493  ;;  %v1538_v61 = vmul.f32 %v7340_v52, %v7311_v7  ;;  %vm1543_vm1 = vweird.f32 %v7340_v52 }
 0x5da   : > { %v1511_v23 = vadd.f32 %v7286_v54, %v1510_v15  ;;  %v1523_v39 = vmul.f32 %v7348_v59, %v7313_v37  ;;  %v1429_v15 = vpop.xlane.xlu1 %1428  ;;  %vm1528_vm3 = vweird.f32 %v7348_v59  ;;  %vm7407_vm4 = vmor %vm1542_vm2, %vm1543_vm1 }
 0x5db   : > { %v7380_v19 = vadd.f32 1e-08, %v1429_v15  ;;  %v1539_v2 = vsub.f32 1.0, %v1538_v61  ;;  %vm1529_vm6 = vmor %vm1527_vm5, %vm1528_vm3 }
 0x5dc   : > { %3464 = vmatpush.bf16.msrb.mxu0 %v8852_v9  ;;  %v1515_v8 = vsel %vm7359_vm13, %v7286_v54, %v1511_v23  ;;  %v1505_v9 = vsel %vm1502_vm14, %v1504_v56, %v1500_v16  ;;  %v1524_v40 = vsub.f32 1.0, %v1523_v39  ;;  %v1705_v23 = vld [vmem:[%s7321_s24 + $0x18] sm:$0xff]  ;;  %v1533_v39 = vand.u32 2147483648, %v7313_v37  ;;  %v1431_v56 = vpop.xlane.xlu2 %1430 }
 0x5dd   : > { %v1520_v54 = vsel %vm1517_vm15, %v1519_v34, %v1515_v8  ;;  %v1506_v60 = vmul.f32 %v1505_v9, %v6594_v0  ;;  %5497 = vrcp.f32 %v7380_v19  ;;  %v1540_v11 = vmul.f32 %v7340_v52, %v1539_v2  ;;  %v7395_v0 = vpop.eup %5495 }
 0x5de   : > { %v1521_v44 = vmul.f32 %v1520_v54, %v6598_v13  ;;  %v1525_v29 = vmul.f32 %v7348_v59, %v1524_v40  ;;  %v1721_v30 = vmul.f32 0.5, %v1705_v23  ;;  %v1548_v13 = vand.u32 2147483648, %v7311_v7 }
 0x5df   : > { %v1736_v50 = vmul.f32 0.5, %v1506_v60  ;;  %v1541_v31 = vadd.f32 %v7340_v52, %v1540_v11  ;;  %v1546_v8 = vand.u32 2147483647, %v7311_v7  ;;  %v1553_v15 = vmul.f32 %v7395_v0, %v7378_v58 }
 0x5e0   : > { %3465 = vmatpush.bf16.msrb.mxu0 %v8853_v24  ;;  %v1720_v24 = vmul.f32 0.5, %v1704_v53  ;;  %v1737_v6 = vmul.f32 0.5, %v1521_v44  ;;  %v1526_v33 = vadd.f32 %v7348_v59, %v1525_v29  ;;  %v1531_v9 = vand.u32 2147483647, %v7313_v37 }
 0x5e1   : > { %v7351_v5 = vpop.f32.mrf.mxu2  ;;  %v1545_v54 = vsel %vm7407_vm4, %v7340_v52, %v1541_v31  ;;  %v1549_v2 = vor.u32 1.1754944e-38, %v1548_v13  ;;  %v7420_v40 = vadd.f32 1e-08, %v1431_v56  ;;  %vm1547_vm7 = vcmp.eq.f32.partialorder %v1546_v8, 8.507059e+37  ;;  %v1706_v31 = vld [vmem:[%s7321_s24 + $0x20] sm:$0xff] }
 0x5e2   : > { %v1752_v4 = vadd.f32 %v1736_v50, %v1720_v24  ;;  %v1753_v16 = vadd.f32 %v1737_v6, %v1721_v30  ;;  %v1530_v44 = vsel %vm1529_vm6, %v7348_v59, %v1526_v33  ;;  %v1534_v53 = vor.u32 1.1754944e-38, %v1533_v39  ;;  %v1707_v59 = vld [vmem:[%s7321_s24 + $0x28] sm:$0xff] }
 0x5e3   : > { %v7400_v61 = vpop.eup %5497  ;;  %v1550_v23 = vsel %vm1547_vm7, %v1549_v2, %v1545_v54  ;;  %v1554_v11 = vsub.f32 1.0, %v1553_v15  ;;  %vm1532_vm8 = vcmp.eq.f32.partialorder %v1531_v9, 8.507059e+37  ;;  %5499 = vrcp.f32 %v7420_v40 }
 0x5e4   : > { %3466 = vmatpush.bf16.msrb.mxu0 %v8858_v41  ;;  %v1433_v41 = vpop.xlane.xlu0 %1432  ;;  %v1568_v7 = vmul.f32 %v7400_v61, %v7380_v19  ;;  %v7422_v60 = vpack.c.bf16 %v1753_v16, %v1752_v4  ;;  %v1535_v52 = vsel %vm1532_vm8, %v1534_v53, %v1530_v44  ;;  %v1551_v30 = vmul.f32 %v1550_v23, %v6630_v46  ;;  %v1437_v44 = vpop.xlane.xlu2 %1436 }
 0x5e5   : > { %v7425_v37 = vadd.f32 1e-08, %v1433_v41  ;;  %v1555_v50 = vmul.f32 %v7395_v0, %v1554_v11  ;;  %v1536_v6 = vmul.f32 %v1535_v52, %v6589_v27  ;;  %v1723_v33 = vmul.f32 0.5, %v1707_v59  ;;  %v1435_v52 = vpop.xlane.xlu1 %1434 }
 0x5e6   : > { %v1569_v29 = vsub.f32 1.0, %v1568_v7  ;;  %v1739_v4 = vmul.f32 0.5, %v1551_v30  ;;  %v1722_v8 = vmul.f32 0.5, %v1706_v31  ;;  %vm1558_vm9 = vweird.f32 %v7395_v0 }
 0x5e7   : > { %3467 = vmatmul.bf16.vlgmr.msrb.gmra.mxu0 %v7376_v42  ;;  %5501 = vrcp.f32 %v7425_v37  ;;  %v1738_v39 = vmul.f32 0.5, %v1536_v6  ;;  %v1556_v56 = vadd.f32 %v7395_v0, %v1555_v50  ;;  %v1563_v34 = vand.u32 2147483648, %v7378_v58  ;;  %vm1559_vm14 = vmor %vm1557_vm10, %vm1558_vm9 }
 0x5e8   : > { %v1570_v13 = vmul.f32 %v7400_v61, %v1569_v29  ;;  %v1755_v15 = vadd.f32 %v1739_v4, %v1723_v33  ;;  %v1561_v41 = vand.u32 2147483647, %v7378_v58  ;;  %vm1573_vm12 = vweird.f32 %v7400_v61 }
 0x5e9   : > { %v7383_v17 = vpop.f32.mrf.mxu2  ;;  %v7438_v16 = vpop.eup %5499  ;;  %vm1572_vm13 = vweird.f32 %v7380_v19  ;;  %v1578_v54 = vand.u32 2147483648, %v7380_v19  ;;  %v1754_v53 = vadd.f32 %v1738_v39, %v1722_v8  ;;  %v1560_v23 = vsel %vm1559_vm14, %v7395_v0, %v1556_v56 }
 0x5ea   : > { %v1571_v9 = vadd.f32 %v7400_v61, %v1570_v13  ;;  %v1583_v7 = vmul.f32 %v7438_v16, %v7420_v40  ;;  %v1576_v58 = vand.u32 2147483647, %v7380_v19  ;;  %v1564_v11 = vor.u32 1.1754944e-38, %v1563_v34  ;;  %vm1574_vm15 = vmor %vm1572_vm13, %vm1573_vm12  ;;  %v1709_v34 = vld [vmem:[%s7321_s24 + $0x38] sm:$0xff] }
 0x5eb   : > { %v7459_v29 = vpack.c.bf16 %v1755_v15, %v1754_v53  ;;  %vm1562_vm1 = vcmp.eq.f32.partialorder %v1561_v41, 8.507059e+37  ;;  %v1579_v59 = vor.u32 1.1754944e-38, %v1578_v54  ;;  %v7462_v50 = vadd.f32 1e-08, %v1437_v44 }
 0x5ec   : > { %v1575_v30 = vsel %vm1574_vm15, %v7400_v61, %v1571_v9  ;;  %v1565_v6 = vsel %vm1562_vm1, %v1564_v11, %v1560_v23  ;;  %v7464_v31 = vadd.f32 1e-08, %v1435_v52  ;;  %v1584_v13 = vsub.f32 1.0, %v1583_v7  ;;  %v1708_v61 = vld [vmem:[%s7321_s24 + $0x30] sm:$0xff]  ;;  %v1439_v9 = vpop.xlane.xlu0 %1438 }
 0x5ed   : > { %v7442_v46 = vpop.eup %5501  ;;  %vm1577_vm2 = vcmp.eq.f32.partialorder %v1576_v58, 8.507059e+37  ;;  %v1566_v4 = vmul.f32 %v1565_v6, %v6634_v43  ;;  %5503 = vrcp.f32 %v7462_v50  ;;  %v1724_v15 = vmul.f32 0.5, %v1708_v61  ;;  %v1441_v7 = vpop.xlane.xlu1 %1440 }
 0x5ee   : > { %v1598_v2 = vmul.f32 %v7442_v46, %v7425_v37  ;;  %v1580_v19 = vsel %vm1577_vm2, %v1579_v59, %v1575_v30  ;;  %5505 = vrcp.f32 %v7464_v31  ;;  %v1585_v8 = vmul.f32 %v7438_v16, %v1584_v13 }
 0x5ef   : > { %v1581_v56 = vmul.f32 %v1580_v19, %v6618_v48  ;;  %v1740_v41 = vmul.f32 0.5, %v1566_v4  ;;  %v1725_v54 = vmul.f32 0.5, %v1709_v34  ;;  %vm1588_vm3 = vweird.f32 %v7438_v16 }
 0x5f0   : > { %v1599_v0 = vsub.f32 1.0, %v1598_v2  ;;  %v1586_v2 = vadd.f32 %v7438_v16, %v1585_v8  ;;  %vm1603_vm4 = vweird.f32 %v7442_v46  ;;  %vm1587_vm5 = vweird.f32 %v7420_v40 }
 0x5f1   : > { %v7402_v21 = vpop.f32.mrf.mxu2  ;;  %v1741_v43 = vmul.f32 0.5, %v1581_v56  ;;  %v1593_v48 = vand.u32 2147483648, %v7420_v40  ;;  %v1608_v23 = vand.u32 2147483648, %v7425_v37  ;;  %vm1602_vm6 = vweird.f32 %v7425_v37  ;;  %vm7491_vm7 = vmor %vm1587_vm5, %vm1588_vm3  ;;  %v1443_v56 = vpop.xlane.xlu2 %1442 }
 0x5f2   : > { %v1600_v39 = vmul.f32 %v7442_v46, %v1599_v0  ;;  %v1756_v52 = vadd.f32 %v1740_v41, %v1724_v15  ;;  %v1591_v59 = vand.u32 2147483647, %v7420_v40  ;;  %v1606_v6 = vand.u32 2147483647, %v7425_v37  ;;  %vm1604_vm8 = vmor %vm1602_vm6, %vm1603_vm4 }
 0x5f3   : > { %v7481_v53 = vpop.eup %5503  ;;  %v7497_v13 = vadd.f32 1e-08, %v1441_v7  ;;  %v7499_v0 = vadd.f32 1e-08, %v1439_v9  ;;  %v1757_v4 = vadd.f32 %v1741_v43, %v1725_v54  ;;  %v1590_v61 = vsel %vm7491_vm7, %v7438_v16, %v1586_v2 }
 0x5f4   : > { %v1601_v44 = vadd.f32 %v7442_v46, %v1600_v39  ;;  %v7486_v58 = vpop.eup %5505  ;;  %v1628_v19 = vmul.f32 %v7481_v53, %v7462_v50  ;;  %v1594_v39 = vor.u32 1.1754944e-38, %v1593_v48  ;;  %v1609_v37 = vor.u32 1.1754944e-38, %v1608_v23  ;;  %v1445_v54 = vpop.xlane.xlu0 %1444  ;;  %v1711_v48 = vld [vmem:[%s7321_s24 + $0x48] sm:$0xff] }
 0x5f5   : > { %v1613_v40 = vmul.f32 %v7486_v58, %v7464_v31  ;;  %v7509_v34 = vpack.c.bf16 %v1757_v4, %v1756_v52  ;;  %vm1592_vm9 = vcmp.eq.f32.partialorder %v1591_v59, 8.507059e+37  ;;  %vm1607_vm10 = vcmp.eq.f32.partialorder %v1606_v6, 8.507059e+37 }
 0x5f6   : > { %v1605_v8 = vsel %vm1604_vm8, %v7442_v46, %v1601_v44  ;;  %5507 = vrcp.f32 %v7499_v0  ;;  %v1595_v15 = vsel %vm1592_vm9, %v1594_v39, %v1590_v61  ;;  %v1629_v16 = vsub.f32 1.0, %v1628_v19  ;;  %v1710_v44 = vld [vmem:[%s7321_s24 + $0x40] sm:$0xff] }
 0x5f7   : > { %3472 = vmatmul.bf16.gmra.mxu0 %v7422_v60  ;;  %v1610_v41 = vsel %vm1607_vm10, %v1609_v37, %v1605_v8  ;;  %5509 = vrcp.f32 %v7497_v13  ;;  %v1614_v46 = vsub.f32 1.0, %v1613_v40  ;;  %v7514_v9 = vadd.f32 1e-08, %v1443_v56 }
 0x5f8   : > { %v1596_v43 = vmul.f32 %v1595_v15, %v6654_v28  ;;  %v1611_v2 = vmul.f32 %v1610_v41, %v6658_v62  ;;  %v1630_v23 = vmul.f32 %v7481_v53, %v1629_v16  ;;  %v7523_v52 = vadd.f32 1e-08, %v1445_v54 }
 0x5f9   : > { %v7429_v24 = vpop.f32.mrf.mxu2  ;;  %v1615_v59 = vmul.f32 %v7486_v58, %v1614_v46  ;;  %5511 = vrcp.f32 %v7514_v9  ;;  %v1726_v19 = vmul.f32 0.5, %v1710_v44  ;;  %v1727_v4 = vmul.f32 0.5, %v1711_v48 }
 0x5fa   : > { %v1742_v61 = vmul.f32 0.5, %v1596_v43  ;;  %v1743_v28 = vmul.f32 0.5, %v1611_v2  ;;  %5513 = vrcp.f32 %v7523_v52  ;;  %v1631_v8 = vadd.f32 %v7481_v53, %v1630_v23 }
 0x5fb   : > { %vm1633_vm12 = vweird.f32 %v7481_v53  ;;  %vm1632_vm13 = vweird.f32 %v7462_v50  ;;  %v1638_v39 = vand.u32 2147483648, %v7462_v50  ;;  %v1616_v37 = vadd.f32 %v7486_v58, %v1615_v59 }
 0x5fc   : > { %v7525_v30 = vpop.eup %5507  ;;  %v1758_v15 = vadd.f32 %v1742_v61, %v1726_v19  ;;  %v1759_v41 = vadd.f32 %v1743_v28, %v1727_v4  ;;  %vm1618_vm14 = vweird.f32 %v7486_v58  ;;  %v1636_v16 = vand.u32 2147483647, %v7462_v50  ;;  %vm1634_vm15 = vmor %vm1632_vm13, %vm1633_vm12 }
 0x5fd   : > { %v7529_v6 = vpop.eup %5509  ;;  %v1643_v62 = vmul.f32 %v7525_v30, %v7499_v0  ;;  %v1623_v54 = vand.u32 2147483648, %v7464_v31  ;;  %vm1617_vm1 = vweird.f32 %v7464_v31  ;;  %v1621_v2 = vand.u32 2147483647, %v7464_v31 }
 0x5fe   : > { %v1658_v40 = vmul.f32 %v7529_v6, %v7497_v13  ;;  %v1635_v44 = vsel %vm1634_vm15, %v7481_v53, %v1631_v8  ;;  %v1639_v48 = vor.u32 1.1754944e-38, %v1638_v39  ;;  %vm7551_vm2 = vmor %vm1617_vm1, %vm1618_vm14  ;;  %v7557_v19 = vpack.c.bf16 %v1759_v41, %v1758_v15  ;;  %v1952_v8 = vpop.xlane.xlu0 %1951  ;;  %v1713_v41 = vld [vmem:[%s7321_s24 + $0x58] sm:$0xff] }
 0x5ff   : > { %v7545_v46 = vpop.eup %5511  ;;  %v1644_v43 = vsub.f32 1.0, %v1643_v62  ;;  %v1620_v4 = vsel %vm7551_vm2, %v7486_v58, %v1616_v37  ;;  %vm1637_vm3 = vcmp.eq.f32.partialorder %v1636_v16, 8.507059e+37  ;;  %v1624_v61 = vor.u32 1.1754944e-38, %v1623_v54 }
 0x600   : > { %v7555_v59 = vpop.eup %5513  ;;  %v1659_v50 = vsub.f32 1.0, %v1658_v40  ;;  %v1673_v31 = vmul.f32 %v7545_v46, %v7514_v9  ;;  %v1640_v53 = vsel %vm1637_vm3, %v1639_v48, %v1635_v44  ;;  %vm1622_vm4 = vcmp.eq.f32.partialorder %v1621_v2, 8.507059e+37  ;;  %v7568_v40 = vpop.xlane.xlu1 %1979  ;;  %v1712_v2 = vld [vmem:[%s7321_s24 + $0x50] sm:$0xff] }
 0x601   : > { %v7446_v27 = vpop.f32.mrf.mxu2  ;;  %v1645_v28 = vmul.f32 %v7525_v30, %v1644_v43  ;;  %v1688_v62 = vmul.f32 %v7555_v59, %v7523_v52  ;;  %v1625_v39 = vsel %vm1622_vm4, %v1624_v61, %v1620_v4  ;;  %v1641_v15 = vmul.f32 %v1640_v53, %v6688_v63 }
 0x602   : > { %v1660_v58 = vmul.f32 %v7529_v6, %v1659_v50  ;;  %v1674_v16 = vsub.f32 1.0, %v1673_v31  ;;  %v7575_v54 = vadd.f32 1e-08, %v1952_v8  ;;  %v1626_v43 = vmul.f32 %v1625_v39, %v6645_v38 }
 0x603   : > { %v1646_v44 = vadd.f32 %v7525_v30, %v1645_v28  ;;  %vm1648_vm5 = vweird.f32 %v7525_v30  ;;  %vm1647_vm6 = vweird.f32 %v7499_v0  ;;  %v1653_v48 = vand.u32 2147483648, %v7499_v0 }
 0x604   : > { %v1689_v23 = vsub.f32 1.0, %v1688_v62  ;;  %v1729_v50 = vmul.f32 0.5, %v1713_v41  ;;  %v1745_v4 = vmul.f32 0.5, %v1641_v15  ;;  %v1651_v63 = vand.u32 2147483647, %v7499_v0  ;;  %vm7589_vm9 = vmor %vm1647_vm6, %vm1648_vm5 }
 0x605   : > { %v1661_v61 = vadd.f32 %v7529_v6, %v1660_v58  ;;  %vm1663_vm7 = vweird.f32 %v7529_v6  ;;  %vm1662_vm8 = vweird.f32 %v7497_v13  ;;  %v1668_v38 = vand.u32 2147483648, %v7497_v13 }
 0x606   : > { %v1675_v31 = vmul.f32 %v7545_v46, %v1674_v16  ;;  %v1728_v53 = vmul.f32 0.5, %v1712_v2  ;;  %5515 = vrcp.f32 %v7575_v54  ;;  %v1744_v62 = vmul.f32 0.5, %v1626_v43  ;;  %vm7599_vm10 = vmor %vm1662_vm8, %vm1663_vm7 }
 0x607   : > { %3477 = vmatmul.bf16.gmra.mxu0 %v7459_v29  ;;  %v1650_v0 = vsel %vm7589_vm9, %v7525_v30, %v1646_v44  ;;  %v1666_v8 = vand.u32 2147483647, %v7497_v13  ;;  %v1654_v39 = vor.u32 1.1754944e-38, %v1653_v48  ;;  %v1690_v58 = vmul.f32 %v7555_v59, %v1689_v23  ;;  %v1982_v48 = vpop.xlane.xlu2 %1981 }
 0x608   : > { %v1761_v16 = vadd.f32 %v1745_v4, %v1729_v50  ;;  %vm1652_vm12 = vcmp.eq.f32.partialorder %v1651_v63, 8.507059e+37  ;;  %v1665_v43 = vsel %vm7599_vm10, %v7529_v6, %v1661_v61  ;;  %v1669_v2 = vor.u32 1.1754944e-38, %v1668_v38  ;;  %v1954_v30 = vpop.xlane.xlu1 %1953 }
 0x609   : > { %v7467_v33 = vpop.f32.mrf.mxu2  ;;  %vm1677_vm13 = vweird.f32 %v7514_v9  ;;  %v1683_v13 = vand.u32 2147483648, %v7514_v9  ;;  %v1655_v44 = vsel %vm1652_vm12, %v1654_v39, %v1650_v0  ;;  %v1760_v23 = vadd.f32 %v1744_v62, %v1728_v53  ;;  %v1714_v0 = vld [vmem:[%s7321_s24 + $0x60] sm:$0xff] }
 0x60a   : > { %vm1667_vm14 = vcmp.eq.f32.partialorder %v1666_v8, 8.507059e+37  ;;  %v1676_v28 = vadd.f32 %v7545_v46, %v1675_v31  ;;  %vm1678_vm15 = vweird.f32 %v7545_v46  ;;  %v1698_v50 = vand.u32 2147483648, %v7523_v52  ;;  %v1717_v8 = vld [vmem:[%s7321_s24 + $0x78] sm:$0xff] }
 0x60b   : > { %v1670_v4 = vsel %vm1667_vm14, %v1669_v2, %v1665_v43  ;;  %v1691_v6 = vadd.f32 %v7555_v59, %v1690_v58  ;;  %vm1693_vm1 = vweird.f32 %v7555_v59  ;;  %v7617_v61 = vadd.f32 1e-08, %v1954_v30  ;;  %vm7629_vm3 = vmor %vm1677_vm13, %vm1678_vm15  ;;  %v1715_v2 = vld [vmem:[%s7321_s24 + $0x68] sm:$0xff] }
 0x60c   : > { %v7615_v63 = vpop.eup %5515  ;;  %v7619_v38 = vpack.c.bf16 %v1761_v16, %v1760_v23  ;;  %v1656_v53 = vmul.f32 %v1655_v44, %v6692_v47  ;;  %v1681_v31 = vand.u32 2147483647, %v7514_v9  ;;  %vm1692_vm2 = vweird.f32 %v7523_v52 }
 0x60d   : > { %v7624_v62 = vadd.f32 1e-08, %v1982_v48  ;;  %v1696_v39 = vand.u32 2147483647, %v7523_v52  ;;  %v1684_v58 = vor.u32 1.1754944e-38, %v1683_v13  ;;  %v1671_v47 = vmul.f32 %v1670_v4, %v6675_v26  ;;  %vm7641_vm4 = vmor %vm1692_vm2, %vm1693_vm1 }
 0x60e   : > { %v1680_v15 = vsel %vm7629_vm3, %v7545_v46, %v1676_v28  ;;  %v1699_v9 = vor.u32 1.1754944e-38, %v1698_v50  ;;  %v2000_v43 = vmul.f32 %v7615_v63, %v7575_v54  ;;  %v7648_v52 = vadd.f32 1e-08, %v7568_v40  ;;  %v1958_v50 = vpop.xlane.xlu0 %1957 }
 0x60f   : > { %v1695_v26 = vsel %vm7641_vm4, %v7555_v59, %v1691_v6  ;;  %5517 = vrcp.f32 %v7617_v61  ;;  %v1730_v13 = vmul.f32 0.5, %v1714_v0  ;;  %v1746_v30 = vmul.f32 0.5, %v1656_v53  ;;  %v1716_v0 = vld [vmem:[%s7321_s24 + $0x70] sm:$0xff] }
 0x610   : > { %vm1682_vm5 = vcmp.eq.f32.partialorder %v1681_v31, 8.507059e+37  ;;  %5519 = vrcp.f32 %v7624_v62  ;;  %vm1697_vm6 = vcmp.eq.f32.partialorder %v1696_v39, 8.507059e+37  ;;  %v1731_v48 = vmul.f32 0.5, %v1715_v2 }
 0x611   : > { %v7489_v11 = vpop.f32.mrf.mxu2  ;;  %v1685_v44 = vsel %vm1682_vm5, %v1684_v58, %v1680_v15  ;;  %v1747_v40 = vmul.f32 0.5, %v1671_v47  ;;  %v1700_v23 = vsel %vm1697_vm6, %v1699_v9, %v1695_v26  ;;  %v2001_v28 = vsub.f32 1.0, %v2000_v43 }
 0x612   : > { %5521 = vrcp.f32 %v7648_v52  ;;  %v1762_v59 = vadd.f32 %v1746_v30, %v1730_v13  ;;  %v1686_v4 = vmul.f32 %v1685_v44, %v6706_v32  ;;  %v1701_v6 = vmul.f32 %v1700_v23, %v6710_v10  ;;  %v1956_v13 = vpop.xlane.xlu2 %1955 }
 0x613   : > { %v7663_v31 = vadd.f32 1e-08, %v1958_v50  ;;  %v1763_v58 = vadd.f32 %v1747_v40, %v1731_v48  ;;  %v2002_v47 = vmul.f32 %v7615_v63, %v2001_v28  ;;  %v1732_v43 = vmul.f32 0.5, %v1716_v0 }
 0x614   : > { %v1733_v2 = vmul.f32 0.5, %v1717_v8  ;;  %v1748_v32 = vmul.f32 0.5, %v1686_v4  ;;  %v1749_v48 = vmul.f32 0.5, %v1701_v6  ;;  %vm2004_vm7 = vweird.f32 %v7575_v54 }
 0x615   : > { %v7661_v53 = vpop.eup %5517  ;;  %v7668_v9 = vpack.c.bf16 %v1763_v58, %v1762_v59  ;;  %vm2005_vm8 = vweird.f32 %v7615_v63  ;;  %5523 = vrcp.f32 %v7663_v31  ;;  %v2003_v40 = vadd.f32 %v7615_v63, %v2002_v47 }
 0x616   : > { %v7665_v39 = vpop.eup %5519  ;;  %v2015_v10 = vmul.f32 %v7661_v53, %v7617_v61  ;;  %v2010_v59 = vand.u32 2147483648, %v7575_v54  ;;  %v7688_v6 = vadd.f32 1e-08, %v1956_v13  ;;  %vm7696_vm9 = vmor %vm2004_vm7, %vm2005_vm8  ;;  %v1765_v13 = vadd.f32 %v1749_v48, %v1733_v2 }
 0x617   : > { %3482 = vmatmul.bf16.gmra.mxu0 %v7509_v34  ;;  %v3404_v2 = vpack.c.bf16 %v7489_v11, %v7489_v11  ;;  %vm2214_vm12 = vweird.f32 %v7648_v52  ;;  %vm2020_vm13 = vweird.f32 %v7661_v53  ;;  %vm2019_vm14 = vweird.f32 %v7617_v61 }
 0x618   : > { %v7670_v26 = vpop.eup %5521  ;;  %v2016_v0 = vsub.f32 1.0, %v2015_v10  ;;  %v2007_v10 = vsel %vm7696_vm9, %v7615_v63, %v2003_v40  ;;  %5525 = vrcp.f32 %v7688_v6  ;;  %vm2230_vm15 = vweird.f32 %v7665_v39  ;;  %vm7745_vm2 = vmor %vm2019_vm14, %vm2020_vm13 }
 0x619   : > { %v7516_v7 = vpop.f32.mrf.mxu2  ;;  %v2210_v4 = vmul.f32 %v7670_v26, %v7648_v52  ;;  %vm2215_vm1 = vweird.f32 %v7670_v26  ;;  %vm2229_vm3 = vweird.f32 %v7624_v62  ;;  %vm2049_vm13 = vweird.f32 %v7663_v31 }
 0x61a   : > { %vm7754_vm4 = vmor %vm2229_vm3, %vm2230_vm15 }
 0x61b   : > { %vm7767_vm5 = vmor %vm2214_vm12, %vm2215_vm1  ;;  %vm2034_vm12 = vweird.f32 %v7688_v6 }
 0x621   : > { %v7541_v56 = vpop.f32.mrf.mxu2 }
 0x622   : > { %v3406_v8 = vpack.c.bf16 %v7541_v56, %v7541_v56  ;;  %v3405_v56 = vpack.c.bf16 %v7516_v7, %v7516_v7 }
 0x627   : > { %3487 = vmatmul.bf16.gmra.mxu0 %v7557_v19 }
 0x629   : > { %v7571_v37 = vpop.f32.mrf.mxu2 }
 0x62a   : > { %v3407_v23 = vpack.c.bf16 %v7571_v37, %v7571_v37 }
 0x631   : > { %v7603_v41 = vpop.f32.mrf.mxu2 }
 0x632   : > { %v3408_v30 = vpack.c.bf16 %v7603_v41, %v7603_v41  ;;  %v2008_v41 = vand.u32 2147483647, %v7575_v54  ;;  %v7706_v54 = vpop.eup %5523 }
 0x633   : > { %v7719_v40 = vmul.f32 %v7706_v54, %v7663_v31 }
 0x634   : > { %v3537_v58 = vunpack.c.l.b16 %v3408_v30  ;;  %v3536_v30 = vunpack.c.l.b16 %v3407_v23  ;;  %vm2009_vm10 = vcmp.eq.f32.partialorder %v2008_v41, 8.507059e+37  ;;  %v3403_v23 = vpack.c.bf16 %v7467_v33, %v7467_v33 }
 0x635   : > { %v2218_v41 = vand.u32 2147483647, %v7648_v52  ;;  %v2025_v33 = vand.u32 2147483648, %v7617_v61 }
 0x636   : > { %v3546_v63 = vpack.c.b16 %v3537_v58, %v3536_v30 }
 0x637   : > { %3492 = vmatmul.bf16.gmra.mxu0 %v7619_v38  ;;  %vm2219_vm8 = vcmp.eq.f32.partialorder %v2218_v41, 8.507059e+37 }
 0x639   : > { %v3374_v46 = vpop.f32.mrf.mxu2 }
 0x63a   : > { %v3409_v15 = vpack.c.bf16 %v3374_v46, %v3374_v46  ;;  %v2225_v46 = vmul.f32 %v7665_v39, %v7624_v62 }
 0x63c   : > { %v3538_v28 = vunpack.c.l.b16 %v3409_v15  ;;  %v2226_v15 = vsub.f32 1.0, %v2225_v46 }
 0x63e   : > { %v2227_v7 = vmul.f32 %v7665_v39, %v2226_v15  ;;  %v2023_v15 = vand.u32 2147483647, %v7617_v61  ;;  %v2233_v61 = vand.u32 2147483647, %v7624_v62 }
 0x640   : > { %v2228_v37 = vadd.f32 %v7665_v39, %v2227_v7  ;;  %vm2024_vm6 = vcmp.eq.f32.partialorder %v2023_v15, 8.507059e+37  ;;  %vm2234_vm7 = vcmp.eq.f32.partialorder %v2233_v61, 8.507059e+37  ;;  %v3397_v15 = vpack.c.bf16 %v7323_v25, %v7323_v25  ;;  %v5095_v25 = vld [vmem:[%s7321_s24 + $0xf8] sm:$0xff] }
 0x641   : > { %v3376_v16 = vpop.f32.mrf.mxu2 }
 0x642   : > { %v3410_v44 = vpack.c.bf16 %v3376_v16, %v3376_v16  ;;  %v1764_v16 = vadd.f32 %v1748_v32, %v1732_v43  ;;  %v2017_v43 = vmul.f32 %v7661_v53, %v2016_v0  ;;  %v3535_v32 = vunpack.c.l.b16 %v3406_v8 }
 0x643   : > { %v3402_v0 = vpack.c.bf16 %v7446_v27, %v7446_v27  ;;  %v3533_v8 = vunpack.c.l.b16 %v3404_v2  ;;  %v3532_v27 = vunpack.c.l.b16 %v3403_v23  ;;  %v3526_v30 = vunpack.c.l.b16 %v3397_v15 }
 0x644   : > { %v3539_v50 = vunpack.c.l.b16 %v3410_v44  ;;  %v2011_v44 = vor.u32 1.1754944e-38, %v2010_v59  ;;  %v7715_v46 = vpack.c.bf16 %v1765_v13, %v1764_v16  ;;  %v2220_v59 = vand.u32 2147483648, %v7648_v52 }
 0x645   : > { %v2235_v16 = vand.u32 2147483648, %v7624_v62  ;;  %v3401_v13 = vpack.c.bf16 %v7429_v24, %v7429_v24  ;;  %v3544_v2 = vpack.c.b16 %v3533_v8, %v3532_v27  ;;  %v2232_v62 = vsel %vm7754_vm4, %v7665_v39, %v2228_v37 }
 0x646   : > { %v3547_v47 = vpack.c.b16 %v3539_v50, %v3538_v28  ;;  %v2211_v28 = vsub.f32 1.0, %v2210_v4  ;;  %v7712_v48 = vsel %vm2009_vm10, %v2011_v44, %v2007_v10  ;;  %v3534_v50 = vunpack.c.l.b16 %v3405_v56  ;;  %v1962_v44 = vpop.xlane.xlu2 %1961  ;;  %v5081_v56 = vld [vmem:[%s7321_s24 + $0x88] sm:$0xff] }
 0x647   : > { %3497 = vmatmul.bf16.gmra.mxu0 %v7668_v9  ;;  %v2018_v4 = vadd.f32 %v7661_v53, %v2017_v43  ;;  %v3531_v43 = vunpack.c.l.b16 %v3402_v0  ;;  %v2236_v23 = vor.u32 1.1754944e-38, %v2235_v16  ;;  %v7776_v52 = vadd.f32 1e-08, %v1962_v44 }
 0x648   : > { %3556 = vmatpush.bf16.msra.mxu1 %v3547_v47  ;;  %5391 = vmatpush.bf16.msra.mxu3 %v3547_v47  ;;  %v2212_v11 = vmul.f32 %v7670_v26, %v2211_v28  ;;  %v3545_v58 = vpack.c.b16 %v3535_v32, %v3534_v50  ;;  %v7731_v47 = vpop.eup %5525  ;;  %v3400_v28 = vpack.c.bf16 %v7402_v21, %v7402_v21  ;;  %v2221_v32 = vor.u32 1.1754944e-38, %v2220_v59  ;;  %v1960_v21 = vpop.xlane.xlu1 %1959 }
 0x649   : > { %v2022_v24 = vsel %vm7745_vm2, %v7661_v53, %v2018_v4  ;;  %v2030_v7 = vmul.f32 %v7731_v47, %v7688_v6  ;;  %v3399_v50 = vpack.c.bf16 %v7383_v17, %v7383_v17  ;;  %v2237_v4 = vsel %vm2234_vm7, %v2236_v23, %v2232_v62 }
 0x64a   : > { %v2213_v10 = vadd.f32 %v7670_v26, %v2212_v11  ;;  %v3530_v11 = vunpack.c.l.b16 %v3401_v13  ;;  %v3398_v0 = vpack.c.bf16 %v7351_v5, %v7351_v5  ;;  %v3529_v8 = vunpack.c.l.b16 %v3400_v28 }
 0x64b   : > { %v2031_v17 = vsub.f32 1.0, %v2030_v7  ;;  %v3528_v16 = vunpack.c.l.b16 %v3399_v50  ;;  %v2013_v5 = vmul.f32 %v7712_v48, %v6942_v35  ;;  %v2238_v13 = vmul.f32 %v2237_v4, %v7089_v57 }
 0x64c   : > { %3557 = vmatpush.bf16.msra.mxu1 %v3546_v63  ;;  %5392 = vmatpush.bf16.msra.mxu3 %v3546_v63  ;;  %v2026_v63 = vor.u32 1.1754944e-38, %v2025_v33  ;;  %v2217_v39 = vsel %vm7767_vm5, %v7670_v26, %v2213_v10  ;;  %v7780_v33 = vadd.f32 1e-08, %v1960_v21  ;;  %v2046_v26 = vsub.f32 1.0, %v7719_v40 }
 0x64d   : > { %v2222_v37 = vsel %vm2219_vm8, %v2221_v32, %v2217_v39  ;;  %5527 = vrcp.f32 %v7776_v52  ;;  %v3396_v40 = vpack.c.bf16 %v7293_v20, %v7293_v20  ;;  %v3527_v27 = vunpack.c.l.b16 %v3398_v0  ;;  %v5094_v20 = vld [vmem:[%s7321_s24 + $0xf0] sm:$0xff]  ;;  %v5380_v0 = vld [vmem:[%s8772_s8 + $0x8] sm:$0xff] }
 0x64e   : > { %v2027_v59 = vsel %vm2024_vm6, %v2026_v63, %v2022_v24  ;;  %v3542_v10 = vpack.c.b16 %v3529_v8, %v3528_v16  ;;  %5529 = vrcp.f32 %v7780_v33  ;;  %v2032_v61 = vmul.f32 %v7731_v47, %v2031_v17  ;;  %v5080_v24 = vld [vmem:[%s7321_s24 + $0x80] sm:$0xff] }
 0x64f   : > { %v2028_v41 = vmul.f32 %v2027_v59, %v7084_v12  ;;  %v2223_v35 = vmul.f32 %v2222_v37, %v7070_v18  ;;  %v2047_v12 = vmul.f32 %v7706_v54, %v2046_v26  ;;  %v2055_v57 = vand.u32 2147483648, %v7663_v31 }
 0x650   : > { %3558 = vmatpush.bf16.msra.mxu1 %v3545_v58  ;;  %5393 = vmatpush.bf16.msra.mxu3 %v3545_v58  ;;  %v3543_v58 = vpack.c.b16 %v3531_v43, %v3530_v11  ;;  %v3395_v48 = vpack.c.bf16 %v7271_v51, %v7271_v51  ;;  %v2257_v44 = vmul.f32 0.5, %v5081_v56  ;;  %v2271_v43 = vmul.f32 0.5, %v5095_v25  ;;  %v1966_v37 = vpop.xlane.xlu1 %1965 }
 0x651   : > { %v2273_v28 = vmul.f32 0.5, %v2028_v41  ;;  %v3525_v32 = vunpack.c.l.b16 %v3396_v40  ;;  %v3541_v63 = vpack.c.b16 %v3527_v27, %v3526_v30  ;;  %v2256_v62 = vmul.f32 0.5, %v5080_v24  ;;  %v7858_v30 = vld [vmem:[%s8775_s11 + $0x7] ss:$0 sm:$0xff] }
 0x652   : > { %v2272_v7 = vmul.f32 0.5, %v2013_v5  ;;  %v2270_v18 = vmul.f32 0.5, %v5094_v20  ;;  %v2286_v53 = vmul.f32 0.5, %v2223_v35  ;;  %v2033_v23 = vadd.f32 %v7731_v47, %v2032_v61  ;;  %v5379_v61 = vld [vmem:[%s8772_s8] sm:$0xff] }
 0x653   : > { %vm2035_vm9 = vweird.f32 %v7731_v47  ;;  %v7806_v21 = vpop.eup %5527  ;;  %v2040_v51 = vand.u32 2147483648, %v7688_v6  ;;  %v3524_v50 = vunpack.c.l.b16 %v3395_v48  ;;  %v2048_v11 = vadd.f32 %v7706_v54, %v2047_v12 }
 0x654   : > { %3559 = vmatpush.bf16.msra.mxu1 %v3544_v2  ;;  %5394 = vmatpush.bf16.msra.mxu3 %v3544_v2  ;;  %v2287_v2 = vmul.f32 0.5, %v2238_v13  ;;  %vm2050_vm10 = vweird.f32 %v7706_v54  ;;  %v7811_v39 = vpop.eup %5529  ;;  %v2289_v59 = vadd.f32 %v2273_v28, %v2257_v44  ;;  %v2038_v8 = vand.u32 2147483647, %v7688_v6  ;;  %vm7821_vm14 = vmor %vm2034_vm12, %vm2035_vm9  ;;  %v1964_v13 = vpop.xlane.xlu0 %1963  ;;  %v5082_v28 = vld [vmem:[%s7321_s24 + $0x90] sm:$0xff] }
 0x655   : > { %v2053_v26 = vand.u32 2147483647, %v7663_v31  ;;  %v2075_v15 = vmul.f32 %v7806_v21, %v7776_v52  ;;  %v2288_v16 = vadd.f32 %v2272_v7, %v2256_v62  ;;  %v2302_v5 = vadd.f32 %v2286_v53, %v2270_v18  ;;  %vm7833_vm15 = vmor %vm2049_vm13, %vm2050_vm10 }
 0x656   : > { %v2303_v4 = vadd.f32 %v2287_v2, %v2271_v43  ;;  %v2037_v6 = vsel %vm7821_vm14, %v7731_v47, %v2033_v23  ;;  %v2060_v31 = vmul.f32 %v7811_v39, %v7780_v33  ;;  %v2041_v40 = vor.u32 1.1754944e-38, %v2040_v51  ;;  %v5083_v2 = vld [vmem:[%s7321_s24 + $0x98] sm:$0xff] }
 0x657   : > { %3502 = vmatmul.bf16.gmra.mxu0 %v7715_v46  ;;  %v2056_v56 = vor.u32 1.1754944e-38, %v2055_v57  ;;  %v7842_v47 = vpack.c.bf16 %v2289_v59, %v2288_v16  ;;  %vm2039_vm1 = vcmp.eq.f32.partialorder %v2038_v8, 8.507059e+37  ;;  %v7849_v24 = vadd.f32 1e-08, %v1966_v37 }
 0x658   : > { %3560 = vmatpush.bf16.msra.mxu1 %v3543_v58  ;;  %5395 = vmatpush.bf16.msra.mxu3 %v3543_v58  ;;  %v3540_v58 = vpack.c.b16 %v3525_v32, %v3524_v50  ;;  %v7844_v25 = vpack.c.bf16 %v2303_v4, %v2302_v5  ;;  %v2042_v35 = vsel %vm2039_vm1, %v2041_v40, %v2037_v6  ;;  %vm2054_vm2 = vcmp.eq.f32.partialorder %v2053_v26, 8.507059e+37  ;;  %v1968_v5 = vpop.xlane.xlu2 %1967 }
 0x659   : > { %v7851_v12 = vadd.f32 1e-08, %v1964_v13  ;;  %v2061_v48 = vsub.f32 1.0, %v2060_v31  ;;  %v2043_v20 = vmul.f32 %v2042_v35, %v7103_v49  ;;  %5531 = vrcp.f32 %v7849_v24 }
 0x65a   : > { %v2258_v18 = vmul.f32 0.5, %v5082_v28  ;;  %v2070_v49 = vand.u32 2147483648, %v7780_v33  ;;  %v2259_v23 = vmul.f32 0.5, %v5083_v2  ;;  %vm2080_vm4 = vweird.f32 %v7806_v21 }
 0x65b   : > { %5533 = vrcp.f32 %v7851_v12  ;;  %v2062_v32 = vmul.f32 %v7811_v39, %v2061_v48  ;;  %v2274_v53 = vmul.f32 0.5, %v2043_v20  ;;  %v2085_v59 = vand.u32 2147483648, %v7776_v52 }
 0x65c   : > { %3561 = vmatpush.bf16.msra.mxu1 %v3542_v10  ;;  %5396 = vmatpush.bf16.msra.mxu3 %v3542_v10  ;;  %v2052_v10 = vsel %vm7833_vm15, %v7706_v54, %v2048_v11  ;;  %v2076_v54 = vsub.f32 1.0, %v2075_v15  ;;  %vm2065_vm5 = vweird.f32 %v7811_v39  ;;  %vm2079_vm6 = vweird.f32 %v7776_v52  ;;  %v1970_v13 = vpop.xlane.xlu0 %1969 }
 0x65d   : > { %v2057_v57 = vsel %vm2054_vm2, %v2056_v56, %v2052_v10  ;;  %v2083_v17 = vand.u32 2147483647, %v7776_v52  ;;  %vm2064_vm8 = vweird.f32 %v7780_v33  ;;  %v2068_v37 = vand.u32 2147483647, %v7780_v33  ;;  %vm7884_vm9 = vmor %vm2079_vm6, %vm2080_vm4 }
 0x65e   : > { %v2058_v44 = vmul.f32 %v2057_v57, %v6974_v36  ;;  %v2077_v43 = vmul.f32 %v7806_v21, %v2076_v54  ;;  %vm7890_vm10 = vmor %vm2064_vm8, %vm2065_vm5  ;;  %v2086_v31 = vor.u32 1.1754944e-38, %v2085_v59  ;;  %v2071_v56 = vor.u32 1.1754944e-38, %v2070_v49 }
 0x65f   : > { %v7873_v11 = vpop.eup %5531  ;;  %vm2084_vm12 = vcmp.eq.f32.partialorder %v2083_v17, 8.507059e+37  ;;  %v7904_v54 = vadd.f32 1e-08, %v1968_v5  ;;  %vm2069_vm13 = vcmp.eq.f32.partialorder %v2068_v37, 8.507059e+37  ;;  %v7906_v57 = vadd.f32 1e-08, %v1970_v13 }
 0x660   : > { %3562 = vmatpush.bf16.msra.mxu1 %v3541_v63  ;;  %5397 = vmatpush.bf16.msra.mxu3 %v3541_v63  ;;  %v2275_v51 = vmul.f32 0.5, %v2058_v44  ;;  %v2078_v50 = vadd.f32 %v7806_v21, %v2077_v43  ;;  %v2105_v16 = vmul.f32 %v7873_v11, %v7849_v24  ;;  %v5085_v43 = vld [vmem:[%s7321_s24 + $0xa8] sm:$0xff]  ;;  %vm2110_vm15 = vweird.f32 %v7873_v11 }
 0x661   : > { %v7878_v8 = vpop.eup %5533  ;;  %5535 = vrcp.f32 %v7904_v54  ;;  %v2115_v59 = vand.u32 2147483648, %v7849_v24  ;;  %vm2109_vm2 = vweird.f32 %v7849_v24  ;;  %vm2094_vm4 = vweird.f32 %v7851_v12 }
 0x662   : > { %v2291_v6 = vadd.f32 %v2275_v51, %v2259_v23  ;;  %v2082_v52 = vsel %vm7884_vm9, %v7806_v21, %v2078_v50  ;;  %v2090_v33 = vmul.f32 %v7878_v8, %v7851_v12  ;;  %v2106_v48 = vsub.f32 1.0, %v2105_v16  ;;  %vm7934_vm5 = vmor %vm2109_vm2, %vm2110_vm15 }
 0x663   : > { %v2087_v21 = vsel %vm2084_vm12, %v2086_v31, %v2082_v52  ;;  %5537 = vrcp.f32 %v7906_v57  ;;  %vm2095_vm1 = vweird.f32 %v7878_v8  ;;  %v2098_v15 = vand.u32 2147483647, %v7851_v12 }
 0x664   : > { %v3468_v27 = vpop.f32.mrf.mxu0  ;;  %3563 = vmatpush.bf16.msra.mxu1 %v3540_v58  ;;  %5398 = vmatpush.bf16.msra.mxu3 %v3540_v58  ;;  %v2290_v58 = vadd.f32 %v2274_v53, %v2258_v18  ;;  %v2088_v44 = vmul.f32 %v2087_v21, %v7124_v45  ;;  %v2107_v2 = vmul.f32 %v7873_v11, %v2106_v48  ;;  %v2261_v53 = vmul.f32 0.5, %v5085_v43  ;;  %vm7940_vm6 = vmor %vm2094_vm4, %vm2095_vm1  ;;  %v5087_v43 = vld [vmem:[%s7321_s24 + $0xb8] sm:$0xff] }
 0x665   : > { %v3606_v63 = vadd.f32 %v7858_v30, %v3468_v27  ;;  %v2100_v45 = vand.u32 2147483648, %v7851_v12  ;;  %vm2099_vm8 = vcmp.eq.f32.partialorder %v2098_v15, 8.507059e+37  ;;  %vm2139_vm15 = vweird.f32 %v7906_v57 }
 0x666   : > { %v7902_v35 = vpack.c.bf16 %v2291_v6, %v2290_v58  ;;  %v2277_v49 = vmul.f32 0.5, %v2088_v44  ;;  %v1974_v6 = vpop.xlane.xlu2 %1973  ;;  %v2143_v16 = vand.u32 2147483647, %v7906_v57 }
 0x667   : > { %3564 = vmatmul.bf16.vlgmr.msra.gmra.mxu1 %v7842_v47  ;;  %3599 = vmatmul.bf16.vlgmr.msra.gmra.mxu3 %v7844_v25  ;;  %v3670_v4 = vmul.f32 0.01, %v3606_v63  ;;  %vm3638_vm7 = vcmp.ge.f32.partialorder %v3606_v63, 0.0  ;;  %v7923_v50 = vpop.eup %5535  ;;  %v7954_v21 = vadd.f32 1e-08, %v1974_v6 }
 0x668   : > { %3820 = vmatpush.bf16.msrb.mxu3 %v5380_v0  ;;  %v2063_v0 = vadd.f32 %v7811_v39, %v2062_v32  ;;  %v5084_v32 = vld [vmem:[%s7321_s24 + $0xa0] sm:$0xff]  ;;  %v2293_v17 = vadd.f32 %v2277_v49, %v2261_v53  ;;  %v2120_v5 = vmul.f32 %v7923_v50, %v7904_v54  ;;  %v2263_v53 = vmul.f32 0.5, %v5087_v43 }
 0x669   : > { %v3702_v40 = vsel %vm3638_vm7, %v3606_v63, %v3670_v4  ;;  %v2260_v23 = vmul.f32 0.5, %v5084_v32  ;;  %v7928_v58 = vpop.eup %5537  ;;  %5539 = vrcp.f32 %v7954_v21  ;;  %v5086_v32 = vld [vmem:[%s7321_s24 + $0xb0] sm:$0xff]  ;;  %vm2144_vm4 = vcmp.eq.f32.partialorder %v2143_v16, 8.507059e+37 }
 0x66a   : > { %v2067_v10 = vsel %vm7890_vm10, %v7811_v39, %v2063_v0  ;;  %v2091_v39 = vsub.f32 1.0, %v2090_v33  ;;  %v2135_v12 = vmul.f32 %v7928_v58, %v7906_v57  ;;  %v2116_v33 = vor.u32 1.1754944e-38, %v2115_v59 }
 0x66b   : > { %v2072_v20 = vsel %vm2069_vm13, %v2071_v56, %v2067_v10  ;;  %v1972_v10 = vpop.xlane.xlu1 %1971  ;;  %v2121_v48 = vsub.f32 1.0, %v2120_v5  ;;  %vm2125_vm10 = vweird.f32 %v7923_v50  ;;  %vm2140_vm12 = vweird.f32 %v7928_v58 }
 0x66c   : > { %3821 = vmatpush.bf16.msrb.mxu3 %v5379_v61  ;;  %v3470_v62 = vpop.f32.mrf.mxu0  ;;  %v2073_v28 = vmul.f32 %v2072_v20, %v7095_v3  ;;  %v2092_v63 = vmul.f32 %v7878_v8, %v2091_v39  ;;  %v2136_v39 = vsub.f32 1.0, %v2135_v12  ;;  %vm2124_vm13 = vweird.f32 %v7904_v54  ;;  %vm7993_vm2 = vmor %vm2139_vm15, %vm2140_vm12  ;;  %v1976_v12 = vpop.xlane.xlu0 %1975 }
 0x66d   : > { %v3607_v7 = vadd.f32 %v7858_v30, %v3470_v62  ;;  %vm7983_vm1 = vmor %vm2124_vm13, %vm2125_vm10 }
 0x66e   : > { %v2276_v51 = vmul.f32 0.5, %v2073_v28  ;;  %v2093_v0 = vadd.f32 %v7878_v8, %v2092_v63  ;;  %v2137_v63 = vmul.f32 %v7928_v58, %v2136_v39 }
 0x66f   : > { %vm3639_vm3 = vcmp.ge.f32.partialorder %v3607_v7, 0.0  ;;  %v3671_v36 = vmul.f32 0.01, %v3607_v7 }
 0x670   : > { %v2292_v41 = vadd.f32 %v2276_v51, %v2260_v23 }
 0x671   : > { %v3703_v26 = vsel %vm3639_vm3, %v3607_v7, %v3671_v36  ;;  %v2108_v36 = vadd.f32 %v7873_v11, %v2107_v2  ;;  %v2122_v2 = vmul.f32 %v7923_v50, %v2121_v48 }
 0x672   : > { %v3734_v61 = vpack.c.bf16 %v3703_v26, %v3702_v40  ;;  %v2113_v26 = vand.u32 2147483647, %v7849_v24  ;;  %v2097_v40 = vsel %vm7940_vm6, %v7878_v8, %v2093_v0  ;;  %v7958_v8 = vadd.f32 1e-08, %v1972_v10 }
 0x673   : > { %v2112_v24 = vsel %vm7934_vm5, %v7873_v11, %v2108_v36  ;;  %v2123_v51 = vadd.f32 %v7923_v50, %v2122_v2  ;;  %v2130_v36 = vand.u32 2147483648, %v7904_v54  ;;  %v1978_v5 = vpop.xlane.xlu1 %1977  ;;  %v5089_v2 = vld [vmem:[%s7321_s24 + $0xc8] sm:$0xff] }
 0x674   : > { %v3473_v27 = vpop.f32.mrf.mxu0  ;;  %vm2114_vm7 = vcmp.eq.f32.partialorder %v2113_v26, 8.507059e+37  ;;  %5541 = vrcp.f32 %v7958_v8  ;;  %v8005_v10 = vadd.f32 1e-08, %v1978_v5  ;;  %vm2154_vm12 = vweird.f32 %v7958_v8 }
 0x675   : > { %v3608_v62 = vadd.f32 %v7858_v30, %v3473_v27  ;;  %v2101_v27 = vor.u32 1.1754944e-38, %v2100_v45  ;;  %v2117_v11 = vsel %vm2114_vm7, %v2116_v33, %v2112_v24  ;;  %v2262_v45 = vmul.f32 0.5, %v5086_v32 }
 0x676   : > { %v2118_v44 = vmul.f32 %v2117_v11, %v7117_v22  ;;  %v2145_v22 = vand.u32 2147483648, %v7906_v57  ;;  %v2131_v33 = vor.u32 1.1754944e-38, %v2130_v36  ;;  %v8007_v11 = vadd.f32 1e-08, %v1976_v12 }
 0x677   : > { %3569 = vmatmul.bf16.gmra.mxu1 %v7902_v35  ;;  %5280 = vmatmul.msk.bf16.vlgmr.msrb.gmra.mxu3 %vm756_vm0, %v3734_v61  ;;  %v3672_v4 = vmul.f32 0.01, %v3608_v62  ;;  %vm3640_vm3 = vcmp.ge.f32.partialorder %v3608_v62, 0.0  ;;  %v7952_v61 = vpack.c.bf16 %v2293_v17, %v2292_v41  ;;  %v2102_v20 = vsel %vm2099_vm8, %v2101_v27, %v2097_v40 }
 0x678   : > { %v2103_v28 = vmul.f32 %v2102_v20, %v7001_v1  ;;  %v2279_v49 = vmul.f32 0.5, %v2118_v44  ;;  %v2128_v17 = vand.u32 2147483647, %v7904_v54  ;;  %v2127_v54 = vsel %vm7983_vm1, %v7923_v50, %v2123_v51 }
 0x679   : > { %v3704_v13 = vsel %vm3640_vm3, %v3608_v62, %v3672_v4  ;;  %v2138_v4 = vadd.f32 %v7928_v58, %v2137_v63  ;;  %v2146_v24 = vor.u32 1.1754944e-38, %v2145_v22  ;;  %5543 = vrcp.f32 %v8005_v10 }
 0x67a   : > { %v2278_v23 = vmul.f32 0.5, %v2103_v28  ;;  %v2295_v0 = vadd.f32 %v2279_v49, %v2263_v53  ;;  %vm2129_vm3 = vcmp.eq.f32.partialorder %v2128_v17, 8.507059e+37  ;;  %v5088_v28 = vld [vmem:[%s7321_s24 + $0xc0] sm:$0xff]  ;;  %5545 = vrcp.f32 %v8007_v11 }
 0x67b   : > { %v2142_v57 = vsel %vm7993_vm2, %v7928_v58, %v2138_v4  ;;  %vm2169_vm7 = vweird.f32 %v7954_v21  ;;  %v2173_v4 = vand.u32 2147483647, %v7954_v21  ;;  %v2158_v5 = vand.u32 2147483647, %v7958_v8 }
 0x67c   : > { %v3475_v7 = vpop.f32.mrf.mxu0  ;;  %v2294_v41 = vadd.f32 %v2278_v23, %v2262_v45  ;;  %v2147_v58 = vsel %vm2144_vm4, %v2146_v24, %v2142_v57  ;;  %v2175_v23 = vand.u32 2147483648, %v7954_v21  ;;  %vm2199_vm4 = vweird.f32 %v8005_v10 }
 0x67d   : > { %v3609_v18 = vadd.f32 %v7858_v30, %v3475_v7  ;;  %v2148_v44 = vmul.f32 %v2147_v58, %v7031_v14  ;;  %vm2159_vm15 = vcmp.eq.f32.partialorder %v2158_v5, 8.507059e+37  ;;  %v8900_v58 = vld [vmem:[#allocation35_spill] sm:$0xff] }
 0x67e   : > { %v8003_v50 = vpack.c.bf16 %v2295_v0, %v2294_v41  ;;  %v2160_v0 = vand.u32 2147483648, %v7958_v8  ;;  %v2176_v41 = vor.u32 1.1754944e-38, %v2175_v23  ;;  %v2203_v23 = vand.u32 2147483647, %v8005_v10  ;;  %v5384_v5 = vld [vmem:[%s8774_s10 + $0x8] sm:$0xff] }
 0x67f   : > { %vm3641_vm14 = vcmp.ge.f32.partialorder %v3609_v18, 0.0  ;;  %v3673_v3 = vmul.f32 0.01, %v3609_v18  ;;  %v2281_v49 = vmul.f32 0.5, %v2148_v44 }
 0x681   : > { %v3705_v37 = vsel %vm3641_vm14, %v3609_v18, %v3673_v3  ;;  %v7973_v3 = vpop.eup %5539 }
 0x682   : > { %v3735_v56 = vpack.c.bf16 %v3705_v37, %v3704_v13  ;;  %v7980_v26 = vpop.eup %5541  ;;  %v2165_v6 = vmul.f32 %v7973_v3, %v7954_v21  ;;  %vm2170_vm6 = vweird.f32 %v7973_v3 }
 0x683   : > { %v2150_v40 = vmul.f32 %v7980_v26, %v7958_v8  ;;  %v8023_v45 = vpop.eup %5543  ;;  %vm2155_vm8 = vweird.f32 %v7980_v26  ;;  %vm8033_vm10 = vmor %vm2169_vm7, %vm2170_vm6  ;;  %vm2184_vm7 = vweird.f32 %v8007_v11 }
 0x684   : > { %v3478_v31 = vpop.f32.mrf.mxu0  ;;  %v2166_v48 = vsub.f32 1.0, %v2165_v6  ;;  %v8028_v51 = vpop.eup %5545  ;;  %v2195_v16 = vmul.f32 %v8023_v45, %v8005_v10  ;;  %vm2156_vm13 = vmor %vm2154_vm12, %vm2155_vm8  ;;  %vm2200_vm1 = vweird.f32 %v8023_v45 }
 0x685   : > { %v3610_v62 = vadd.f32 %v7858_v30, %v3478_v31  ;;  %v2151_v20 = vsub.f32 1.0, %v2150_v40  ;;  %v2180_v21 = vmul.f32 %v8028_v51, %v8007_v11  ;;  %v8899_v40 = vld [vmem:[#allocation37_spill] sm:$0xff]  ;;  %vm8074_vm6 = vmor %vm2199_vm4, %vm2200_vm1 }
 0x686   : > { %v2167_v43 = vmul.f32 %v7973_v3, %v2166_v48  ;;  %v5091_v48 = vld [vmem:[%s7321_s24 + $0xd8] sm:$0xff] }
 0x687   : > { %3574 = vmatmul.bf16.gmra.mxu1 %v7952_v61  ;;  %5281 = vmatmul.msk.bf16.gmra.mxu3 %vm756_vm0, %v3735_v56  ;;  %v3674_v59 = vmul.f32 0.01, %v3610_v62  ;;  %vm3642_vm14 = vcmp.ge.f32.partialorder %v3610_v62, 0.0  ;;  %v2132_v56 = vsel %vm2129_vm3, %v2131_v33, %v2127_v54  ;;  %v2161_v33 = vor.u32 1.1754944e-38, %v2160_v0 }
 0x688   : > { %v2133_v39 = vmul.f32 %v2132_v56, %v7137_v55  ;;  %v2265_v55 = vmul.f32 0.5, %v5089_v2  ;;  %v2168_v14 = vadd.f32 %v7973_v3, %v2167_v43  ;;  %v5386_v56 = vld [vmem:[%s8774_s10 + $0x18] sm:$0xff]  ;;  %vm2185_vm3 = vweird.f32 %v8028_v51 }
 0x689   : > { %v3706_v13 = vsel %vm3642_vm14, %v3610_v62, %v3674_v59  ;;  %v2152_v62 = vmul.f32 %v7980_v26, %v2151_v20  ;;  %vm2174_vm14 = vcmp.eq.f32.partialorder %v2173_v4, 8.507059e+37  ;;  %4282 = vmatpush.bf16.msrb.mxu1 %v5386_v56  ;;  %v5385_v4 = vld [vmem:[%s8774_s10 + $0x10] sm:$0xff]  ;;  %vm2186_vm8 = vmor %vm2184_vm7, %vm2185_vm3 }
 0x68a   : > { %v2280_v53 = vmul.f32 0.5, %v2133_v39  ;;  %v2172_v6 = vsel %vm8033_vm10, %v7973_v3, %v2168_v14  ;;  %v2196_v3 = vsub.f32 1.0, %v2195_v16  ;;  %v5090_v39 = vld [vmem:[%s7321_s24 + $0xd0] sm:$0xff] }
 0x68b   : > { %v2153_v59 = vadd.f32 %v7980_v26, %v2152_v62  ;;  %v2266_v62 = vmul.f32 0.5, %v5090_v39 }
 0x68c   : > { %v3480_v7 = vpop.f32.mrf.mxu0 }
 0x68d   : > { %v3611_v18 = vadd.f32 %v7858_v30, %v3480_v7  ;;  %v2157_v8 = vsel %vm2156_vm13, %v7980_v26, %v2153_v59  ;;  %v2197_v26 = vmul.f32 %v8023_v45, %v2196_v3  ;;  %4283 = vmatpush.bf16.msrb.mxu1 %v5385_v4 }
 0x68e   : > { %v2162_v57 = vsel %vm2159_vm15, %v2161_v33, %v2157_v8  ;;  %v5383_v8 = vld [vmem:[%s8774_s10] sm:$0xff]  ;;  %v5093_v33 = vld [vmem:[%s7321_s24 + $0xe8] sm:$0xff] }
 0x68f   : > { %vm3643_vm9 = vcmp.ge.f32.partialorder %v3611_v18, 0.0  ;;  %v3675_v1 = vmul.f32 0.01, %v3611_v18  ;;  %v2163_v20 = vmul.f32 %v2162_v57, %v8900_v58  ;;  %v5092_v57 = vld [vmem:[%s7321_s24 + $0xe0] sm:$0xff] }
 0x691   : > { %v3707_v37 = vsel %vm3643_vm9, %v3611_v18, %v3675_v1  ;;  %v2264_v18 = vmul.f32 0.5, %v5088_v28  ;;  %4284 = vmatpush.bf16.msrb.mxu1 %v5384_v5 }
 0x692   : > { %v3736_v27 = vpack.c.bf16 %v3707_v37, %v3706_v13  ;;  %v2297_v37 = vadd.f32 %v2281_v49, %v2265_v55  ;;  %v2177_v13 = vsel %vm2174_vm14, %v2176_v41, %v2172_v6  ;;  %v2205_v55 = vand.u32 2147483648, %v8005_v10 }
 0x693   : > { %v2296_v36 = vadd.f32 %v2280_v53, %v2264_v18  ;;  %v2282_v18 = vmul.f32 0.5, %v2163_v20  ;;  %v2198_v53 = vadd.f32 %v8023_v45, %v2197_v26  ;;  %v2268_v26 = vmul.f32 0.5, %v5092_v57 }
 0x694   : > { %v3483_v31 = vpop.f32.mrf.mxu0 }
 0x695   : > { %v3612_v32 = vadd.f32 %v7858_v30, %v3483_v31  ;;  %v8048_v12 = vpack.c.bf16 %v2297_v37, %v2296_v36  ;;  %v2181_v31 = vsub.f32 1.0, %v2180_v21  ;;  %v2298_v0 = vadd.f32 %v2282_v18, %v2266_v62  ;;  %4285 = vmatpush.bf16.msrb.mxu1 %v5383_v8 }
 0x696   : > { %v2202_v10 = vsel %vm8074_vm6, %v8023_v45, %v2198_v53  ;;  %v2206_v37 = vor.u32 1.1754944e-38, %v2205_v55 }
 0x697   : > { %3579 = vmatmul.bf16.gmra.mxu1 %v8003_v50  ;;  %5282 = vmatmul.msk.bf16.gmra.mxu3 %vm756_vm0, %v3736_v27  ;;  %v3676_v1 = vmul.f32 0.01, %v3612_v32  ;;  %vm3644_vm9 = vcmp.ge.f32.partialorder %v3612_v32, 0.0  ;;  %v2178_v27 = vmul.f32 %v2177_v13, %v8899_v40  ;;  %v2182_v44 = vmul.f32 %v8028_v51, %v2181_v31  ;;  %v8904_v13 = vld [vmem:[#allocation34_spill] sm:$0xff] }
 0x699   : > { %v3708_v54 = vsel %vm3644_vm9, %v3612_v32, %v3676_v1  ;;  %v2267_v32 = vmul.f32 0.5, %v5091_v48  ;;  %v2190_v1 = vand.u32 2147483648, %v8007_v11  ;;  %vm2204_vm9 = vcmp.eq.f32.partialorder %v2203_v23, 8.507059e+37 }
 0x69a   : > { %v2207_v41 = vsel %vm2204_vm9, %v2206_v37, %v2202_v10 }
 0x69b   : > { %v2191_v45 = vor.u32 1.1754944e-38, %v2190_v1  ;;  %v8905_v1 = vld [vmem:[#allocation3_spill] sm:$0xff] }
 0x69c   : > { %v3485_v63 = vpop.f32.mrf.mxu0 }
 0x69d   : > { %v3613_v7 = vadd.f32 %v7858_v30, %v3485_v63  ;;  %v2283_v63 = vmul.f32 0.5, %v2178_v27  ;;  %v2269_v27 = vmul.f32 0.5, %v5093_v33 }
 0x69f   : > { %vm3645_vm5 = vcmp.ge.f32.partialorder %v3613_v7, 0.0  ;;  %v3677_v22 = vmul.f32 0.01, %v3613_v7  ;;  %v2299_v14 = vadd.f32 %v2283_v63, %v2267_v32 }
 0x6a1   : > { %v3709_v17 = vsel %vm3645_vm5, %v3613_v7, %v3677_v22  ;;  %v2183_v22 = vadd.f32 %v8028_v51, %v2182_v44  ;;  %v8091_v21 = vpack.c.bf16 %v2299_v14, %v2298_v0 }
 0x6a2   : > { %v3737_v24 = vpack.c.bf16 %v3709_v17, %v3708_v54  ;;  %v2188_v17 = vand.u32 2147483647, %v8007_v11 }
 0x6a3   : > { %v2187_v11 = vsel %vm2186_vm8, %v8028_v51, %v2183_v22 }
 0x6a4   : > { %v3488_v52 = vpop.f32.mrf.mxu0  ;;  %vm2189_vm10 = vcmp.eq.f32.partialorder %v2188_v17, 8.507059e+37 }
 0x6a5   : > { %v3614_v28 = vadd.f32 %v7858_v30, %v3488_v52  ;;  %v2192_v54 = vsel %vm2189_vm10, %v2191_v45, %v2187_v11  ;;  %v8903_v52 = vld [vmem:[#allocation36_spill] sm:$0xff]  ;;  %v8908_v11 = vld [vmem:[#allocation5_spill] sm:$0xff] }
 0x6a6   : > { %v2193_v3 = vmul.f32 %v2192_v54, %v8904_v13  ;;  %v8909_v45 = vld [vmem:[#allocation4_spill] sm:$0xff] }
 0x6a7   : > { %3584 = vmatmul.bf16.gmra.mxu1 %v8048_v12  ;;  %5283 = vmatmul.msk.bf16.gmra.mxu3 %vm756_vm0, %v3737_v24  ;;  %v3678_v49 = vmul.f32 0.01, %v3614_v28  ;;  %vm3646_vm5 = vcmp.ge.f32.partialorder %v3614_v28, 0.0  ;;  %v2208_v24 = vmul.f32 %v2207_v41, %v8903_v52  ;;  %v8910_v41 = vpack.c.bf16 %v8908_v11, %v8909_v45 }
 0x6a8   : > { %v2284_v58 = vmul.f32 0.5, %v2193_v3 }
 0x6a9   : > { %v3710_v15 = vsel %vm3646_vm5, %v3614_v28, %v3678_v49  ;;  %v2285_v56 = vmul.f32 0.5, %v2208_v24 }
 0x6aa   : > { %v2300_v28 = vadd.f32 %v2284_v58, %v2268_v26 }
 0x6ab   : > { %v2301_v39 = vadd.f32 %v2285_v56, %v2269_v27 }
 0x6ac   : > { %v3490_v43 = vpop.f32.mrf.mxu0 }
 0x6ad   : > { %v3615_v2 = vadd.f32 %v7858_v30, %v3490_v43  ;;  %v8105_v63 = vpack.c.bf16 %v2301_v39, %v2300_v28  ;;  %v8911_v39 = vld [vmem:[#allocation7_spill] sm:$0xff] }
 0x6af   : > { %vm3647_vm2 = vcmp.ge.f32.partialorder %v3615_v2, 0.0  ;;  %v3679_v7 = vmul.f32 0.01, %v3615_v2 }
 0x6b1   : > { %v3711_v36 = vsel %vm3647_vm2, %v3615_v2, %v3679_v7 }
 0x6b2   : > { %v3738_v6 = vpack.c.bf16 %v3711_v36, %v3710_v15  ;;  %v8906_v36 = vld [vmem:[#allocation2_spill] sm:$0xff] }
 0x6b3   : > { %v8907_v59 = vpack.c.bf16 %v8905_v1, %v8906_v36  ;;  %v8914_v1 = vld [vmem:[#allocation9_spill] sm:$0xff]  ;;  %v8915_v36 = vld [vmem:[#allocation8_spill] sm:$0xff] }
 0x6b4   : > { %v3493_v16 = vpop.f32.mrf.mxu0 }
 0x6b5   : > { %v3616_v51 = vadd.f32 %v7858_v30, %v3493_v16 }
 0x6b7   : > { %3589 = vmatmul.bf16.gmra.mxu1 %v8091_v21  ;;  %5284 = vmatmul.msk.bf16.gmra.mxu3 %vm756_vm0, %v3738_v6  ;;  %v3680_v20 = vmul.f32 0.01, %v3616_v51  ;;  %vm3648_vm13 = vcmp.ge.f32.partialorder %v3616_v51, 0.0 }
 0x6b9   : > { %v3712_v43 = vsel %vm3648_vm13, %v3616_v51, %v3680_v20 }
 0x6bc   : > { %v3495_v31 = vpop.f32.mrf.mxu0 }
 0x6bd   : > { %v3617_v40 = vadd.f32 %v7858_v30, %v3495_v31 }
 0x6bf   : > { %vm3649_vm12 = vcmp.ge.f32.partialorder %v3617_v40, 0.0  ;;  %v3681_v48 = vmul.f32 0.01, %v3617_v40 }
 0x6c1   : > { %v3713_v44 = vsel %vm3649_vm12, %v3617_v40, %v3681_v48 }
 0x6c2   : > { %v3739_v32 = vpack.c.bf16 %v3713_v44, %v3712_v43  ;;  %v8912_v44 = vld [vmem:[#allocation6_spill] sm:$0xff] }
 0x6c3   : > { %v8913_v28 = vpack.c.bf16 %v8911_v39, %v8912_v44 }
 0x6c4   : > { %v3498_v2 = vpop.f32.mrf.mxu0 }
 0x6c5   : > { %v3618_v62 = vadd.f32 %v7858_v30, %v3498_v2 }
 0x6c7   : > { %3594 = vmatmul.bf16.gmra.mxu1 %v8105_v63  ;;  %5285 = vmatmul.msk.bf16.gmra.mxu3 %vm756_vm0, %v3739_v32  ;;  %v3682_v55 = vmul.f32 0.01, %v3618_v62  ;;  %vm3650_vm15 = vcmp.ge.f32.partialorder %v3618_v62, 0.0 }
 0x6c9   : > { %v3714_v22 = vsel %vm3650_vm15, %v3618_v62, %v3682_v55 }
 0x6cc   : > { %v3500_v7 = vpop.f32.mrf.mxu0 }
 0x6cd   : > { %v3619_v18 = vadd.f32 %v7858_v30, %v3500_v7 }
 0x6cf   : > { %vm3651_vm14 = vcmp.ge.f32.partialorder %v3619_v18, 0.0  ;;  %v3683_v53 = vmul.f32 0.01, %v3619_v18 }
 0x6d1   : > { %v3715_v49 = vsel %vm3651_vm14, %v3619_v18, %v3683_v53 }
 0x6d2   : > { %v3740_v23 = vpack.c.bf16 %v3715_v49, %v3714_v22 }
 0x6d4   : > { %v3503_v14 = vpop.f32.mrf.mxu0 }
 0x6d5   : > { %v3620_v4 = vadd.f32 %v7858_v30, %v3503_v14 }
 0x6d7   : > { %5286 = vmatmul.msk.bf16.gmra.mxu3 %vm756_vm0, %v3740_v23  ;;  %5312 = vmatmul.msk.bf16.vlgmr.msrb.gmra.mxu1 %vm2361_vm11, %v8907_v59  ;;  %v3684_v37 = vmul.f32 0.01, %v3620_v4  ;;  %vm3652_vm2 = vcmp.ge.f32.partialorder %v3620_v4, 0.0  ;;  %v8916_v59 = vpack.c.bf16 %v8914_v1, %v8915_v36 }
 0x6d9   : > { %v3716_v16 = vsel %vm3652_vm2, %v3620_v4, %v3684_v37 }
 0x6dc   : > { %v3505_v0 = vpop.f32.mrf.mxu0 }
 0x6dd   : > { %v3621_v17 = vadd.f32 %v7858_v30, %v3505_v0 }
 0x6df   : > { %vm3653_vm1 = vcmp.ge.f32.partialorder %v3621_v17, 0.0  ;;  %v3685_v10 = vmul.f32 0.01, %v3621_v17 }
 0x6e1   : > { %v3717_v15 = vsel %vm3653_vm1, %v3621_v17, %v3685_v10 }
 0x6e2   : > { %v3741_v6 = vpack.c.bf16 %v3717_v15, %v3716_v16 }
 0x6e4   : > { %v3565_v5 = vpop.f32.mrf.mxu1 }
 0x6e5   : > { %v3622_v52 = vadd.f32 %v7858_v30, %v3565_v5 }
 0x6e7   : > { %5287 = vmatmul.msk.bf16.gmra.mxu3 %vm756_vm0, %v3741_v6  ;;  %5313 = vmatmul.msk.bf16.gmra.mxu1 %vm2361_vm11, %v8910_v41  ;;  %v3686_v3 = vmul.f32 0.01, %v3622_v52  ;;  %vm3654_vm4 = vcmp.ge.f32.partialorder %v3622_v52, 0.0 }
 0x6e9   : > { %v3718_v27 = vsel %vm3654_vm4, %v3622_v52, %v3686_v3 }
 0x6ea   : > { %v3600_v54 = vpop.f32.mrf.mxu3 }
 0x6eb   : > { %v3636_v33 = vadd.f32 %v7858_v30, %v3600_v54 }
 0x6ec   : > { %v3567_v24 = vpop.f32.mrf.mxu1 }
 0x6ed   : > { %v3623_v8 = vadd.f32 %v7858_v30, %v3567_v24  ;;  %v3700_v57 = vmul.f32 0.01, %v3636_v33  ;;  %vm3668_vm5 = vcmp.ge.f32.partialorder %v3636_v33, 0.0 }
 0x6ef   : > { %vm3655_vm3 = vcmp.ge.f32.partialorder %v3623_v8, 0.0  ;;  %v3687_v13 = vmul.f32 0.01, %v3623_v8  ;;  %v8127_v58 = vsel %vm3668_vm5, %v3636_v33, %v3700_v57  ;;  %v8917_v33 = vld [vmem:[#allocation11_spill] sm:$0xff] }
 0x6f1   : > { %v3719_v51 = vsel %vm3655_vm3, %v3623_v8, %v3687_v13  ;;  %v8918_v13 = vld [vmem:[#allocation10_spill] sm:$0xff] }
 0x6f2   : > { %v3602_v31 = vpop.f32.mrf.mxu3  ;;  %v3742_v48 = vpack.c.bf16 %v3719_v51, %v3718_v27  ;;  %v8919_v3 = vpack.c.bf16 %v8917_v33, %v8918_v13 }
 0x6f3   : > { %v3637_v40 = vadd.f32 %v7858_v30, %v3602_v31 }
 0x6f4   : > { %v3570_v56 = vpop.f32.mrf.mxu1 }
 0x6f5   : > { %vm3669_vm6 = vcmp.ge.f32.partialorder %v3637_v40, 0.0  ;;  %v3701_v26 = vmul.f32 0.01, %v3637_v40  ;;  %v3624_v32 = vadd.f32 %v7858_v30, %v3570_v56 }
 0x6f7   : > { %v8129_v20 = vsel %vm3669_vm6, %v3637_v40, %v3701_v26  ;;  %5288 = vmatmul.msk.bf16.gmra.mxu3 %vm756_vm0, %v3742_v48  ;;  %5314 = vmatmul.msk.bf16.gmra.mxu1 %vm2361_vm11, %v8913_v28  ;;  %v3688_v53 = vmul.f32 0.01, %v3624_v32  ;;  %vm3656_vm8 = vcmp.ge.f32.partialorder %v3624_v32, 0.0 }
 0x6f8   : > { %v3749_v43 = vpack.c.bf16 %v8129_v20, %v8127_v58  ;;  %v8936_v58 = vld [vmem:[#allocation22_spill] sm:$0xff] }
 0x6f9   : > { %v3720_v22 = vsel %vm3656_vm8, %v3624_v32, %v3688_v53  ;;  %v8920_v53 = vld [vmem:[#allocation13_spill] sm:$0xff] }
 0x6fa   : > { %v3823_v2 = vpop.f32.mrf.mxu3 }
 0x6fb   : > { %v3903_v15 = vpack.c.bf16 %v3823_v2, %v3823_v2 }
 0x6fc   : > { %v3572_v62 = vpop.f32.mrf.mxu1 }
 0x6fd   : > { %v3625_v7 = vadd.f32 %v7858_v30, %v3572_v62  ;;  %v8149_v11 = vunpack.c.l.b16 %v3903_v15 }
 0x6ff   : > { %vm3657_vm7 = vcmp.ge.f32.partialorder %v3625_v7, 0.0  ;;  %v3689_v18 = vmul.f32 0.01, %v3625_v7 }
 0x701   : > { %v3721_v55 = vsel %vm3657_vm7, %v3625_v7, %v3689_v18 }
 0x702   : > { %v3825_v49 = vpop.f32.mrf.mxu3  ;;  %v3743_v23 = vpack.c.bf16 %v3721_v55, %v3720_v22  ;;  %v8921_v55 = vld [vmem:[#allocation12_spill] sm:$0xff] }
 0x703   : > { %v3904_v0 = vpack.c.bf16 %v3825_v49, %v3825_v49  ;;  %v8922_v49 = vpack.c.bf16 %v8920_v53, %v8921_v55  ;;  %v8926_v53 = vld [vmem:[#allocation17_spill] sm:$0xff]  ;;  %v8927_v55 = vld [vmem:[#allocation16_spill] sm:$0xff] }
 0x704   : > { %v3575_v14 = vpop.f32.mrf.mxu1 }
 0x705   : > { %v3626_v17 = vadd.f32 %v7858_v30, %v3575_v14  ;;  %v8147_v5 = vunpack.c.l.b16 %v3904_v0 }
 0x707   : > { %5289 = vmatmul.msk.bf16.gmra.mxu3 %vm756_vm0, %v3743_v23  ;;  %5315 = vmatmul.msk.bf16.gmra.mxu1 %vm2361_vm11, %v8916_v59  ;;  %v3690_v6 = vmul.f32 0.01, %v3626_v17  ;;  %vm3658_vm10 = vcmp.ge.f32.partialorder %v3626_v17, 0.0  ;;  %v3967_v24 = vpack.c.b16 %v8147_v5, %v8149_v11  ;;  %v8944_v11 = vld [vmem:[#allocation29_spill] sm:$0xff] }
 0x709   : > { %v3722_v54 = vsel %vm3658_vm10, %v3626_v17, %v3690_v6 }
 0x70a   : > { %v3828_v4 = vpop.f32.mrf.mxu3 }
 0x70b   : > { %v3905_v56 = vpack.c.bf16 %v3828_v4, %v3828_v4 }
 0x70c   : > { %v3577_v10 = vpop.f32.mrf.mxu1 }
 0x70d   : > { %v3627_v37 = vadd.f32 %v7858_v30, %v3577_v10  ;;  %v8162_v44 = vunpack.c.l.b16 %v3905_v56 }
 0x70f   : > { %vm3659_vm9 = vcmp.ge.f32.partialorder %v3627_v37, 0.0  ;;  %v3691_v16 = vmul.f32 0.01, %v3627_v37 }
 0x711   : > { %v3723_v45 = vsel %vm3659_vm9, %v3627_v37, %v3691_v16 }
 0x712   : > { %v3830_v41 = vpop.f32.mrf.mxu3  ;;  %v3744_v8 = vpack.c.bf16 %v3723_v45, %v3722_v54  ;;  %v8923_v54 = vld [vmem:[#allocation15_spill] sm:$0xff] }
 0x713   : > { %v3906_v31 = vpack.c.bf16 %v3830_v41, %v3830_v41 }
 0x714   : > { %v3580_v52 = vpop.f32.mrf.mxu1 }
 0x715   : > { %v3628_v57 = vadd.f32 %v7858_v30, %v3580_v52  ;;  %v8160_v26 = vunpack.c.l.b16 %v3906_v31  ;;  %v8924_v52 = vld [vmem:[#allocation14_spill] sm:$0xff] }
 0x717   : > { %5290 = vmatmul.msk.bf16.gmra.mxu3 %vm756_vm0, %v3744_v8  ;;  %5316 = vmatmul.msk.bf16.gmra.mxu1 %vm2361_vm11, %v8919_v3  ;;  %v3692_v39 = vmul.f32 0.01, %v3628_v57  ;;  %vm3660_vm13 = vcmp.ge.f32.partialorder %v3628_v57, 0.0  ;;  %v3968_v7 = vpack.c.b16 %v8160_v26, %v8162_v44  ;;  %v8925_v8 = vpack.c.bf16 %v8923_v54, %v8924_v52 }
 0x719   : > { %v3724_v32 = vsel %vm3660_vm13, %v3628_v57, %v3692_v39 }
 0x71a   : > { %v3833_v51 = vpop.f32.mrf.mxu3 }
 0x71b   : > { %v3907_v59 = vpack.c.bf16 %v3833_v51, %v3833_v51 }
 0x71c   : > { %v3582_v40 = vpop.f32.mrf.mxu1 }
 0x71d   : > { %v3629_v27 = vadd.f32 %v7858_v30, %v3582_v40  ;;  %v8175_v10 = vunpack.c.l.b16 %v3907_v59 }
 0x71f   : > { %vm3661_vm12 = vcmp.ge.f32.partialorder %v3629_v27, 0.0  ;;  %v3693_v48 = vmul.f32 0.01, %v3629_v27 }
 0x721   : > { %v3725_v28 = vsel %vm3661_vm12, %v3629_v27, %v3693_v48 }
 0x722   : > { %v3835_v2 = vpop.f32.mrf.mxu3  ;;  %v3745_v18 = vpack.c.bf16 %v3725_v28, %v3724_v32 }
 0x723   : > { %v3908_v14 = vpack.c.bf16 %v3835_v2, %v3835_v2 }
 0x724   : > { %v3585_v62 = vpop.f32.mrf.mxu1 }
 0x725   : > { %v3630_v23 = vadd.f32 %v7858_v30, %v3585_v62  ;;  %v8173_v0 = vunpack.c.l.b16 %v3908_v14 }
 0x727   : > { %5291 = vmatmul.msk.bf16.gmra.mxu3 %vm756_vm0, %v3745_v18  ;;  %5317 = vmatmul.msk.bf16.gmra.mxu1 %vm2361_vm11, %v8922_v49  ;;  %v3694_v17 = vmul.f32 0.01, %v3630_v23  ;;  %vm3662_vm15 = vcmp.ge.f32.partialorder %v3630_v23, 0.0  ;;  %v3969_v45 = vpack.c.b16 %v8173_v0, %v8175_v10  ;;  %v8928_v49 = vpack.c.bf16 %v8926_v53, %v8927_v55  ;;  %v8941_v10 = vld [vmem:[#allocation27_spill] sm:$0xff] }
 0x729   : > { %v3726_v16 = vsel %vm3662_vm15, %v3630_v23, %v3694_v17 }
 0x72a   : > { %v3838_v22 = vpop.f32.mrf.mxu3 }
 0x72b   : > { %v3909_v57 = vpack.c.bf16 %v3838_v22, %v3838_v22 }
 0x72c   : > { %v3587_v1 = vpop.f32.mrf.mxu1 }
 0x72d   : > { %v3631_v36 = vadd.f32 %v7858_v30, %v3587_v1  ;;  %v8188_v48 = vunpack.c.l.b16 %v3909_v57 }
 0x72f   : > { %vm3663_vm14 = vcmp.ge.f32.partialorder %v3631_v36, 0.0  ;;  %v3695_v4 = vmul.f32 0.01, %v3631_v36 }
 0x731   : > { %v3727_v37 = vsel %vm3663_vm14, %v3631_v36, %v3695_v4 }
 0x732   : > { %v3840_v15 = vpop.f32.mrf.mxu3  ;;  %v3746_v41 = vpack.c.bf16 %v3727_v37, %v3726_v16  ;;  %v8929_v16 = vld [vmem:[#allocation19_spill] sm:$0xff] }
 0x733   : > { %v3910_v13 = vpack.c.bf16 %v3840_v15, %v3840_v15 }
 0x734   : > { %v3590_v6 = vpop.f32.mrf.mxu1 }
 0x735   : > { %v3632_v3 = vadd.f32 %v7858_v30, %v3590_v6  ;;  %v8186_v27 = vunpack.c.l.b16 %v3910_v13  ;;  %v8930_v6 = vld [vmem:[#allocation18_spill] sm:$0xff] }
 0x737   : > { %5292 = vmatmul.msk.bf16.gmra.mxu3 %vm756_vm0, %v3746_v41  ;;  %5318 = vmatmul.msk.bf16.gmra.mxu1 %vm2361_vm11, %v8925_v8  ;;  %v3696_v56 = vmul.f32 0.01, %v3632_v3  ;;  %vm3664_vm2 = vcmp.ge.f32.partialorder %v3632_v3, 0.0  ;;  %v3970_v62 = vpack.c.b16 %v8186_v27, %v8188_v48  ;;  %v8931_v41 = vpack.c.bf16 %v8929_v16, %v8930_v6  ;;  %v8933_v8 = vld [vmem:[#allocation20_spill] sm:$0xff] }
 0x739   : > { %v3728_v2 = vsel %vm3664_vm2, %v3632_v3, %v3696_v56 }
 0x73a   : > { %v3843_v33 = vpop.f32.mrf.mxu3 }
 0x73c   : > { %v3592_v51 = vpop.f32.mrf.mxu1 }
 0x73d   : > { %v3633_v31 = vadd.f32 %v7858_v30, %v3592_v51 }
 0x73f   : > { %vm3665_vm1 = vcmp.ge.f32.partialorder %v3633_v31, 0.0  ;;  %v3697_v40 = vmul.f32 0.01, %v3633_v31 }
 0x741   : > { %v3729_v39 = vsel %vm3665_vm1, %v3633_v31, %v3697_v40 }
 0x742   : > { %v3845_v28 = vpop.f32.mrf.mxu3  ;;  %v3747_v18 = vpack.c.bf16 %v3729_v39, %v3728_v2 }
 0x744   : > { %v3595_v32 = vpop.f32.mrf.mxu1 }
 0x745   : > { %v3634_v14 = vadd.f32 %v7858_v30, %v3595_v32 }
 0x747   : > { %5293 = vmatmul.msk.bf16.gmra.mxu3 %vm756_vm0, %v3747_v18  ;;  %5319 = vmatmul.msk.bf16.gmra.mxu1 %vm2361_vm11, %v8928_v49  ;;  %v3698_v59 = vmul.f32 0.01, %v3634_v14  ;;  %vm3666_vm4 = vcmp.ge.f32.partialorder %v3634_v14, 0.0  ;;  %v8935_v18 = vld [vmem:[#allocation23_spill] sm:$0xff]  ;;  %v3912_v49 = vpack.c.bf16 %v3845_v28, %v3845_v28  ;;  %v8938_v28 = vld [vmem:[#allocation25_spill] sm:$0xff] }
 0x748   : > { %v8937_v20 = vpack.c.bf16 %v8935_v18, %v8936_v58 }
 0x749   : > { %v3730_v37 = vsel %vm3666_vm4, %v3634_v14, %v3698_v59  ;;  %v3960_v59 = vunpack.c.l.b16 %v3912_v49 }
 0x74a   : > { %v3848_v22 = vpop.f32.mrf.mxu3 }
 0x74c   : > { %v3597_v23 = vpop.f32.mrf.mxu1 }
 0x74d   : > { %v3635_v1 = vadd.f32 %v7858_v30, %v3597_v23  ;;  %v8932_v30 = vld [vmem:[#allocation21_spill] sm:$0xff] }
 0x74e   : > { %v8934_v13 = vpack.c.bf16 %v8932_v30, %v8933_v8 }
 0x74f   : > { %vm3667_vm3 = vcmp.ge.f32.partialorder %v3635_v1, 0.0  ;;  %v3699_v36 = vmul.f32 0.01, %v3635_v1 }
 0x751   : > { %v3731_v4 = vsel %vm3667_vm3, %v3635_v1, %v3699_v36  ;;  %v3911_v1 = vpack.c.bf16 %v3843_v33, %v3843_v33 }
 0x752   : > { %v3850_v17 = vpop.f32.mrf.mxu3  ;;  %v3748_v15 = vpack.c.bf16 %v3731_v4, %v3730_v37 }
 0x753   : > { %v3914_v39 = vpack.c.bf16 %v3850_v17, %v3850_v17  ;;  %v3959_v17 = vunpack.c.l.b16 %v3911_v1  ;;  %v8948_v1 = vld [vmem:[#allocation30_spill] sm:$0xff] }
 0x754   : > { %v8216_v37 = vpop.f32.mrf.mxu1 }
 0x755   : > { %v3962_v14 = vunpack.c.l.b16 %v3914_v39  ;;  %v3971_v6 = vpack.c.b16 %v3960_v59, %v3959_v17 }
 0x757   : > { %5294 = vmatmul.msk.bf16.gmra.mxu3 %vm756_vm0, %v3748_v15  ;;  %5320 = vmatmul.msk.bf16.gmra.mxu1 %vm2361_vm11, %v8931_v41 }
 0x75a   : > { %v3853_v54 = vpop.f32.mrf.mxu3 }
 0x75b   : > { %v3915_v27 = vpack.c.bf16 %v3853_v54, %v3853_v54 }
 0x75d   : > { %v3963_v53 = vunpack.c.l.b16 %v3915_v27 }
 0x762   : > { %v3855_v52 = vpop.f32.mrf.mxu3 }
 0x763   : > { %v3916_v57 = vpack.c.bf16 %v3855_v52, %v3855_v52  ;;  %v8939_v52 = vld [vmem:[#allocation24_spill] sm:$0xff] }
 0x764   : > { %v8940_v30 = vpack.c.bf16 %v8938_v28, %v8939_v52 }
 0x765   : > { %v3964_v2 = vunpack.c.l.b16 %v3916_v57 }
 0x767   : > { %5295 = vmatmul.msk.bf16.gmra.mxu3 %vm756_vm0, %v3749_v43  ;;  %5321 = vmatmul.msk.bf16.gmra.mxu1 %vm2361_vm11, %v8934_v13  ;;  %v3913_v43 = vpack.c.bf16 %v3848_v22, %v3848_v22  ;;  %v3973_v23 = vpack.c.b16 %v3964_v2, %v3963_v53  ;;  %v8228_v13 = vpop.f32.mrf.mxu1 }
 0x769   : > { %v3961_v36 = vunpack.c.l.b16 %v3913_v43 }
 0x76a   : > { %v3858_v3 = vpop.f32.mrf.mxu3 }
 0x76b   : > { %v3917_v51 = vpack.c.bf16 %v3858_v3, %v3858_v3  ;;  %v3972_v4 = vpack.c.b16 %v3962_v14, %v3961_v36 }
 0x76d   : > { %v3965_v56 = vunpack.c.l.b16 %v3917_v51 }
 0x76f   : > { %v8236_v57 = vpop.f32.mrf.mxu1 }
 0x772   : > { %v3860_v31 = vpop.f32.mrf.mxu3 }
 0x773   : > { %v3918_v40 = vpack.c.bf16 %v3860_v31, %v3860_v31 }
 0x775   : > { %v3966_v48 = vunpack.c.l.b16 %v3918_v40 }
 0x777   : > { %v3974_v32 = vpack.c.b16 %v3966_v48, %v3965_v56  ;;  %5322 = vmatmul.msk.bf16.gmra.mxu1 %vm2361_vm11, %v8937_v20  ;;  %v8252_v44 = vpop.f32.mrf.mxu1 }
 0x779   : > { %3983 = vmatpush.bf16.msra.mxu2 %v3974_v32 }
 0x77a   : > { %v3863_v55 = vpop.f32.mrf.mxu3 }
 0x77b   : > { %v3919_v15 = vpack.c.bf16 %v3863_v55, %v3863_v55 }
 0x77d   : > { %3984 = vmatpush.bf16.msra.mxu2 %v3973_v23  ;;  %v8218_v22 = vunpack.c.l.b16 %v3919_v15  ;;  %v8947_v23 = vld [vmem:[#allocation31_spill] sm:$0xff]  ;;  %v8950_v15 = vld [vmem:[#allocation33_spill] sm:$0xff] }
 0x77e   : > { %v8949_v36 = vpack.c.bf16 %v8947_v23, %v8948_v1 }
 0x77f   : > { %v8259_v18 = vpop.f32.mrf.mxu1 }
 0x781   : > { %3985 = vmatpush.bf16.msra.mxu2 %v3972_v4 }
 0x782   : > { %v3865_v16 = vpop.f32.mrf.mxu3 }
 0x783   : > { %v3920_v41 = vpack.c.bf16 %v3865_v16, %v3865_v16  ;;  %v8951_v16 = vld [vmem:[#allocation32_spill] sm:$0xff] }
 0x785   : > { %v8220_v54 = vunpack.c.l.b16 %v3920_v41  ;;  %3986 = vmatpush.bf16.msra.mxu2 %v3971_v6  ;;  %v8952_v6 = vpack.c.bf16 %v8950_v15, %v8951_v16 }
 0x787   : > { %v4064_v33 = vpack.c.b16 %v8220_v54, %v8218_v22  ;;  %5323 = vmatmul.msk.bf16.gmra.mxu1 %vm2361_vm11, %v8940_v30  ;;  %v8261_v43 = vpop.f32.mrf.mxu1 }
 0x789   : > { %3987 = vmatpush.bf16.msra.mxu2 %v3970_v62 }
 0x78a   : > { %v3868_v8 = vpop.f32.mrf.mxu3 }
 0x78b   : > { %v3921_v3 = vpack.c.bf16 %v3868_v8, %v3868_v8 }
 0x78d   : > { %3988 = vmatpush.bf16.msra.mxu2 %v3969_v45  ;;  %v8238_v40 = vunpack.c.l.b16 %v3921_v3  ;;  %v8942_v45 = vld [vmem:[#allocation26_spill] sm:$0xff] }
 0x78e   : > { %v8943_v62 = vpack.c.bf16 %v8941_v10, %v8942_v45 }
 0x791   : > { %3989 = vmatpush.bf16.msra.mxu2 %v3968_v7 }
 0x792   : > { %v3870_v51 = vpop.f32.mrf.mxu3 }
 0x793   : > { %v3922_v31 = vpack.c.bf16 %v3870_v51, %v3870_v51 }
 0x795   : > { %v8240_v27 = vunpack.c.l.b16 %v3922_v31  ;;  %3990 = vmatpush.bf16.msra.mxu2 %v3967_v24  ;;  %v8945_v24 = vld [vmem:[#allocation28_spill] sm:$0xff] }
 0x796   : > { %v8946_v32 = vpack.c.bf16 %v8944_v11, %v8945_v24 }
 0x797   : > { %v4065_v0 = vpack.c.b16 %v8240_v27, %v8238_v40  ;;  %5324 = vmatmul.msk.bf16.gmra.mxu1 %vm2361_vm11, %v8943_v62 }
 0x798   : > { %3991 = vmatmul.bf16.vlgmr.msra.gmra.mxu2 %v7376_v42 }
 0x79a   : > { %v3873_v26 = vpop.f32.mrf.mxu3 }
 0x79b   : > { %v3923_v7 = vpack.c.bf16 %v3873_v26, %v3873_v26 }
 0x79d   : > { %v4052_v39 = vunpack.c.l.b16 %v3923_v7 }
 0x7a2   : > { %v3875_v56 = vpop.f32.mrf.mxu3 }
 0x7a3   : > { %v3924_v48 = vpack.c.bf16 %v3875_v56, %v3875_v56 }
 0x7a5   : > { %v4053_v2 = vunpack.c.l.b16 %v3924_v48 }
 0x7a7   : > { %v4066_v5 = vpack.c.b16 %v4053_v2, %v4052_v39  ;;  %5325 = vmatmul.msk.bf16.gmra.mxu1 %vm2361_vm11, %v8946_v32 }
 0x7a8   : > { %3996 = vmatmul.bf16.gmra.mxu2 %v7422_v60  ;;  %v8268_v60 = vpop.f32.mrf.mxu1 }
 0x7aa   : > { %v3878_v58 = vpop.f32.mrf.mxu3 }
 0x7ab   : > { %v3925_v42 = vpack.c.bf16 %v3878_v58, %v3878_v58 }
 0x7ad   : > { %v4054_v55 = vunpack.c.l.b16 %v3925_v42 }
 0x7b0   : > { %v8270_v17 = vpop.f32.mrf.mxu1 }
 0x7b2   : > { %v3880_v20 = vpop.f32.mrf.mxu3 }
 0x7b3   : > { %v3926_v53 = vpack.c.bf16 %v3880_v20, %v3880_v20 }
 0x7b5   : > { %v4055_v49 = vunpack.c.l.b16 %v3926_v53 }
 0x7b7   : > { %v4067_v14 = vpack.c.b16 %v4055_v49, %v4054_v55  ;;  %5326 = vmatmul.msk.bf16.gmra.mxu1 %vm2361_vm11, %v8949_v36  ;;  %v8297_v55 = vld [vmem:[%s8775_s11 + $0x8] ss:$0 sm:$0xff] }
 0x7b8   : > { %4001 = vmatmul.bf16.gmra.mxu2 %v7459_v29 }
 0x7ba   : > { %v3883_v59 = vpop.f32.mrf.mxu3 }
 0x7bb   : > { %v3927_v11 = vpack.c.bf16 %v3883_v59, %v3883_v59 }
 0x7bd   : > { %v4056_v42 = vunpack.c.l.b16 %v3927_v11  ;;  %v8338_v11 = vld [vmem:[%s8775_s11 + $0x9] ss:$0 sm:$0xff] }
 0x7c2   : > { %v3885_v4 = vpop.f32.mrf.mxu3 }
 0x7c7   : > { %5327 = vmatmul.msk.bf16.gmra.mxu1 %vm2361_vm11, %v8952_v6 }
 0x7c8   : > { %4006 = vmatmul.bf16.gmra.mxu2 %v7509_v34 }
 0x7ca   : > { %v3888_v41 = vpop.f32.mrf.mxu3 }
 0x7cb   : > { %v3929_v34 = vpack.c.bf16 %v3888_v41, %v3888_v41 }
 0x7cd   : > { %v4058_v24 = vunpack.c.l.b16 %v3929_v34 }
 0x7d2   : > { %v3890_v28 = vpop.f32.mrf.mxu3 }
 0x7d3   : > { %v3930_v26 = vpack.c.bf16 %v3890_v28, %v3890_v28 }
 0x7d5   : > { %v4059_v39 = vunpack.c.l.b16 %v3930_v26 }
 0x7d7   : > { %v4069_v58 = vpack.c.b16 %v4059_v39, %v4058_v24 }
 0x7d8   : > { %4011 = vmatmul.bf16.gmra.mxu2 %v7557_v19  ;;  %v3928_v19 = vpack.c.bf16 %v3885_v4, %v3885_v4 }
 0x7da   : > { %v3893_v52 = vpop.f32.mrf.mxu3  ;;  %v4057_v32 = vunpack.c.l.b16 %v3928_v19 }
 0x7db   : > { %v3931_v10 = vpack.c.bf16 %v3893_v52, %v3893_v52 }
 0x7dc   : > { %v4068_v20 = vpack.c.b16 %v4057_v32, %v4056_v42 }
 0x7dd   : > { %v4060_v48 = vunpack.c.l.b16 %v3931_v10 }
 0x7e2   : > { %v3895_v30 = vpop.f32.mrf.mxu3 }
 0x7e3   : > { %v3932_v51 = vpack.c.bf16 %v3895_v30, %v3895_v30 }
 0x7e5   : > { %v4061_v7 = vunpack.c.l.b16 %v3932_v51 }
 0x7e7   : > { %v4070_v2 = vpack.c.b16 %v4061_v7, %v4060_v48 }
 0x7e8   : > { %4016 = vmatmul.bf16.gmra.mxu2 %v7619_v38  ;;  %v5382_v38 = vld [vmem:[%s8773_s9 + $0x8] sm:$0xff] }
 0x7e9   : > { %4433 = vmatpush.bf16.msrb.mxu2 %v5382_v38 }
 0x7ea   : > { %v3898_v29 = vpop.f32.mrf.mxu3 }
 0x7eb   : > { %v3933_v8 = vpack.c.bf16 %v3898_v29, %v3898_v29 }
 0x7ed   : > { %v4062_v45 = vunpack.c.l.b16 %v3933_v8 }
 0x7f2   : > { %v3900_v3 = vpop.f32.mrf.mxu3 }
 0x7f3   : > { %v3934_v31 = vpack.c.bf16 %v3900_v3, %v3900_v3 }
 0x7f5   : > { %v4063_v62 = vunpack.c.l.b16 %v3934_v31 }
 0x7f7   : > { %v4071_v56 = vpack.c.b16 %v4063_v62, %v4062_v45 }
 0x7f8   : > { %4021 = vmatmul.bf16.gmra.mxu2 %v7668_v9  ;;  %v5381_v9 = vld [vmem:[%s8773_s9] sm:$0xff] }
 0x7f9   : > { %4080 = vmatpush.bf16.msra.mxu0 %v4071_v56  ;;  %4434 = vmatpush.bf16.msrb.mxu2 %v5381_v9 }
 0x7fd   : > { %4081 = vmatpush.bf16.msra.mxu0 %v4070_v2  ;;  %v4549_v2 = vlaneseq }
 0x7ff   : > { %v8333_v38 = vand.u32 127, %v4549_v2 }
 0x801   : > { %4082 = vmatpush.bf16.msra.mxu0 %v4069_v58  ;;  %vm4551_vm11 = vcmp.lt.s32.totalorder %v8333_v38, 8 }
 0x805   : > { %4083 = vmatpush.bf16.msra.mxu0 %v4068_v20 }
 0x808   : > { %4026 = vmatmul.bf16.gmra.mxu2 %v7715_v46 }
 0x809   : > { %4084 = vmatpush.bf16.msra.mxu0 %v4067_v14 }
 0x80d   : > { %4085 = vmatpush.bf16.msra.mxu0 %v4066_v5 }
 0x811   : > { %4086 = vmatpush.bf16.msra.mxu0 %v4065_v0 }
 0x815   : > { %4087 = vmatpush.bf16.msra.mxu0 %v4064_v33 }
 0x818   : > { %4088 = vmatmul.bf16.vlgmr.msra.gmra.mxu0 %v7842_v47 }
 0x81b   : > { %v3992_v53 = vpop.f32.mrf.mxu2 }
 0x81c   : > { %v4130_v49 = vadd.f32 %v8297_v55, %v3992_v53 }
 0x823   : > { %v3994_v46 = vpop.f32.mrf.mxu2 }
 0x824   : > { %v4131_v5 = vadd.f32 %v8297_v55, %v3994_v46 }
 0x826   : > { %v4162_v14 = vpack.c.bf16 %v4131_v5, %v4130_v49 }
 0x828   : > { %4093 = vmatmul.bf16.gmra.mxu0 %v7902_v35  ;;  %5336 = vmatmul.msk.bf16.vlgmr.msrb.gmra.mxu2 %vm756_vm0, %v4162_v14 }
 0x82b   : > { %v3997_v22 = vpop.f32.mrf.mxu2 }
 0x82c   : > { %v4132_v47 = vadd.f32 %v8297_v55, %v3997_v22 }
 0x833   : > { %v3999_v54 = vpop.f32.mrf.mxu2 }
 0x834   : > { %v4133_v33 = vadd.f32 %v8297_v55, %v3999_v54 }
 0x836   : > { %v4163_v40 = vpack.c.bf16 %v4133_v33, %v4132_v47  ;;  %v4307_v47 = vpop.f32.mrf.mxu1 }
 0x838   : > { %4098 = vmatmul.bf16.gmra.mxu0 %v7952_v61  ;;  %5337 = vmatmul.msk.bf16.gmra.mxu2 %vm756_vm0, %v4163_v40 }
 0x83b   : > { %v4002_v27 = vpop.f32.mrf.mxu2 }
 0x83c   : > { %v4134_v23 = vadd.f32 %v8297_v55, %v4002_v27 }
 0x843   : > { %v4004_v0 = vpop.f32.mrf.mxu2 }
 0x844   : > { %v4135_v1 = vadd.f32 %v8297_v55, %v4004_v0 }
 0x846   : > { %v4164_v35 = vpack.c.bf16 %v4135_v1, %v4134_v23 }
 0x848   : > { %4103 = vmatmul.bf16.gmra.mxu0 %v8003_v50  ;;  %5338 = vmatmul.msk.bf16.gmra.mxu2 %vm756_vm0, %v4164_v35 }
 0x84b   : > { %v4007_v36 = vpop.f32.mrf.mxu2 }
 0x84c   : > { %v4136_v4 = vadd.f32 %v8297_v55, %v4007_v36 }
 0x853   : > { %v4009_v59 = vpop.f32.mrf.mxu2 }
 0x854   : > { %v4137_v15 = vadd.f32 %v8297_v55, %v4009_v59  ;;  %v4309_v59 = vpop.f32.mrf.mxu1 }
 0x856   : > { %v4165_v61 = vpack.c.bf16 %v4137_v15, %v4136_v4 }
 0x858   : > { %4108 = vmatmul.bf16.gmra.mxu0 %v8048_v12  ;;  %5339 = vmatmul.msk.bf16.gmra.mxu2 %vm756_vm0, %v4165_v61 }
 0x85b   : > { %v4012_v16 = vpop.f32.mrf.mxu2 }
 0x85c   : > { %v4138_v41 = vadd.f32 %v8297_v55, %v4012_v16 }
 0x863   : > { %v4014_v6 = vpop.f32.mrf.mxu2 }
 0x864   : > { %v4139_v28 = vadd.f32 %v8297_v55, %v4014_v6 }
 0x866   : > { %v4166_v50 = vpack.c.bf16 %v4139_v28, %v4138_v41 }
 0x868   : > { %4113 = vmatmul.bf16.gmra.mxu0 %v8091_v21  ;;  %5340 = vmatmul.msk.bf16.gmra.mxu2 %vm756_vm0, %v4166_v50 }
 0x86b   : > { %v4017_v52 = vpop.f32.mrf.mxu2 }
 0x86c   : > { %v4140_v29 = vadd.f32 %v8297_v55, %v4017_v52 }
 0x873   : > { %v4019_v30 = vpop.f32.mrf.mxu2 }
 0x874   : > { %v4141_v8 = vadd.f32 %v8297_v55, %v4019_v30 }
 0x876   : > { %v4167_v12 = vpack.c.bf16 %v4141_v8, %v4140_v29 }
 0x878   : > { %4118 = vmatmul.bf16.gmra.mxu0 %v8105_v63  ;;  %5341 = vmatmul.msk.bf16.gmra.mxu2 %vm756_vm0, %v4167_v12 }
 0x87b   : > { %v4022_v3 = vpop.f32.mrf.mxu2 }
 0x87c   : > { %v4142_v31 = vadd.f32 %v8297_v55, %v4022_v3 }
 0x883   : > { %v4024_v51 = vpop.f32.mrf.mxu2 }
 0x884   : > { %v4143_v10 = vadd.f32 %v8297_v55, %v4024_v51 }
 0x886   : > { %v4168_v21 = vpack.c.bf16 %v4143_v10, %v4142_v31 }
 0x888   : > { %4123 = vmatmul.bf16.gmra.mxu0 %v7844_v25  ;;  %5342 = vmatmul.msk.bf16.gmra.mxu2 %vm756_vm0, %v4168_v21 }
 0x88b   : > { %v4027_v45 = vpop.f32.mrf.mxu2 }
 0x88c   : > { %v4144_v26 = vadd.f32 %v8297_v55, %v4027_v45 }
 0x893   : > { %v4029_v62 = vpop.f32.mrf.mxu2 }
 0x894   : > { %v4145_v7 = vadd.f32 %v8297_v55, %v4029_v62 }
 0x895   : > { %v4089_v63 = vpop.f32.mrf.mxu0 }
 0x896   : > { %v4169_v56 = vpack.c.bf16 %v4145_v7, %v4144_v26  ;;  %v4146_v19 = vadd.f32 %v8297_v55, %v4089_v63 }
 0x898   : > { %5343 = vmatmul.msk.bf16.gmra.mxu2 %vm756_vm0, %v4169_v56 }
 0x89d   : > { %v4091_v34 = vpop.f32.mrf.mxu0 }
 0x89e   : > { %v4147_v48 = vadd.f32 %v8297_v55, %v4091_v34 }
 0x8a0   : > { %v4170_v25 = vpack.c.bf16 %v4147_v48, %v4146_v19 }
 0x8a5   : > { %v4094_v39 = vpop.f32.mrf.mxu0 }
 0x8a6   : > { %v4148_v46 = vadd.f32 %v8297_v55, %v4094_v39 }
 0x8a8   : > { %5344 = vmatmul.msk.bf16.gmra.mxu2 %vm756_vm0, %v4170_v25 }
 0x8ab   : > { %v4436_v24 = vpop.f32.mrf.mxu2 }
 0x8ac   : > { %v4437_v32 = vadd.f32 %v4436_v24, %v8216_v37 }
 0x8ad   : > { %v4096_v58 = vpop.f32.mrf.mxu0 }
 0x8ae   : > { %v4517_v42 = vadd.f32 %v8338_v11, %v4437_v32  ;;  %v4149_v9 = vadd.f32 %v8297_v55, %v4096_v58 }
 0x8b0   : > { %v8345_v20 = vsel %vm4551_vm11, %v4517_v42, -1e+30  ;;  %v4171_v37 = vpack.c.bf16 %v4149_v9, %v4148_v46 }
 0x8b1   : > { %4584 = vmax.xlane.f32.xlu2 %v8345_v20 }
 0x8b3   : > { %v4438_v53 = vpop.f32.mrf.mxu2 }
 0x8b4   : > { %v4439_v49 = vadd.f32 %v4438_v53, %v8228_v13 }
 0x8b5   : > { %v4099_v5 = vpop.f32.mrf.mxu0 }
 0x8b6   : > { %v4518_v14 = vadd.f32 %v8338_v11, %v4439_v49  ;;  %v4150_v1 = vadd.f32 %v8297_v55, %v4099_v5 }
 0x8b8   : > { %5345 = vmatmul.msk.bf16.gmra.mxu2 %vm756_vm0, %v4171_v37  ;;  %v8355_v22 = vsel %vm4551_vm11, %v4518_v14, -1e+30 }
 0x8b9   : > { %4586 = vmax.xlane.f32.xlu0 %v8355_v22 }
 0x8bb   : > { %v4441_v54 = vpop.f32.mrf.mxu2 }
 0x8bc   : > { %v4442_v33 = vadd.f32 %v4441_v54, %v8236_v57 }
 0x8bd   : > { %v4101_v40 = vpop.f32.mrf.mxu0 }
 0x8be   : > { %v4519_v27 = vadd.f32 %v8338_v11, %v4442_v33  ;;  %v4151_v0 = vadd.f32 %v8297_v55, %v4101_v40 }
 0x8c0   : > { %v8362_v13 = vsel %vm4551_vm11, %v4519_v27, -1e+30  ;;  %v4172_v4 = vpack.c.bf16 %v4151_v0, %v4150_v1 }
 0x8c1   : > { %4588 = vmax.xlane.f32.xlu1 %v8362_v13 }
 0x8c3   : > { %v4443_v23 = vpop.f32.mrf.mxu2 }
 0x8c4   : > { %v4444_v35 = vadd.f32 %v4443_v23, %v8252_v44  ;;  %v4312_v44 = vpop.f32.mrf.mxu1 }
 0x8c5   : > { %v4104_v36 = vpop.f32.mrf.mxu0 }
 0x8c6   : > { %v4520_v57 = vadd.f32 %v8338_v11, %v4444_v35  ;;  %v4152_v30 = vadd.f32 %v8297_v55, %v4104_v36 }
 0x8c8   : > { %5346 = vmatmul.msk.bf16.gmra.mxu2 %vm756_vm0, %v4172_v4  ;;  %v8372_v15 = vsel %vm4551_vm11, %v4520_v57, -1e+30 }
 0x8c9   : > { %4590 = vmax.xlane.f32.xlu2 %v8372_v15 }
 0x8cb   : > { %v4446_v61 = vpop.f32.mrf.mxu2 }
 0x8cc   : > { %v4447_v16 = vadd.f32 %v4446_v61, %v8259_v18  ;;  %v4314_v51 = vpop.f32.mrf.mxu1 }
 0x8cd   : > { %v4106_v6 = vpop.f32.mrf.mxu0 }
 0x8ce   : > { %v4521_v41 = vadd.f32 %v8338_v11, %v4447_v16  ;;  %v4153_v50 = vadd.f32 %v8297_v55, %v4106_v6 }
 0x8d0   : > { %v8379_v28 = vsel %vm4551_vm11, %v4521_v41, -1e+30  ;;  %v4173_v12 = vpack.c.bf16 %v4153_v50, %v4152_v30 }
 0x8d1   : > { %4592 = vmax.xlane.f32.xlu0 %v8379_v28 }
 0x8d3   : > { %v4448_v52 = vpop.f32.mrf.mxu2 }
 0x8d4   : > { %v4449_v29 = vadd.f32 %v4448_v52, %v8261_v43  ;;  %v4317_v7 = vpop.f32.mrf.mxu1 }
 0x8d5   : > { %v4109_v8 = vpop.f32.mrf.mxu0 }
 0x8d6   : > { %v4522_v18 = vadd.f32 %v8338_v11, %v4449_v29  ;;  %v4154_v63 = vadd.f32 %v8297_v55, %v4109_v8 }
 0x8d8   : > { %5347 = vmatmul.msk.bf16.gmra.mxu2 %vm756_vm0, %v4173_v12  ;;  %v8389_v3 = vsel %vm4551_vm11, %v4522_v18, -1e+30 }
 0x8d9   : > { %4594 = vmax.xlane.f32.xlu1 %v8389_v3 }
 0x8db   : > { %v4451_v31 = vpop.f32.mrf.mxu2 }
 0x8dc   : > { %v4452_v10 = vadd.f32 %v4451_v31, %v8268_v60  ;;  %v4319_v24 = vpop.f32.mrf.mxu1 }
 0x8dd   : > { %v4111_v21 = vpop.f32.mrf.mxu0 }
 0x8de   : > { %v4523_v45 = vadd.f32 %v8338_v11, %v4452_v10  ;;  %v4155_v62 = vadd.f32 %v8297_v55, %v4111_v21 }
 0x8e0   : > { %v8396_v43 = vsel %vm4551_vm11, %v4523_v45, -1e+30  ;;  %v4174_v48 = vpack.c.bf16 %v4155_v62, %v4154_v63 }
 0x8e1   : > { %4596 = vmax.xlane.f32.xlu2 %v8396_v43 }
 0x8e3   : > { %v4453_v26 = vpop.f32.mrf.mxu2 }
 0x8e4   : > { %v4454_v56 = vadd.f32 %v4453_v26, %v8270_v17  ;;  %v4322_v37 = vpop.f32.mrf.mxu1 }
 0x8e5   : > { %v4114_v34 = vpop.f32.mrf.mxu0 }
 0x8e6   : > { %v4524_v60 = vadd.f32 %v8338_v11, %v4454_v56  ;;  %v4156_v9 = vadd.f32 %v8297_v55, %v4114_v34 }
 0x8e8   : > { %5348 = vmatmul.msk.bf16.gmra.mxu2 %vm756_vm0, %v4174_v48  ;;  %v8406_v19 = vsel %vm4551_vm11, %v4524_v60, -1e+30 }
 0x8e9   : > { %4598 = vmax.xlane.f32.xlu0 %v8406_v19 }
 0x8eb   : > { %v4456_v39 = vpop.f32.mrf.mxu2 }
 0x8ec   : > { %v4457_v2 = vadd.f32 %v4456_v39, %v4307_v47  ;;  %v4324_v0 = vpop.f32.mrf.mxu1 }
 0x8ed   : > { %v4116_v25 = vpop.f32.mrf.mxu0 }
 0x8ee   : > { %v4525_v32 = vadd.f32 %v8338_v11, %v4457_v2  ;;  %v4157_v58 = vadd.f32 %v8297_v55, %v4116_v25 }
 0x8f0   : > { %v8412_v17 = vsel %vm4551_vm11, %v4525_v32, -1e+30  ;;  %v4175_v49 = vpack.c.bf16 %v4157_v58, %v4156_v9 }
 0x8f1   : > { %4600 = vmax.xlane.f32.xlu1 %v8412_v17 }
 0x8f3   : > { %v4458_v42 = vpop.f32.mrf.mxu2 }
 0x8f4   : > { %v4459_v53 = vadd.f32 %v4458_v42, %v4309_v59  ;;  %v4327_v6 = vpop.f32.mrf.mxu1 }
 0x8f5   : > { %v4119_v46 = vpop.f32.mrf.mxu0 }
 0x8f6   : > { %v4526_v5 = vadd.f32 %v8338_v11, %v4459_v53  ;;  %v4158_v35 = vadd.f32 %v8297_v55, %v4119_v46 }
 0x8f8   : > { %5349 = vmatmul.msk.bf16.gmra.mxu2 %vm756_vm0, %v4175_v49  ;;  %v8421_v14 = vsel %vm4551_vm11, %v4526_v5, -1e+30 }
 0x8f9   : > { %4602 = vmax.xlane.f32.xlu2 %v8421_v14 }
 0x8fb   : > { %v4461_v54 = vpop.f32.mrf.mxu2 }
 0x8fc   : > { %v4462_v47 = vadd.f32 %v4461_v54, %v4312_v44  ;;  %v4329_v18 = vpop.f32.mrf.mxu1 }
 0x8fd   : > { %v4121_v33 = vpop.f32.mrf.mxu0 }
 0x8fe   : > { %v4527_v40 = vadd.f32 %v8338_v11, %v4462_v47  ;;  %v4159_v23 = vadd.f32 %v8297_v55, %v4121_v33 }
 0x900   : > { %v8427_v27 = vsel %vm4551_vm11, %v4527_v40, -1e+30  ;;  %v4176_v4 = vpack.c.bf16 %v4159_v23, %v4158_v35 }
 0x901   : > { %4604 = vmax.xlane.f32.xlu0 %v8427_v27 }
 0x903   : > { %v4463_v1 = vpop.f32.mrf.mxu2 }
 0x904   : > { %v4464_v36 = vadd.f32 %v4463_v1, %v4314_v51  ;;  %v4332_v26 = vpop.f32.mrf.mxu1 }
 0x905   : > { %v4124_v59 = vpop.f32.mrf.mxu0 }
 0x906   : > { %v4528_v57 = vadd.f32 %v8338_v11, %v4464_v36  ;;  %v4160_v8 = vadd.f32 %v8297_v55, %v4124_v59 }
 0x908   : > { %5350 = vmatmul.msk.bf16.gmra.mxu2 %vm756_vm0, %v4176_v4  ;;  %v8436_v61 = vsel %vm4551_vm11, %v4528_v57, -1e+30 }
 0x909   : > { %4606 = vmax.xlane.f32.xlu1 %v8436_v61 }
 0x90b   : > { %v4466_v16 = vpop.f32.mrf.mxu2 }
 0x90c   : > { %v4467_v41 = vadd.f32 %v4466_v16, %v4317_v7  ;;  %v4334_v2 = vpop.f32.mrf.mxu1 }
 0x90d   : > { %v4126_v50 = vpop.f32.mrf.mxu0 }
 0x90e   : > { %v4529_v44 = vadd.f32 %v8338_v11, %v4467_v41  ;;  %v4161_v30 = vadd.f32 %v8297_v55, %v4126_v50 }
 0x910   : > { %v8442_v52 = vsel %vm4551_vm11, %v4529_v44, -1e+30  ;;  %v4177_v51 = vpack.c.bf16 %v4161_v30, %v4160_v8 }
 0x911   : > { %4608 = vmax.xlane.f32.xlu2 %v8442_v52 }
 0x913   : > { %v4468_v29 = vpop.f32.mrf.mxu2 }
 0x914   : > { %v4469_v12 = vadd.f32 %v4468_v29, %v4319_v24  ;;  %v4337_v49 = vpop.f32.mrf.mxu1 }
 0x916   : > { %v4530_v31 = vadd.f32 %v8338_v11, %v4469_v12 }
 0x918   : > { %5351 = vmatmul.msk.bf16.gmra.mxu2 %vm756_vm0, %v4177_v51  ;;  %v8451_v10 = vsel %vm4551_vm11, %v4530_v31, -1e+30 }
 0x919   : > { %4610 = vmax.xlane.f32.xlu0 %v8451_v10 }
 0x91b   : > { %v4471_v21 = vpop.f32.mrf.mxu2 }
 0x91c   : > { %v4472_v45 = vadd.f32 %v4471_v21, %v4322_v37 }
 0x91e   : > { %v4531_v62 = vadd.f32 %v8338_v11, %v4472_v45 }
 0x920   : > { %v8457_v55 = vsel %vm4551_vm11, %v4531_v62, -1e+30 }
 0x921   : > { %4612 = vmax.xlane.f32.xlu1 %v8457_v55 }
 0x923   : > { %v4473_v7 = vpop.f32.mrf.mxu2 }
 0x924   : > { %v4474_v63 = vadd.f32 %v4473_v7, %v4324_v0  ;;  %v4585_v56 = vpop.xlane.xlu2 %4584 }
 0x925   : > { %v8461_v34 = vsub.f32 %v8345_v20, %v4585_v56 }
 0x926   : > { %v4532_v48 = vadd.f32 %v8338_v11, %v4474_v63 }
 0x927   : > { %v4680_v60 = vmul.f32 1.442695, %v8461_v34 }
 0x928   : > { %v8467_v39 = vsel %vm4551_vm11, %v4532_v48, -1e+30 }
 0x929   : > { %5547 = vpow2.f32 %v4680_v60  ;;  %4614 = vmax.xlane.f32.xlu2 %v8467_v39 }
 0x92b   : > { %v4476_v25 = vpop.f32.mrf.mxu2 }
 0x92c   : > { %v4477_v24 = vadd.f32 %v4476_v25, %v4327_v6  ;;  %v4587_v32 = vpop.xlane.xlu0 %4586 }
 0x92d   : > { %v8471_v58 = vsub.f32 %v8355_v22, %v4587_v32 }
 0x92e   : > { %v4533_v20 = vadd.f32 %v8338_v11, %v4477_v24 }
 0x92f   : > { %v5548_v42 = vpop.eup %5547  ;;  %v4682_v9 = vmul.f32 1.442695, %v8471_v58 }
 0x930   : > { %4744 = vadd.xlane.f32.xlu1 %v5548_v42  ;;  %v8477_v53 = vsel %vm4551_vm11, %v4533_v20, -1e+30 }
 0x931   : > { %5549 = vpow2.f32 %v4682_v9  ;;  %4616 = vmax.xlane.f32.xlu0 %v8477_v53 }
 0x933   : > { %v4478_v46 = vpop.f32.mrf.mxu2 }
 0x934   : > { %v4479_v5 = vadd.f32 %v4478_v46, %v4329_v18  ;;  %v4589_v37 = vpop.xlane.xlu1 %4588 }
 0x935   : > { %v8481_v22 = vsub.f32 %v8362_v13, %v4589_v37  ;;  %v4339_v13 = vpop.f32.mrf.mxu1 }
 0x936   : > { %v4534_v54 = vadd.f32 %v8338_v11, %v4479_v5 }
 0x937   : > { %v5550_v47 = vpop.eup %5549  ;;  %v4684_v33 = vmul.f32 1.442695, %v8481_v22 }
 0x938   : > { %4746 = vadd.xlane.f32.xlu2 %v5550_v47  ;;  %v8487_v40 = vsel %vm4551_vm11, %v4534_v54, -1e+30 }
 0x939   : > { %5551 = vpow2.f32 %v4684_v33  ;;  %4618 = vmax.xlane.f32.xlu1 %v8487_v40 }
 0x93b   : > { %v4481_v0 = vpop.f32.mrf.mxu2 }
 0x93c   : > { %v4482_v23 = vadd.f32 %v4481_v0, %v4332_v26  ;;  %v4591_v1 = vpop.xlane.xlu2 %4590 }
 0x93d   : > { %v8491_v35 = vsub.f32 %v8372_v15, %v4591_v1  ;;  %v4342_v29 = vpop.f32.mrf.mxu1 }
 0x93e   : > { %v4535_v36 = vadd.f32 %v8338_v11, %v4482_v23 }
 0x93f   : > { %v5552_v59 = vpop.eup %5551  ;;  %v4686_v4 = vmul.f32 1.442695, %v8491_v35 }
 0x940   : > { %4748 = vadd.xlane.f32.xlu0 %v5552_v59  ;;  %v8497_v57 = vsel %vm4551_vm11, %v4535_v36, -1e+30 }
 0x941   : > { %5553 = vpow2.f32 %v4686_v4  ;;  %4620 = vmax.xlane.f32.xlu2 %v8497_v57 }
 0x943   : > { %v4483_v16 = vpop.f32.mrf.mxu2 }
 0x944   : > { %v4484_v6 = vadd.f32 %v4483_v16, %v4334_v2  ;;  %v4593_v41 = vpop.xlane.xlu0 %4592 }
 0x945   : > { %v8501_v15 = vsub.f32 %v8379_v28, %v4593_v41  ;;  %v4344_v26 = vpop.f32.mrf.mxu1 }
 0x946   : > { %v4536_v44 = vadd.f32 %v8338_v11, %v4484_v6 }
 0x947   : > { %v5554_v50 = vpop.eup %5553  ;;  %v4688_v30 = vmul.f32 1.442695, %v8501_v15 }
 0x948   : > { %4750 = vadd.xlane.f32.xlu1 %v5554_v50  ;;  %v8507_v8 = vsel %vm4551_vm11, %v4536_v44, -1e+30 }
 0x949   : > { %5555 = vpow2.f32 %v4688_v30  ;;  %4622 = vmax.xlane.f32.xlu0 %v8507_v8 }
 0x94b   : > { %v4486_v12 = vpop.f32.mrf.mxu2 }
 0x94c   : > { %v4487_v18 = vadd.f32 %v4486_v12, %v4337_v49  ;;  %v4595_v51 = vpop.xlane.xlu1 %4594 }
 0x94d   : > { %v8511_v28 = vsub.f32 %v8389_v3, %v4595_v51  ;;  %v4347_v32 = vpop.f32.mrf.mxu1 }
 0x94e   : > { %v4537_v31 = vadd.f32 %v8338_v11, %v4487_v18 }
 0x94f   : > { %v5556_v21 = vpop.eup %5555  ;;  %v4690_v45 = vmul.f32 1.442695, %v8511_v28 }
 0x950   : > { %4752 = vadd.xlane.f32.xlu2 %v5556_v21  ;;  %v8517_v62 = vsel %vm4551_vm11, %v4537_v31, -1e+30 }
 0x951   : > { %5557 = vpow2.f32 %v4690_v45  ;;  %4624 = vmax.xlane.f32.xlu1 %v8517_v62 }
 0x953   : > { %v4488_v7 = vpop.f32.mrf.mxu2 }
 0x954   : > { %v4489_v63 = vadd.f32 %v4488_v7, %v4339_v13  ;;  %v4597_v56 = vpop.xlane.xlu2 %4596 }
 0x955   : > { %v8521_v3 = vsub.f32 %v8396_v43, %v4597_v56 }
 0x956   : > { %v4538_v48 = vadd.f32 %v8338_v11, %v4489_v63 }
 0x957   : > { %v5558_v60 = vpop.eup %5557  ;;  %v4692_v2 = vmul.f32 1.442695, %v8521_v3 }
 0x958   : > { %4754 = vadd.xlane.f32.xlu0 %v5558_v60  ;;  %v8527_v25 = vsel %vm4551_vm11, %v4538_v48, -1e+30 }
 0x959   : > { %5559 = vpow2.f32 %v4692_v2  ;;  %4626 = vmax.xlane.f32.xlu2 %v8527_v25 }
 0x95b   : > { %v4491_v24 = vpop.f32.mrf.mxu2 }
 0x95c   : > { %v4492_v20 = vadd.f32 %v4491_v24, %v4342_v29  ;;  %v4599_v42 = vpop.xlane.xlu0 %4598 }
 0x95d   : > { %v8531_v43 = vsub.f32 %v8406_v19, %v4599_v42  ;;  %v4349_v19 = vpop.f32.mrf.mxu1 }
 0x95e   : > { %v4539_v9 = vadd.f32 %v8338_v11, %v4492_v20 }
 0x95f   : > { %v5560_v46 = vpop.eup %5559  ;;  %v4694_v49 = vmul.f32 1.442695, %v8531_v43 }
 0x960   : > { %4756 = vadd.xlane.f32.xlu1 %v5560_v46  ;;  %v8537_v5 = vsel %vm4551_vm11, %v4539_v9, -1e+30 }
 0x961   : > { %5561 = vpow2.f32 %v4694_v49  ;;  %4628 = vmax.xlane.f32.xlu0 %v8537_v5 }
 0x963   : > { %v4493_v37 = vpop.f32.mrf.mxu2 }
 0x964   : > { %v4494_v54 = vadd.f32 %v4493_v37, %v4344_v26  ;;  %v4601_v47 = vpop.xlane.xlu1 %4600 }
 0x965   : > { %v8541_v33 = vsub.f32 %v8412_v17, %v4601_v47  ;;  %v4352_v44 = vpop.f32.mrf.mxu1 }
 0x966   : > { %v4540_v0 = vadd.f32 %v8338_v11, %v4494_v54 }
 0x967   : > { %v5562_v23 = vpop.eup %5561  ;;  %v4696_v1 = vmul.f32 1.442695, %v8541_v33 }
 0x968   : > { %4758 = vadd.xlane.f32.xlu2 %v5562_v23  ;;  %v8547_v13 = vsel %vm4551_vm11, %v4540_v0, -1e+30 }
 0x969   : > { %5563 = vpow2.f32 %v4696_v1  ;;  %4630 = vmax.xlane.f32.xlu1 %v8547_v13 }
 0x96b   : > { %v4496_v36 = vpop.f32.mrf.mxu2 }
 0x96c   : > { %v4497_v59 = vadd.f32 %v4496_v36, %v4347_v32  ;;  %v4603_v4 = vpop.xlane.xlu2 %4602 }
 0x96d   : > { %v8551_v17 = vsub.f32 %v8421_v14, %v4603_v4  ;;  %v4354_v45 = vpop.f32.mrf.mxu1 }
 0x96e   : > { %v4541_v16 = vadd.f32 %v8338_v11, %v4497_v59 }
 0x96f   : > { %v5564_v6 = vpop.eup %5563  ;;  %v4698_v41 = vmul.f32 1.442695, %v8551_v17 }
 0x970   : > { %4760 = vadd.xlane.f32.xlu0 %v5564_v6  ;;  %v8557_v50 = vsel %vm4551_vm11, %v4541_v16, -1e+30 }
 0x971   : > { %5565 = vpow2.f32 %v4698_v41  ;;  %4632 = vmax.xlane.f32.xlu2 %v8557_v50 }
 0x973   : > { %v4498_v30 = vpop.f32.mrf.mxu2 }
 0x974   : > { %v4499_v29 = vadd.f32 %v4498_v30, %v4349_v19  ;;  %v4605_v12 = vpop.xlane.xlu0 %4604 }
 0x975   : > { %v8561_v14 = vsub.f32 %v8427_v27, %v4605_v12  ;;  %v4357_v60 = vpop.f32.mrf.mxu1 }
 0x976   : > { %v4542_v18 = vadd.f32 %v8338_v11, %v4499_v29 }
 0x977   : > { %v5566_v51 = vpop.eup %5565  ;;  %v4700_v31 = vmul.f32 1.442695, %v8561_v14 }
 0x978   : > { %4762 = vadd.xlane.f32.xlu1 %v5566_v51  ;;  %v8567_v21 = vsel %vm4551_vm11, %v4542_v18, -1e+30 }
 0x979   : > { %5567 = vpow2.f32 %v4700_v31  ;;  %4634 = vmax.xlane.f32.xlu0 %v8567_v21 }
 0x97b   : > { %v4501_v26 = vpop.f32.mrf.mxu2 }
 0x97c   : > { %v4502_v7 = vadd.f32 %v4501_v26, %v4352_v44  ;;  %v4607_v47 = vpop.xlane.xlu1 %4606 }
 0x97d   : > { %v4359_v9 = vpop.f32.mrf.mxu1 }
 0x97e   : > { %v4543_v63 = vadd.f32 %v8338_v11, %v4502_v7 }
 0x97f   : > { %v5568_v27 = vpop.eup %5567 }
 0x980   : > { %4764 = vadd.xlane.f32.xlu2 %v5568_v27  ;;  %v8573_v56 = vsel %vm4551_vm11, %v4543_v63, -1e+30 }
 0x981   : > { %4636 = vmax.xlane.f32.xlu1 %v8573_v56 }
 0x983   : > { %v4503_v48 = vpop.f32.mrf.mxu2 }
 0x984   : > { %v4504_v2 = vadd.f32 %v4503_v48, %v4354_v45  ;;  %v4609_v49 = vpop.xlane.xlu2 %4608  ;;  %v8613_v45 = vsub.f32 %v8436_v61, %v4607_v47 }
 0x985   : > { %v8589_v54 = vsub.f32 %v8442_v52, %v4609_v49  ;;  %v4362_v36 = vpop.f32.mrf.mxu1 }
 0x986   : > { %v4544_v24 = vadd.f32 %v8338_v11, %v4504_v2  ;;  %v4702_v48 = vmul.f32 1.442695, %v8613_v45 }
 0x987   : > { %v4704_v23 = vmul.f32 1.442695, %v8589_v54 }
 0x988   : > { %v8579_v32 = vsel %vm4551_vm11, %v4544_v24, -1e+30 }
 0x989   : > { %4638 = vmax.xlane.f32.xlu2 %v8579_v32  ;;  %5569 = vpow2.f32 %v4704_v23 }
 0x98b   : > { %v4506_v20 = vpop.f32.mrf.mxu2 }
 0x98c   : > { %v4507_v42 = vadd.f32 %v4506_v20, %v4357_v60  ;;  %v4611_v59 = vpop.xlane.xlu0 %4610 }
 0x98d   : > { %v8599_v16 = vsub.f32 %v8451_v10, %v4611_v59  ;;  %v4364_v10 = vpop.f32.mrf.mxu1 }
 0x98e   : > { %v4545_v46 = vadd.f32 %v8338_v11, %v4507_v42 }
 0x98f   : > { %v4706_v12 = vmul.f32 1.442695, %v8599_v16  ;;  %v5570_v51 = vpop.eup %5569 }
 0x990   : > { %v8585_v37 = vsel %vm4551_vm11, %v4545_v46, -1e+30 }
 0x991   : > { %4640 = vmax.xlane.f32.xlu0 %v8585_v37 }
 0x993   : > { %v4508_v19 = vpop.f32.mrf.mxu2 }
 0x994   : > { %v4509_v0 = vadd.f32 %v4508_v19, %v4359_v9  ;;  %v4613_v52 = vpop.xlane.xlu1 %4612 }
 0x996   : > { %v4546_v1 = vadd.f32 %v8338_v11, %v4509_v0 }
 0x998   : > { %v8595_v4 = vsel %vm4551_vm11, %v4546_v1, -1e+30 }
 0x999   : > { %4642 = vmax.xlane.f32.xlu1 %v8595_v4 }
 0x99b   : > { %v4511_v6 = vpop.f32.mrf.mxu2 }
 0x99c   : > { %v4512_v41 = vadd.f32 %v4511_v6, %v4362_v36  ;;  %v4615_v44 = vpop.xlane.xlu2 %4614 }
 0x99d   : > { %v8602_v30 = vsub.f32 %v8467_v39, %v4615_v44 }
 0x99e   : > { %v4547_v29 = vadd.f32 %v8338_v11, %v4512_v41 }
 0x99f   : > { %v4710_v18 = vmul.f32 1.442695, %v8602_v30 }
 0x9a0   : > { %v8609_v31 = vsel %vm4551_vm11, %v4547_v29, -1e+30 }
 0x9a1   : > { %5571 = vpow2.f32 %v4710_v18  ;;  %4768 = vadd.xlane.f32.xlu1 %v5570_v51  ;;  %4644 = vmax.xlane.f32.xlu2 %v8609_v31 }
 0x9a2   : > { %5573 = vpow2.f32 %v4706_v12 }
 0x9a3   : > { %v4745_v39 = vpop.xlane.xlu1 %4744  ;;  %v4513_v26 = vpop.f32.mrf.mxu2 }
 0x9a4   : > { %5575 = vlog2.f32 %v4745_v39  ;;  %v4514_v7 = vadd.f32 %v4513_v26, %v4364_v10  ;;  %v4617_v63 = vpop.xlane.xlu0 %4616 }
 0x9a5   : > { %v8616_v27 = vsub.f32 %v8477_v53, %v4617_v63  ;;  %v8627_v53 = vsub.f32 %v8457_v55, %v4613_v52 }
 0x9a6   : > { %v4548_v60 = vadd.f32 %v8338_v11, %v4514_v7 }
 0x9a7   : > { %v5572_v2 = vpop.eup %5571  ;;  %v4712_v24 = vmul.f32 1.442695, %v8616_v27  ;;  %v4708_v46 = vmul.f32 1.442695, %v8627_v53 }
 0x9a8   : > { %v8623_v61 = vsel %vm4551_vm11, %v4548_v60, -1e+30  ;;  %v5574_v20 = vpop.eup %5573 }
 0x9a9   : > { %5577 = vpow2.f32 %v4712_v24  ;;  %4774 = vadd.xlane.f32.xlu1 %v5572_v2  ;;  %4646 = vmax.xlane.f32.xlu0 %v8623_v61 }
 0x9aa   : > { %v5576_v42 = vpop.eup %5575  ;;  %5579 = vpow2.f32 %v4702_v48  ;;  %4770 = vadd.xlane.f32.xlu2 %v5574_v20 }
 0x9ab   : > { %v4809_v9 = vmul.f32 0.6931472, %v5576_v42  ;;  %v4747_v11 = vpop.xlane.xlu2 %4746 }
 0x9ac   : > { %5581 = vlog2.f32 %v4747_v11  ;;  %v4619_v55 = vpop.xlane.xlu1 %4618 }
 0x9ad   : > { %v4872_v38 = vsub.f32 %v8461_v34, %v4809_v9  ;;  %5583 = vpow2.f32 %v4708_v46  ;;  %v8640_v0 = vsub.f32 %v8487_v40, %v4619_v55 }
 0x9af   : > { %v5578_v49 = vpop.eup %5577  ;;  %4904 = vst [vmem:[%s8634_s18] sm:$0xff] %v4872_v38  ;;  %v4714_v52 = vmul.f32 1.442695, %v8640_v0 }
 0x9b0   : > { %v5580_v47 = vpop.eup %5579 }
 0x9b1   : > { %4766 = vadd.xlane.f32.xlu0 %v5580_v47 }
 0x9b2   : > { %v5582_v19 = vpop.eup %5581  ;;  %4776 = vadd.xlane.f32.xlu2 %v5578_v49 }
 0x9b3   : > { %v4811_v23 = vmul.f32 0.6931472, %v5582_v19  ;;  %v4749_v1 = vpop.xlane.xlu0 %4748  ;;  %v5584_v41 = vpop.eup %5583 }
 0x9b4   : > { %5585 = vlog2.f32 %v4749_v1  ;;  %v4621_v36 = vpop.xlane.xlu2 %4620 }
 0x9b5   : > { %v4873_v34 = vsub.f32 %v8471_v58, %v4811_v23  ;;  %v8644_v59 = vsub.f32 %v8497_v57, %v4621_v36 }
 0x9b7   : > { %4905 = vst [vmem:[%s8634_s18 + $0x8] sm:$0xff] %v4873_v34  ;;  %v4716_v6 = vmul.f32 1.442695, %v8644_v59 }
 0x9b9   : > { %5587 = vpow2.f32 %v4716_v6  ;;  %4772 = vadd.xlane.f32.xlu0 %v5584_v41 }
 0x9ba   : > { %v5586_v40 = vpop.eup %5585  ;;  %5589 = vpow2.f32 %v4714_v52 }
 0x9bb   : > { %v4813_v44 = vmul.f32 0.6931472, %v5586_v40  ;;  %v4751_v29 = vpop.xlane.xlu1 %4750 }
 0x9bc   : > { %5591 = vlog2.f32 %v4751_v29  ;;  %v4623_v12 = vpop.xlane.xlu0 %4622 }
 0x9bd   : > { %v4874_v58 = vsub.f32 %v8481_v22, %v4813_v44  ;;  %v8651_v57 = vsub.f32 %v8507_v8, %v4623_v12 }
 0x9bf   : > { %v5588_v18 = vpop.eup %5587  ;;  %4906 = vst [vmem:[%s8634_s18 + $0x10] sm:$0xff] %v4874_v58  ;;  %v4718_v51 = vmul.f32 1.442695, %v8651_v57 }
 0x9c0   : > { %v5590_v10 = vpop.eup %5589  ;;  %4780 = vadd.xlane.f32.xlu1 %v5588_v18 }
 0x9c1   : > { %5593 = vpow2.f32 %v4718_v51  ;;  %4778 = vadd.xlane.f32.xlu0 %v5590_v10 }
 0x9c2   : > { %v5592_v39 = vpop.eup %5591 }
 0x9c3   : > { %v4815_v26 = vmul.f32 0.6931472, %v5592_v39  ;;  %v4753_v7 = vpop.xlane.xlu2 %4752 }
 0x9c4   : > { %5595 = vlog2.f32 %v4753_v7  ;;  %v4625_v63 = vpop.xlane.xlu1 %4624 }
 0x9c5   : > { %v4875_v22 = vsub.f32 %v8491_v35, %v4815_v26  ;;  %v8657_v8 = vsub.f32 %v8517_v62, %v4625_v63 }
 0x9c7   : > { %v5594_v48 = vpop.eup %5593  ;;  %4907 = vst [vmem:[%s8634_s18 + $0x18] sm:$0xff] %v4875_v22  ;;  %v4720_v60 = vmul.f32 1.442695, %v8657_v8 }
 0x9c8   : > { %4782 = vadd.xlane.f32.xlu2 %v5594_v48 }
 0x9c9   : > { %5597 = vpow2.f32 %v4720_v60 }
 0x9ca   : > { %v5596_v2 = vpop.eup %5595 }
 0x9cb   : > { %v4817_v24 = vmul.f32 0.6931472, %v5596_v2  ;;  %v4755_v20 = vpop.xlane.xlu0 %4754 }
 0x9cc   : > { %5599 = vlog2.f32 %v4755_v20  ;;  %v4627_v42 = vpop.xlane.xlu2 %4626 }
 0x9cd   : > { %v4876_v9 = vsub.f32 %v8501_v15, %v4817_v24  ;;  %v8663_v11 = vsub.f32 %v8527_v25, %v4627_v42 }
 0x9cf   : > { %v5598_v35 = vpop.eup %5597  ;;  %4908 = vst [vmem:[%s8634_s18 + $0x20] sm:$0xff] %v4876_v9  ;;  %v4722_v62 = vmul.f32 1.442695, %v8663_v11 }
 0x9d0   : > { %4784 = vadd.xlane.f32.xlu0 %v5598_v35 }
 0x9d1   : > { %5601 = vpow2.f32 %v4722_v62 }
 0x9d2   : > { %v5600_v38 = vpop.eup %5599 }
 0x9d3   : > { %v4819_v46 = vmul.f32 0.6931472, %v5600_v38  ;;  %v4757_v49 = vpop.xlane.xlu1 %4756 }
 0x9d4   : > { %5603 = vlog2.f32 %v4757_v49  ;;  %v4629_v55 = vpop.xlane.xlu0 %4628 }
 0x9d5   : > { %v4877_v47 = vsub.f32 %v8511_v28, %v4819_v46  ;;  %v8669_v19 = vsub.f32 %v8537_v5, %v4629_v55 }
 0x9d7   : > { %v5602_v15 = vpop.eup %5601  ;;  %4909 = vst [vmem:[%s8634_s18 + $0x28] sm:$0xff] %v4877_v47  ;;  %v4724_v25 = vmul.f32 1.442695, %v8669_v19 }
 0x9d8   : > { %4786 = vadd.xlane.f32.xlu1 %v5602_v15 }
 0x9d9   : > { %5605 = vpow2.f32 %v4724_v25 }
 0x9da   : > { %v5604_v23 = vpop.eup %5603 }
 0x9db   : > { %v4821_v1 = vmul.f32 0.6931472, %v5604_v23  ;;  %v4759_v36 = vpop.xlane.xlu2 %4758 }
 0x9dc   : > { %5607 = vlog2.f32 %v4759_v36  ;;  %v4631_v34 = vpop.xlane.xlu1 %4630 }
 0x9dd   : > { %v4878_v52 = vsub.f32 %v8521_v3, %v4821_v1  ;;  %v8675_v6 = vsub.f32 %v8547_v13, %v4631_v34 }
 0x9df   : > { %v5606_v28 = vpop.eup %5605  ;;  %4910 = vst [vmem:[%s8634_s18 + $0x30] sm:$0xff] %v4878_v52  ;;  %v4726_v5 = vmul.f32 1.442695, %v8675_v6 }
 0x9e0   : > { %4788 = vadd.xlane.f32.xlu2 %v5606_v28 }
 0x9e1   : > { %5609 = vpow2.f32 %v4726_v5 }
 0x9e2   : > { %v5608_v41 = vpop.eup %5607 }
 0x9e3   : > { %v4823_v40 = vmul.f32 0.6931472, %v5608_v41  ;;  %v4761_v44 = vpop.xlane.xlu0 %4760 }
 0x9e4   : > { %5611 = vlog2.f32 %v4761_v44  ;;  %v4633_v29 = vpop.xlane.xlu2 %4632 }
 0x9e5   : > { %v4879_v12 = vsub.f32 %v8531_v43, %v4823_v40  ;;  %v8681_v58 = vsub.f32 %v8557_v50, %v4633_v29 }
 0x9e7   : > { %v5610_v3 = vpop.eup %5609  ;;  %4911 = vst [vmem:[%s8634_s18 + $0x38] sm:$0xff] %v4879_v12  ;;  %v4728_v13 = vmul.f32 1.442695, %v8681_v58 }
 0x9e8   : > { %4790 = vadd.xlane.f32.xlu0 %v5610_v3 }
 0x9e9   : > { %5613 = vpow2.f32 %v4728_v13 }
 0x9ea   : > { %v5612_v18 = vpop.eup %5611 }
 0x9eb   : > { %v4825_v51 = vmul.f32 0.6931472, %v5612_v18  ;;  %v4763_v10 = vpop.xlane.xlu1 %4762 }
 0x9ec   : > { %5615 = vlog2.f32 %v4763_v10  ;;  %v4635_v39 = vpop.xlane.xlu0 %4634 }
 0x9ed   : > { %v4880_v26 = vsub.f32 %v8541_v33, %v4825_v51  ;;  %v8687_v7 = vsub.f32 %v8567_v21, %v4635_v39 }
 0x9ef   : > { %v5614_v43 = vpop.eup %5613  ;;  %4912 = vst [vmem:[%s8634_s18 + $0x40] sm:$0xff] %v4880_v26  ;;  %v4730_v50 = vmul.f32 1.442695, %v8687_v7 }
 0x9f0   : > { %4792 = vadd.xlane.f32.xlu1 %v5614_v43 }
 0x9f1   : > { %5617 = vpow2.f32 %v4730_v50 }
 0x9f2   : > { %v5616_v63 = vpop.eup %5615 }
 0x9f3   : > { %v4827_v22 = vmul.f32 0.6931472, %v5616_v63  ;;  %v4765_v48 = vpop.xlane.xlu2 %4764 }
 0x9f4   : > { %5619 = vlog2.f32 %v4765_v48  ;;  %v4637_v60 = vpop.xlane.xlu1 %4636 }
 0x9f5   : > { %v4881_v2 = vsub.f32 %v8551_v17, %v4827_v22  ;;  %v8693_v24 = vsub.f32 %v8573_v56, %v4637_v60 }
 0x9f7   : > { %v5618_v33 = vpop.eup %5617  ;;  %4913 = vst [vmem:[%s8634_s18 + $0x48] sm:$0xff] %v4881_v2  ;;  %v4732_v21 = vmul.f32 1.442695, %v8693_v24 }
 0x9f8   : > { %4794 = vadd.xlane.f32.xlu2 %v5618_v33 }
 0x9f9   : > { %5621 = vpow2.f32 %v4732_v21 }
 0x9fa   : > { %v5620_v20 = vpop.eup %5619 }
 0x9fb   : > { %v4829_v42 = vmul.f32 0.6931472, %v5620_v20 }
 0x9fc   : > { %v4639_v9 = vpop.xlane.xlu2 %4638 }
 0x9fd   : > { %v4882_v35 = vsub.f32 %v8561_v14, %v4829_v42  ;;  %v8699_v62 = vsub.f32 %v8579_v32, %v4639_v9 }
 0x9ff   : > { %v5622_v38 = vpop.eup %5621  ;;  %4914 = vst [vmem:[%s8634_s18 + $0x50] sm:$0xff] %v4882_v35  ;;  %v4734_v17 = vmul.f32 1.442695, %v8699_v62 }
 0xa00   : > { %4796 = vadd.xlane.f32.xlu0 %v5622_v38 }
 0xa01   : > { %5623 = vpow2.f32 %v4734_v17 }
 0xa04   : > { %v4641_v56 = vpop.xlane.xlu0 %4640 }
 0xa05   : > { %v8704_v46 = vsub.f32 %v8585_v37, %v4641_v56 }
 0xa07   : > { %v5624_v49 = vpop.eup %5623  ;;  %v4736_v55 = vmul.f32 1.442695, %v8704_v46 }
 0xa08   : > { %4798 = vadd.xlane.f32.xlu1 %v5624_v49 }
 0xa09   : > { %5625 = vpow2.f32 %v4736_v55 }
 0xa0c   : > { %v4643_v47 = vpop.xlane.xlu1 %4642 }
 0xa0d   : > { %v8708_v14 = vsub.f32 %v8595_v4, %v4643_v47 }
 0xa0f   : > { %v5626_v32 = vpop.eup %5625  ;;  %v4738_v15 = vmul.f32 1.442695, %v8708_v14 }
 0xa10   : > { %4800 = vadd.xlane.f32.xlu2 %v5626_v32 }
 0xa11   : > { %5627 = vpow2.f32 %v4738_v15 }
 0xa14   : > { %v4769_v25 = vpop.xlane.xlu1 %4768  ;;  %v4645_v23 = vpop.xlane.xlu2 %4644 }
 0xa15   : > { %5629 = vlog2.f32 %v4769_v25  ;;  %v8712_v37 = vsub.f32 %v8609_v31, %v4645_v23 }
 0xa17   : > { %v5628_v1 = vpop.eup %5627  ;;  %v4740_v36 = vmul.f32 1.442695, %v8712_v37 }
 0xa18   : > { %4802 = vadd.xlane.f32.xlu0 %v5628_v1 }
 0xa19   : > { %5631 = vpow2.f32 %v4740_v36 }
 0xa1b   : > { %v5630_v34 = vpop.eup %5629 }
 0xa1c   : > { %v4833_v4 = vmul.f32 0.6931472, %v5630_v34  ;;  %v4775_v52 = vpop.xlane.xlu1 %4774  ;;  %v4647_v28 = vpop.xlane.xlu0 %4646 }
 0xa1d   : > { %5633 = vlog2.f32 %v4775_v52  ;;  %v8716_v5 = vsub.f32 %v8623_v61, %v4647_v28  ;;  %v4771_v41 = vpop.xlane.xlu2 %4770 }
 0xa1e   : > { %v4884_v40 = vsub.f32 %v8589_v54, %v4833_v4  ;;  %5635 = vlog2.f32 %v4771_v41 }
 0xa1f   : > { %v5632_v31 = vpop.eup %5631  ;;  %v4742_v44 = vmul.f32 1.442695, %v8716_v5 }
 0xa20   : > { %4916 = vst [vmem:[%s8634_s18 + $0x60] sm:$0xff] %v4884_v40  ;;  %4804 = vadd.xlane.f32.xlu1 %v5632_v31 }
 0xa21   : > { %5637 = vpow2.f32 %v4742_v44 }
 0xa23   : > { %v5634_v29 = vpop.eup %5633 }
 0xa24   : > { %v5636_v12 = vpop.eup %5635  ;;  %v4839_v3 = vmul.f32 0.6931472, %v5634_v29  ;;  %v4767_v13 = vpop.xlane.xlu0 %4766 }
 0xa25   : > { %v4835_v18 = vmul.f32 0.6931472, %v5636_v12  ;;  %5639 = vlog2.f32 %v4767_v13  ;;  %v4777_v61 = vpop.xlane.xlu2 %4776 }
 0xa26   : > { %v4887_v51 = vsub.f32 %v8602_v30, %v4839_v3  ;;  %5641 = vlog2.f32 %v4777_v61 }
 0xa27   : > { %v5638_v54 = vpop.eup %5637  ;;  %v4885_v10 = vsub.f32 %v8599_v16, %v4835_v18 }
 0xa28   : > { %4919 = vst [vmem:[%s8634_s18 + $0x78] sm:$0xff] %v4887_v51  ;;  %4806 = vadd.xlane.f32.xlu2 %v5638_v54 }
 0xa29   : > { %4917 = vst [vmem:[%s8634_s18 + $0x68] sm:$0xff] %v4885_v10 }
 0xa2b   : > { %v5640_v39 = vpop.eup %5639 }
 0xa2c   : > { %v5642_v26 = vpop.eup %5641  ;;  %v4831_v43 = vmul.f32 0.6931472, %v5640_v39  ;;  %v4773_v50 = vpop.xlane.xlu0 %4772 }
 0xa2d   : > { %v4841_v63 = vmul.f32 0.6931472, %v5642_v26  ;;  %5643 = vlog2.f32 %v4773_v50 }
 0xa2e   : > { %v4883_v22 = vsub.f32 %v8613_v45, %v4831_v43 }
 0xa2f   : > { %v4888_v48 = vsub.f32 %v8616_v27, %v4841_v63 }
 0xa30   : > { %4915 = vst [vmem:[%s8634_s18 + $0x58] sm:$0xff] %v4883_v22 }
 0xa31   : > { %4920 = vst [vmem:[%s8634_s18 + $0x80] sm:$0xff] %v4888_v48 }
 0xa33   : > { %v5644_v30 = vpop.eup %5643  ;;  %v4781_v60 = vpop.xlane.xlu1 %4780 }
 0xa34   : > { %v4837_v16 = vmul.f32 0.6931472, %v5644_v30  ;;  %5645 = vlog2.f32 %v4781_v60  ;;  %v4779_v2 = vpop.xlane.xlu0 %4778 }
 0xa35   : > { %5647 = vlog2.f32 %v4779_v2 }
 0xa36   : > { %v4886_v33 = vsub.f32 %v8627_v53, %v4837_v16 }
 0xa38   : > { %4918 = vst [vmem:[%s8634_s18 + $0x70] sm:$0xff] %v4886_v33 }
 0xa3a   : > { %v5646_v21 = vpop.eup %5645 }
 0xa3b   : > { %v5648_v20 = vpop.eup %5647  ;;  %v4845_v42 = vmul.f32 0.6931472, %v5646_v21  ;;  %v4783_v45 = vpop.xlane.xlu2 %4782 }
 0xa3c   : > { %v4843_v9 = vmul.f32 0.6931472, %v5648_v20  ;;  %5649 = vlog2.f32 %v4783_v45 }
 0xa3d   : > { %v4890_v27 = vsub.f32 %v8644_v59, %v4845_v42 }
 0xa3e   : > { %v4889_v35 = vsub.f32 %v8640_v0, %v4843_v9 }
 0xa3f   : > { %4922 = vst [vmem:[%s8634_s18 + $0x90] sm:$0xff] %v4890_v27 }
 0xa40   : > { %4921 = vst [vmem:[%s8634_s18 + $0x88] sm:$0xff] %v4889_v35 }
 0xa42   : > { %v5650_v38 = vpop.eup %5649 }
 0xa43   : > { %v4847_v17 = vmul.f32 0.6931472, %v5650_v38  ;;  %v4785_v56 = vpop.xlane.xlu0 %4784 }
 0xa44   : > { %5651 = vlog2.f32 %v4785_v56 }
 0xa45   : > { %v4891_v53 = vsub.f32 %v8651_v57, %v4847_v17 }
 0xa47   : > { %4923 = vst [vmem:[%s8634_s18 + $0x98] sm:$0xff] %v4891_v53 }
 0xa4a   : > { %v5652_v49 = vpop.eup %5651 }
 0xa4b   : > { %v4849_v55 = vmul.f32 0.6931472, %v5652_v49  ;;  %v4787_v47 = vpop.xlane.xlu1 %4786 }
 0xa4c   : > { %5653 = vlog2.f32 %v4787_v47 }
 0xa4d   : > { %v4892_v32 = vsub.f32 %v8657_v8, %v4849_v55 }
 0xa4f   : > { %4924 = vst [vmem:[%s8634_s18 + $0xa0] sm:$0xff] %v4892_v32 }
 0xa52   : > { %v5654_v59 = vpop.eup %5653 }
 0xa53   : > { %v4851_v0 = vmul.f32 0.6931472, %v5654_v59  ;;  %v4789_v15 = vpop.xlane.xlu2 %4788 }
 0xa54   : > { %5655 = vlog2.f32 %v4789_v15 }
 0xa55   : > { %v4893_v25 = vsub.f32 %v8663_v11, %v4851_v0 }
 0xa57   : > { %4925 = vst [vmem:[%s8634_s18 + $0xa8] sm:$0xff] %v4893_v25 }
 0xa5a   : > { %v5656_v23 = vpop.eup %5655 }
 0xa5b   : > { %v4853_v1 = vmul.f32 0.6931472, %v5656_v23  ;;  %v4791_v57 = vpop.xlane.xlu0 %4790 }
 0xa5c   : > { %5657 = vlog2.f32 %v4791_v57 }
 0xa5d   : > { %v4894_v36 = vsub.f32 %v8669_v19, %v4853_v1 }
 0xa5f   : > { %4926 = vst [vmem:[%s8634_s18 + $0xb0] sm:$0xff] %v4894_v36 }
 0xa62   : > { %v5658_v34 = vpop.eup %5657 }
 0xa63   : > { %v4855_v4 = vmul.f32 0.6931472, %v5658_v34  ;;  %v4793_v8 = vpop.xlane.xlu1 %4792 }
 0xa64   : > { %5659 = vlog2.f32 %v4793_v8 }
 0xa65   : > { %v4895_v52 = vsub.f32 %v8675_v6, %v4855_v4 }
 0xa67   : > { %4927 = vst [vmem:[%s8634_s18 + $0xb8] sm:$0xff] %v4895_v52 }
 0xa6a   : > { %v5660_v28 = vpop.eup %5659 }
 0xa6b   : > { %v4857_v41 = vmul.f32 0.6931472, %v5660_v28  ;;  %v4795_v11 = vpop.xlane.xlu2 %4794 }
 0xa6c   : > { %5661 = vlog2.f32 %v4795_v11 }
 0xa6d   : > { %v4896_v40 = vsub.f32 %v8681_v58, %v4857_v41 }
 0xa6f   : > { %4928 = vst [vmem:[%s8634_s18 + $0xc0] sm:$0xff] %v4896_v40 }
 0xa72   : > { %v5662_v31 = vpop.eup %5661 }
 0xa73   : > { %v4859_v44 = vmul.f32 0.6931472, %v5662_v31  ;;  %v4797_v19 = vpop.xlane.xlu0 %4796 }
 0xa74   : > { %5663 = vlog2.f32 %v4797_v19 }
 0xa75   : > { %v4897_v29 = vsub.f32 %v8687_v7, %v4859_v44 }
 0xa77   : > { %4929 = vst [vmem:[%s8634_s18 + $0xc8] sm:$0xff] %v4897_v29 }
 0xa7a   : > { %v5664_v12 = vpop.eup %5663 }
 0xa7b   : > { %v4861_v3 = vmul.f32 0.6931472, %v5664_v12  ;;  %v4799_v6 = vpop.xlane.xlu1 %4798 }
 0xa7c   : > { %5665 = vlog2.f32 %v4799_v6 }
 0xa7d   : > { %v4898_v13 = vsub.f32 %v8693_v24, %v4861_v3 }
 0xa7f   : > { %4930 = vst [vmem:[%s8634_s18 + $0xd0] sm:$0xff] %v4898_v13 }
 0xa82   : > { %v5666_v18 = vpop.eup %5665 }
 0xa83   : > { %v4863_v61 = vmul.f32 0.6931472, %v5666_v18  ;;  %v4801_v58 = vpop.xlane.xlu2 %4800 }
 0xa84   : > { %5667 = vlog2.f32 %v4801_v58 }
 0xa85   : > { %v4899_v51 = vsub.f32 %v8699_v62, %v4863_v61 }
 0xa87   : > { %4931 = vst [vmem:[%s8634_s18 + $0xd8] sm:$0xff] %v4899_v51 }
 0xa8a   : > { %v5668_v54 = vpop.eup %5667 }
 0xa8b   : > { %v4865_v10 = vmul.f32 0.6931472, %v5668_v54  ;;  %v4803_v7 = vpop.xlane.xlu0 %4802 }
 0xa8c   : > { %5669 = vlog2.f32 %v4803_v7 }
 0xa8d   : > { %v4900_v39 = vsub.f32 %v8704_v46, %v4865_v10 }
 0xa8f   : > { %4932 = vst [vmem:[%s8634_s18 + $0xe0] sm:$0xff] %v4900_v39 }
 0xa92   : > { %v5670_v26 = vpop.eup %5669 }
 0xa93   : > { %v4867_v24 = vmul.f32 0.6931472, %v5670_v26  ;;  %v4805_v43 = vpop.xlane.xlu1 %4804 }
 0xa94   : > { %5671 = vlog2.f32 %v4805_v43 }
 0xa95   : > { %v4901_v50 = vsub.f32 %v8708_v14, %v4867_v24 }
 0xa97   : > { %4933 = vst [vmem:[%s8634_s18 + $0xe8] sm:$0xff] %v4901_v50 }
 0xa9a   : > { %v5672_v63 = vpop.eup %5671 }
 0xa9b   : > { %v4869_v22 = vmul.f32 0.6931472, %v5672_v63  ;;  %v4807_v62 = vpop.xlane.xlu2 %4806 }
 0xa9c   : > { %5673 = vlog2.f32 %v4807_v62 }
 0xa9d   : > { %v4902_v48 = vsub.f32 %v8712_v37, %v4869_v22 }
 0xa9f   : > { %4934 = vst [vmem:[%s8634_s18 + $0xf0] sm:$0xff] %v4902_v48 }
 0xaa2   : > { %v5674_v30 = vpop.eup %5673 }
 0xaa3   : > { %v4871_v60 = vmul.f32 0.6931472, %v5674_v30 }
 0xaa5   : > { %v4903_v46 = vsub.f32 %v8716_v5, %v4871_v60 }
 0xaa7   : > { %4935 = vst [vmem:[%s8634_s18 + $0xf8] sm:$0xff] %v4903_v46 }
 0xaa8 PF: > { %s22_s21 = sadd.s32 1, %s5709_s21  }
 0xaa9   : > { %p19_p5 = scmp.ge.s32.totalorder %s22_s21, 4  }
 0xaab   :  { %21 = sbr.rel (!%p19_p5) target bundleno = 1 (0x1), region = 102 }

</bundles_post_ra>
